<compile_context>
chip_gen: v7x
topology: tpu7x:2x2x1
jax: 0.10.0
libtpu: 0.0.40
codegen_flags: <defaults>
</compile_context>

<pallas_src>
import functools

import jax
import jax.numpy as jnp
from jax.experimental import pallas as pl
from jax.experimental.pallas import tpu as pltpu


def _bilinear_coeffs(in_size: int, out_size: int):
    """Per-output-pixel source indices / blend weights matching
    F.interpolate(mode='bilinear', align_corners=False) along one axis."""
    scale = in_size / out_size
    dst = jnp.arange(out_size, dtype=jnp.float32)
    src = jnp.maximum((dst + 0.5) * scale - 0.5, 0.0)   # PyTorch clamps at 0
    i0 = jnp.minimum(jnp.floor(src).astype(jnp.int32), in_size - 1)
    i1 = jnp.minimum(i0 + 1, in_size - 1)
    w1 = src - i0.astype(jnp.float32)
    w0 = 1.0 - w1
    return i0, i1, w0, w1


def _bilinear_matrix(in_size: int, out_size: int) -> jnp.ndarray:
    """Dense 1-D interpolation matrix (out_size, in_size)."""
    i0, i1, w0, w1 = _bilinear_coeffs(in_size, out_size)
    rows = jnp.arange(out_size)
    m = jnp.zeros((out_size, in_size), jnp.float32)
    m = m.at[rows, i0].add(w0)
    m = m.at[rows, i1].add(w1)
    return m


def _pick_tile_rows(S: int, D: int, F: int) -> int:
    """Output rows per grid step: ts | S, ts*S lane-aligned (multiple of 128) or
    the full image, and per-tile VMEM buffers kept modest (v7x-safe)."""
    budget = 8 << 20
    for cand in (32, 16, 8, 4, 2, 1):
        if S % cand:
            continue
        if (cand * S) % 128 != 0 and cand != S:
            continue
        # bf16 activation slab + double-buffered f32 output tile.
        if cand * S * (2 * D + 8 * F) <= budget:
            return cand
    return S


def _seg_head_kernel(idx_ref, wgt_ref, x_ref, wxt_ref, w1_ref, b1_ref,
                     w2_ref, b2_ref, o_ref, u0_ref, a_ref):
    # idx_ref : SMEM (2, S) int32  -- i0/i1 source rows per output row
    # wgt_ref : SMEM (2, S) f32    -- w0/w1 blend weights per output row
    # x_ref   : (1, H, D, W) bf16  -- tokens of image b (resident over t)
    # wxt_ref : (W, S) bf16        -- x-axis interpolation matrix (transposed)
    # w1_ref  : (D, D) bf16   b1_ref : (D, 1) f32
    # w2_ref  : (F, D) bf16   b2_ref : (F, 1) f32
    # o_ref   : (1, F, ts*S)       -- output tile, single lane-dense store
    # u0_ref  : (H, D, S) scratch  -- x-pass(conv1(x)), cached per image
    # a_ref   : (D, ts*S) bf16 scratch -- post-ReLU activations for this tile
    t = pl.program_id(1)
    H, D, S = u0_ref.shape
    ts = a_ref.shape[1] // S

    # Per-image stage (t == 0): conv1 hoisted before the upsample (a 1x1 conv
    # commutes with bilinear interpolation), fused with the separable x-pass.
    # H is small (sqrt(num_patches)), each row is two well-shaped matmuls and a
    # contiguous leading-axis store, so live ranges stay bounded.
    @pl.when(t == 0)
    def _():
        for h in range(H):
            h0 = jnp.dot(w1_ref[...], x_ref[0, h],
                         preferred_element_type=jnp.float32)            # (D, W)
            u0_ref[h] = jnp.dot(h0.astype(jnp.bfloat16), wxt_ref[...],
                                preferred_element_type=jnp.float32
                                ).astype(u0_ref.dtype)                  # (D, S)

    # y-pass: bilinear touches exactly 2 source rows per output row (2 FMAs).
    b1v = jnp.broadcast_to(b1_ref[...], (D, S))   # hoisted bias broadcast
    for r in range(ts):                           # ts small; slices are static
        sy = t * ts + r
        i0 = idx_ref[0, sy]
        i1 = idx_ref[1, sy]
        w0 = wgt_ref[0, sy]
        w1y = wgt_ref[1, sy]
        u = (w0 * u0_ref[i0].astype(jnp.float32)
             + w1y * u0_ref[i1].astype(jnp.float32))                    # (D, S)
        a_ref[:, r * S:(r + 1) * S] = jnp.maximum(u + b1v, 0.0
                                                  ).astype(a_ref.dtype)

    # conv2: one MXU matmul for the whole tile, one lane-dense store.
    o = jnp.dot(w2_ref[...], a_ref[...],
                preferred_element_type=jnp.float32) + b2_ref[...]       # (F, ts*S)
    o_ref[0] = o.astype(o_ref.dtype)


def segmentation_head_forward(x, params, img_size):
    """x: (B, N, D) float32.  params = (w1, b1, w2, b2) in PyTorch layout:
    w1 (D, D) = conv1.weight[:, :, 0, 0], b1 (D,), w2 (F, D), b2 (F,).
    Returns (B, F, img_size, img_size) NCHW, matching the PyTorch module."""
    w1, b1, w2, b2 = params
    B, N, D = x.shape
    H = W = int(round(N ** 0.5))
    assert H * W == N, "token count must be a perfect square"
    S = int(img_size)
    F_dim = w2.shape[0]

    ts = _pick_tile_rows(S, D, F_dim)
    assert S % ts == 0

    # y-axis 2-sparse coefficients (SMEM), x-axis dense matrix (W, S) for MXU.
    i0y, i1y, w0y, w1y = _bilinear_coeffs(H, S)
    idx = jnp.stack([i0y, i1y]).astype(jnp.int32)          # (2, S)
    wgt = jnp.stack([w0y, w1y]).astype(jnp.float32)        # (2, S)
    wxt = _bilinear_matrix(W, S).T.astype(jnp.bfloat16)    # (W, S)

    # Token layout (B, H, D, W): per input row h, channels-first (D, W) tile.
    x4 = jnp.transpose(x.reshape(B, H, W, D), (0, 1, 3, 2)).astype(jnp.bfloat16)
    w1_bf = w1.astype(jnp.bfloat16)
    w2_bf = w2.astype(jnp.bfloat16)
    b1_c = b1.reshape(D, 1).astype(jnp.float32)
    b2_c = b2.reshape(F_dim, 1).astype(jnp.float32)

    # Per-image cache of x-pass(conv1(x)); drop to bf16 if f32 would be large
    # (v7x has only 64 MiB VMEM) -- it is only consumed by VPU FMAs / the MXU.
    u0_dtype = jnp.float32 if H * D * S * 4 <= (8 << 20) else jnp.bfloat16

    flops = 2 * B * (H * W * D * D          # conv1 (once per image)
                     + H * D * W * S        # separable x-pass (once per image)
                     + 2 * S * S * D        # 2-sparse y-pass
                     + S * S * D * F_dim)   # conv2
    bytes_accessed = int(x4.size * 2 + wxt.size * 2 + w1.size * 2 + b1.size * 4
                         + w2.size * 2 + b2.size * 4 + idx.size * 4
                         + wgt.size * 4 + B * F_dim * S * S * 4)

    out = pl.pallas_call(
        _seg_head_kernel,
        out_shape=jax.ShapeDtypeStruct((B, F_dim, S * S), x.dtype),
        grid_spec=pltpu.PrefetchScalarGridSpec(
            num_scalar_prefetch=0,
            grid=(B, S // ts),
            in_specs=[
                pl.BlockSpec(memory_space=pltpu.MemorySpace.SMEM),      # idx
                pl.BlockSpec(memory_space=pltpu.MemorySpace.SMEM),      # wgt
                pl.BlockSpec((1, H, D, W), lambda b, t: (b, 0, 0, 0)),  # x (resident over t)
                pl.BlockSpec((W, S), lambda b, t: (0, 0)),              # wx^T
                pl.BlockSpec((D, D), lambda b, t: (0, 0)),              # w1
                pl.BlockSpec((D, 1), lambda b, t: (0, 0)),              # b1
                pl.BlockSpec((F_dim, D), lambda b, t: (0, 0)),          # w2
                pl.BlockSpec((F_dim, 1), lambda b, t: (0, 0)),          # b2
            ],
            out_specs=pl.BlockSpec((1, F_dim, ts * S), lambda b, t: (b, 0, t)),
            scratch_shapes=[
                pltpu.VMEM((H, D, S), u0_dtype),          # per-image U0 cache
                pltpu.VMEM((D, ts * S), jnp.bfloat16),    # per-tile activations
            ],
        ),
        compiler_params=pltpu.CompilerParams(
            # b parallel (megacore), t MUST stay sequential/innermost: the U0
            # scratch computed at t == 0 is reused across the whole t sweep.
            dimension_semantics=("parallel", "arbitrary")),
        cost_estimate=pl.CostEstimate(flops=flops, transcendentals=0,
                                      bytes_accessed=bytes_accessed),
    )(idx, wgt, x4, wxt, w1_bf, b1_c, w2_bf, b2_c)
    # Free metadata reshape to PyTorch NCHW.
    return out.reshape(B, F_dim, S, S)


if __name__ == "__main__":
    # Module config (small, consistent with the forward): num_patches == N.
    embed_dim = 128     # D
    feature_dim = 8     # F
    img_size = 16       # S
    patch_size = 4      # -> num_patches = (16 // 4) ** 2 = 16 = N
    B = 2
    N = (img_size // patch_size) ** 2
    H = W = img_size // patch_size

    key = jax.random.PRNGKey(0)
    kx, k1, k2, k3, k4 = jax.random.split(key, 5)
    x = jax.random.normal(kx, (B, N, embed_dim), dtype=jnp.float32)

    # 1x1 Conv2d parameters in PyTorch layout: weight (out, in), bias (out,).
    w1 = jax.random.normal(k1, (embed_dim, embed_dim), jnp.float32) * 0.05
    b1 = jax.random.normal(k2, (embed_dim,), jnp.float32) * 0.05
    w2 = jax.random.normal(k3, (feature_dim, embed_dim), jnp.float32) * 0.05
    b2 = jax.random.normal(k4, (feature_dim,), jnp.float32) * 0.05
    params = (w1, b1, w2, b2)

    fwd = jax.jit(functools.partial(segmentation_head_forward, img_size=img_size))
    out = fwd(x, params)
    jax.block_until_ready(out)
    assert out.shape == (B, feature_dim, img_size, img_size), out.shape

    # Pure-JAX f32 reference following the PyTorch op order exactly:
    # bilinear upsample -> conv1(+b1) -> ReLU -> conv2(+b2).
    wy_r = _bilinear_matrix(H, img_size)            # (S, H)
    wx_r = _bilinear_matrix(W, img_size)            # (S, W)
    xi = x.reshape(B, H, W, embed_dim)
    up = jnp.einsum('yh,xw,bhwd->byxd', wy_r, wx_r, xi)
    h1 = jnp.einsum('byxd,od->byxo', up, w1) + b1
    act = jnp.maximum(h1, 0.0)
    ref = jnp.einsum('byxo,fo->byxf', act, w2) + b2
    ref = jnp.transpose(ref, (0, 3, 1, 2))          # NCHW

    max_err = float(jnp.max(jnp.abs(out - ref)))
    assert jnp.allclose(out, ref, atol=2e-2, rtol=2e-2), max_err

    print("KERNEL_OK")
</pallas_src>

<mosaic_0001>
module attributes {stable_mosaic.version = 11 : i64} {
  func.func private @main(%arg0: i32) attributes {dimension_semantics = [#tpu.dimension_semantics<core_parallel>], iteration_bounds = array<i64: 2>, tpu.core_type = #tpu.core_type<sc_scalar_subcore>, window_params = []} {
    return
  }
}

module attributes {stable_mosaic.version = 11 : i64} {
  func.func private @main(%arg0: i32) attributes {dimension_semantics = [#tpu.dimension_semantics<core_parallel>], iteration_bounds = array<i64: 2>, tpu.core_type = #tpu.core_type<sc_scalar_subcore>, window_params = []} {
    return
  }
}

module attributes {stable_mosaic.version = 11 : i64} {
  func.func @_seg_head_kernel(%arg0: i32, %arg1: i32, %arg2: memref<2x16xi32, #tpu.memory_space<smem>>, %arg3: memref<2x16xf32, #tpu.memory_space<smem>>, %arg4: memref<1x4x128x4xbf16, #tpu.memory_space<vmem>>, %arg5: memref<4x16xbf16, #tpu.memory_space<vmem>>, %arg6: memref<128x128xbf16, #tpu.memory_space<vmem>>, %arg7: memref<128x1xf32, #tpu.memory_space<vmem>>, %arg8: memref<8x128xbf16, #tpu.memory_space<vmem>>, %arg9: memref<8x1xf32, #tpu.memory_space<vmem>>, %arg10: memref<1x8x256xf32, #tpu.memory_space<vmem>>, %arg11: memref<4x128x16xf32, #tpu.memory_space<vmem>>, %arg12: memref<128x256xbf16, #tpu.memory_space<vmem>>) attributes {dimension_semantics = [#tpu.dimension_semantics<parallel>, #tpu.dimension_semantics<arbitrary>], iteration_bounds = array<i64: 2, 1>, scalar_prefetch = 0 : i64, scratch_operands = 2 : i64, tpu.core_type = #tpu.core_type<tc>, window_params = [{transform_indices = @transform_0, window_bounds = array<i64: 2, 16>}, {transform_indices = @transform_1, window_bounds = array<i64: 2, 16>}, {transform_indices = @transform_2, window_bounds = array<i64: 1, 4, 128, 4>}, {pipeline_mode = #tpu.pipeline_mode<synchronous>, transform_indices = @transform_3, window_bounds = array<i64: 4, 16>}, {pipeline_mode = #tpu.pipeline_mode<synchronous>, transform_indices = @transform_4, window_bounds = array<i64: 128, 128>}, {pipeline_mode = #tpu.pipeline_mode<synchronous>, transform_indices = @transform_5, window_bounds = array<i64: 128, 1>}, {pipeline_mode = #tpu.pipeline_mode<synchronous>, transform_indices = @transform_6, window_bounds = array<i64: 8, 128>}, {pipeline_mode = #tpu.pipeline_mode<synchronous>, transform_indices = @transform_7, window_bounds = array<i64: 8, 1>}, {transform_indices = @transform_8, window_bounds = array<i64: 1, 8, 256>}]} {
    %c0_i32 = arith.constant 0 : i32
    %0 = arith.cmpi eq, %arg1, %c0_i32 : i32
    %1 = arith.extui %0 : i1 to i32
    %c0_i32_0 = arith.constant 0 : i32
    %2 = arith.cmpi ne, %1, %c0_i32_0 : i32
    scf.if %2 {
      %c0_187 = arith.constant 0 : index
      %c0_188 = arith.constant 0 : index
      %431 = vector.load %arg6[%c0_187, %c0_188] : memref<128x128xbf16, #tpu.memory_space<vmem>>, vector<128x128xbf16>
      %c0_189 = arith.constant 0 : index
      %c0_190 = arith.constant 0 : index
      %c0_191 = arith.constant 0 : index
      %c0_192 = arith.constant 0 : index
      %432 = vector.load %arg4[%c0_189, %c0_190, %c0_191, %c0_192] : memref<1x4x128x4xbf16, #tpu.memory_space<vmem>>, vector<1x1x128x4xbf16>
      %433 = vector.shape_cast %432 : vector<1x1x128x4xbf16> to vector<128x4xbf16>
      %cst_193 = arith.constant dense<0.000000e+00> : vector<128x4xf32>
      %434 = tpu.matmul %431, %433, %cst_193 {dimension_numbers = #tpu.dot_dimension_numbers<[1], [0], [0], [1], [0, 0, 1, 1], [], []>} : vector<128x128xbf16>, vector<128x4xbf16>, vector<128x4xf32> -> vector<128x4xf32>
      %435 = arith.truncf %434 : vector<128x4xf32> to vector<128x4xbf16>
      %c0_194 = arith.constant 0 : index
      %c0_195 = arith.constant 0 : index
      %436 = vector.load %arg5[%c0_194, %c0_195] : memref<4x16xbf16, #tpu.memory_space<vmem>>, vector<4x16xbf16>
      %cst_196 = arith.constant dense<0.000000e+00> : vector<128x16xf32>
      %437 = tpu.matmul %435, %436, %cst_196 {dimension_numbers = #tpu.dot_dimension_numbers<[1], [0], [0], [1], [0, 0, 1, 1], [], []>} : vector<128x4xbf16>, vector<4x16xbf16>, vector<128x16xf32> -> vector<128x16xf32>
      %c0_197 = arith.constant 0 : index
      %c0_198 = arith.constant 0 : index
      %c0_199 = arith.constant 0 : index
      %438 = vector.load %arg11[%c0_197, %c0_198, %c0_199] : memref<4x128x16xf32, #tpu.memory_space<vmem>>, vector<1x128x16xf32>
      %439 = vector.shape_cast %438 : vector<1x128x16xf32> to vector<128x16xf32>
      %440 = vector.shape_cast %437 : vector<128x16xf32> to vector<1x128x16xf32>
      tpu.vector_store %arg11[%c0_197, %c0_198, %c0_199], %440 {strides = array<i32>} : memref<4x128x16xf32, #tpu.memory_space<vmem>>, vector<1x128x16xf32>,
      %c0_200 = arith.constant 0 : index
      %c0_201 = arith.constant 0 : index
      %441 = vector.load %arg6[%c0_200, %c0_201] : memref<128x128xbf16, #tpu.memory_space<vmem>>, vector<128x128xbf16>
      %c0_202 = arith.constant 0 : index
      %c1_203 = arith.constant 1 : index
      %c0_204 = arith.constant 0 : index
      %c0_205 = arith.constant 0 : index
      %442 = vector.load %arg4[%c0_202, %c1_203, %c0_204, %c0_205] : memref<1x4x128x4xbf16, #tpu.memory_space<vmem>>, vector<1x1x128x4xbf16>
      %443 = vector.shape_cast %442 : vector<1x1x128x4xbf16> to vector<128x4xbf16>
      %cst_206 = arith.constant dense<0.000000e+00> : vector<128x4xf32>
      %444 = tpu.matmul %441, %443, %cst_206 {dimension_numbers = #tpu.dot_dimension_numbers<[1], [0], [0], [1], [0, 0, 1, 1], [], []>} : vector<128x128xbf16>, vector<128x4xbf16>, vector<128x4xf32> -> vector<128x4xf32>
      %445 = arith.truncf %444 : vector<128x4xf32> to vector<128x4xbf16>
      %c0_207 = arith.constant 0 : index
      %c0_208 = arith.constant 0 : index
      %446 = vector.load %arg5[%c0_207, %c0_208] : memref<4x16xbf16, #tpu.memory_space<vmem>>, vector<4x16xbf16>
      %cst_209 = arith.constant dense<0.000000e+00> : vector<128x16xf32>
      %447 = tpu.matmul %445, %446, %cst_209 {dimension_numbers = #tpu.dot_dimension_numbers<[1], [0], [0], [1], [0, 0, 1, 1], [], []>} : vector<128x4xbf16>, vector<4x16xbf16>, vector<128x16xf32> -> vector<128x16xf32>
      %c1_210 = arith.constant 1 : index
      %c0_211 = arith.constant 0 : index
      %c0_212 = arith.constant 0 : index
      %448 = vector.load %arg11[%c1_210, %c0_211, %c0_212] : memref<4x128x16xf32, #tpu.memory_space<vmem>>, vector<1x128x16xf32>
      %449 = vector.shape_cast %448 : vector<1x128x16xf32> to vector<128x16xf32>
      %450 = vector.shape_cast %447 : vector<128x16xf32> to vector<1x128x16xf32>
      tpu.vector_store %arg11[%c1_210, %c0_211, %c0_212], %450 {strides = array<i32>} : memref<4x128x16xf32, #tpu.memory_space<vmem>>, vector<1x128x16xf32>,
      %c0_213 = arith.constant 0 : index
      %c0_214 = arith.constant 0 : index
      %451 = vector.load %arg6[%c0_213, %c0_214] : memref<128x128xbf16, #tpu.memory_space<vmem>>, vector<128x128xbf16>
      %c0_215 = arith.constant 0 : index
      %c2 = arith.constant 2 : index
      %c0_216 = arith.constant 0 : index
      %c0_217 = arith.constant 0 : index
      %452 = vector.load %arg4[%c0_215, %c2, %c0_216, %c0_217] : memref<1x4x128x4xbf16, #tpu.memory_space<vmem>>, vector<1x1x128x4xbf16>
      %453 = vector.shape_cast %452 : vector<1x1x128x4xbf16> to vector<128x4xbf16>
      %cst_218 = arith.constant dense<0.000000e+00> : vector<128x4xf32>
      %454 = tpu.matmul %451, %453, %cst_218 {dimension_numbers = #tpu.dot_dimension_numbers<[1], [0], [0], [1], [0, 0, 1, 1], [], []>} : vector<128x128xbf16>, vector<128x4xbf16>, vector<128x4xf32> -> vector<128x4xf32>
      %455 = arith.truncf %454 : vector<128x4xf32> to vector<128x4xbf16>
      %c0_219 = arith.constant 0 : index
      %c0_220 = arith.constant 0 : index
      %456 = vector.load %arg5[%c0_219, %c0_220] : memref<4x16xbf16, #tpu.memory_space<vmem>>, vector<4x16xbf16>
      %cst_221 = arith.constant dense<0.000000e+00> : vector<128x16xf32>
      %457 = tpu.matmul %455, %456, %cst_221 {dimension_numbers = #tpu.dot_dimension_numbers<[1], [0], [0], [1], [0, 0, 1, 1], [], []>} : vector<128x4xbf16>, vector<4x16xbf16>, vector<128x16xf32> -> vector<128x16xf32>
      %c2_222 = arith.constant 2 : index
      %c0_223 = arith.constant 0 : index
      %c0_224 = arith.constant 0 : index
      %458 = vector.load %arg11[%c2_222, %c0_223, %c0_224] : memref<4x128x16xf32, #tpu.memory_space<vmem>>, vector<1x128x16xf32>
      %459 = vector.shape_cast %458 : vector<1x128x16xf32> to vector<128x16xf32>
      %460 = vector.shape_cast %457 : vector<128x16xf32> to vector<1x128x16xf32>
      tpu.vector_store %arg11[%c2_222, %c0_223, %c0_224], %460 {strides = array<i32>} : memref<4x128x16xf32, #tpu.memory_space<vmem>>, vector<1x128x16xf32>,
      %c0_225 = arith.constant 0 : index
      %c0_226 = arith.constant 0 : index
      %461 = vector.load %arg6[%c0_225, %c0_226] : memref<128x128xbf16, #tpu.memory_space<vmem>>, vector<128x128xbf16>
      %c0_227 = arith.constant 0 : index
      %c3 = arith.constant 3 : index
      %c0_228 = arith.constant 0 : index
      %c0_229 = arith.constant 0 : index
      %462 = vector.load %arg4[%c0_227, %c3, %c0_228, %c0_229] : memref<1x4x128x4xbf16, #tpu.memory_space<vmem>>, vector<1x1x128x4xbf16>
      %463 = vector.shape_cast %462 : vector<1x1x128x4xbf16> to vector<128x4xbf16>
      %cst_230 = arith.constant dense<0.000000e+00> : vector<128x4xf32>
      %464 = tpu.matmul %461, %463, %cst_230 {dimension_numbers = #tpu.dot_dimension_numbers<[1], [0], [0], [1], [0, 0, 1, 1], [], []>} : vector<128x128xbf16>, vector<128x4xbf16>, vector<128x4xf32> -> vector<128x4xf32>
      %465 = arith.truncf %464 : vector<128x4xf32> to vector<128x4xbf16>
      %c0_231 = arith.constant 0 : index
      %c0_232 = arith.constant 0 : index
      %466 = vector.load %arg5[%c0_231, %c0_232] : memref<4x16xbf16, #tpu.memory_space<vmem>>, vector<4x16xbf16>
      %cst_233 = arith.constant dense<0.000000e+00> : vector<128x16xf32>
      %467 = tpu.matmul %465, %466, %cst_233 {dimension_numbers = #tpu.dot_dimension_numbers<[1], [0], [0], [1], [0, 0, 1, 1], [], []>} : vector<128x4xbf16>, vector<4x16xbf16>, vector<128x16xf32> -> vector<128x16xf32>
      %c3_234 = arith.constant 3 : index
      %c0_235 = arith.constant 0 : index
      %c0_236 = arith.constant 0 : index
      %468 = vector.load %arg11[%c3_234, %c0_235, %c0_236] : memref<4x128x16xf32, #tpu.memory_space<vmem>>, vector<1x128x16xf32>
      %469 = vector.shape_cast %468 : vector<1x128x16xf32> to vector<128x16xf32>
      %470 = vector.shape_cast %467 : vector<128x16xf32> to vector<1x128x16xf32>
      tpu.vector_store %arg11[%c3_234, %c0_235, %c0_236], %470 {strides = array<i32>} : memref<4x128x16xf32, #tpu.memory_space<vmem>>, vector<1x128x16xf32>,
    } else {
    }
    %c0 = arith.constant 0 : index
    %c0_1 = arith.constant 0 : index
    %3 = vector.load %arg7[%c0, %c0_1] : memref<128x1xf32, #tpu.memory_space<vmem>>, vector<128x1xf32>
    %4 = vector.shape_cast %3 : vector<128x1xf32> to vector<128x1xf32>
    %5 = vector.broadcast %4 : vector<128x1xf32> to vector<128x16xf32>
    %c16_i32 = arith.constant 16 : i32
    %6 = arith.muli %arg1, %c16_i32 : i32
    %c0_i32_2 = arith.constant 0 : i32
    %7 = arith.addi %6, %c0_i32_2 : i32
    %c0_3 = arith.constant 0 : index
    %8 = arith.index_cast %7 : i32 to index
    %9 = memref.load %arg2[%c0_3, %8] : memref<2x16xi32, #tpu.memory_space<smem>>
    %c1 = arith.constant 1 : index
    %10 = arith.index_cast %7 : i32 to index
    %11 = memref.load %arg2[%c1, %10] : memref<2x16xi32, #tpu.memory_space<smem>>
    %c0_4 = arith.constant 0 : index
    %12 = arith.index_cast %7 : i32 to index
    %13 = memref.load %arg3[%c0_4, %12] : memref<2x16xf32, #tpu.memory_space<smem>>
    %c1_5 = arith.constant 1 : index
    %14 = arith.index_cast %7 : i32 to index
    %15 = memref.load %arg3[%c1_5, %14] : memref<2x16xf32, #tpu.memory_space<smem>>
    %16 = arith.index_cast %9 : i32 to index
    %c0_6 = arith.constant 0 : index
    %c0_7 = arith.constant 0 : index
    %17 = vector.load %arg11[%16, %c0_6, %c0_7] : memref<4x128x16xf32, #tpu.memory_space<vmem>>, vector<1x128x16xf32>
    %18 = vector.shape_cast %17 : vector<1x128x16xf32> to vector<128x16xf32>
    %19 = vector.broadcast %13 : f32 to vector<128x16xf32>
    %20 = arith.mulf %19, %18 : vector<128x16xf32>
    %21 = arith.index_cast %11 : i32 to index
    %c0_8 = arith.constant 0 : index
    %c0_9 = arith.constant 0 : index
    %22 = vector.load %arg11[%21, %c0_8, %c0_9] : memref<4x128x16xf32, #tpu.memory_space<vmem>>, vector<1x128x16xf32>
    %23 = vector.shape_cast %22 : vector<1x128x16xf32> to vector<128x16xf32>
    %24 = vector.broadcast %15 : f32 to vector<128x16xf32>
    %25 = arith.mulf %24, %23 : vector<128x16xf32>
    %26 = arith.addf %20, %25 : vector<128x16xf32>
    %27 = arith.addf %26, %5 : vector<128x16xf32>
    %cst = arith.constant 0.000000e+00 : f32
    %28 = vector.broadcast %cst : f32 to vector<128x16xf32>
    %29 = arith.maximumf %27, %28 : vector<128x16xf32>
    %30 = arith.truncf %29 : vector<128x16xf32> to vector<128x16xbf16>
    %c0_10 = arith.constant 0 : index
    %c0_11 = arith.constant 0 : index
    %31 = vector.load %arg12[%c0_10, %c0_11] : memref<128x256xbf16, #tpu.memory_space<vmem>>, vector<128x16xbf16>
    tpu.vector_store %arg12[%c0_10, %c0_11], %30 {strides = array<i32>} : memref<128x256xbf16, #tpu.memory_space<vmem>>, vector<128x16xbf16>,
    %c16_i32_12 = arith.constant 16 : i32
    %32 = arith.muli %arg1, %c16_i32_12 : i32
    %c1_i32 = arith.constant 1 : i32
    %33 = arith.addi %32, %c1_i32 : i32
    %c0_13 = arith.constant 0 : index
    %34 = arith.index_cast %33 : i32 to index
    %35 = memref.load %arg2[%c0_13, %34] : memref<2x16xi32, #tpu.memory_space<smem>>
    %c1_14 = arith.constant 1 : index
    %36 = arith.index_cast %33 : i32 to index
    %37 = memref.load %arg2[%c1_14, %36] : memref<2x16xi32, #tpu.memory_space<smem>>
    %c0_15 = arith.constant 0 : index
    %38 = arith.index_cast %33 : i32 to index
    %39 = memref.load %arg3[%c0_15, %38] : memref<2x16xf32, #tpu.memory_space<smem>>
    %c1_16 = arith.constant 1 : index
    %40 = arith.index_cast %33 : i32 to index
    %41 = memref.load %arg3[%c1_16, %40] : memref<2x16xf32, #tpu.memory_space<smem>>
    %42 = arith.index_cast %35 : i32 to index
    %c0_17 = arith.constant 0 : index
    %c0_18 = arith.constant 0 : index
    %43 = vector.load %arg11[%42, %c0_17, %c0_18] : memref<4x128x16xf32, #tpu.memory_space<vmem>>, vector<1x128x16xf32>
    %44 = vector.shape_cast %43 : vector<1x128x16xf32> to vector<128x16xf32>
    %45 = vector.broadcast %39 : f32 to vector<128x16xf32>
    %46 = arith.mulf %45, %44 : vector<128x16xf32>
    %47 = arith.index_cast %37 : i32 to index
    %c0_19 = arith.constant 0 : index
    %c0_20 = arith.constant 0 : index
    %48 = vector.load %arg11[%47, %c0_19, %c0_20] : memref<4x128x16xf32, #tpu.memory_space<vmem>>, vector<1x128x16xf32>
    %49 = vector.shape_cast %48 : vector<1x128x16xf32> to vector<128x16xf32>
    %50 = vector.broadcast %41 : f32 to vector<128x16xf32>
    %51 = arith.mulf %50, %49 : vector<128x16xf32>
    %52 = arith.addf %46, %51 : vector<128x16xf32>
    %53 = arith.addf %52, %5 : vector<128x16xf32>
    %cst_21 = arith.constant 0.000000e+00 : f32
    %54 = vector.broadcast %cst_21 : f32 to vector<128x16xf32>
    %55 = arith.maximumf %53, %54 : vector<128x16xf32>
    %56 = arith.truncf %55 : vector<128x16xf32> to vector<128x16xbf16>
    %c0_22 = arith.constant 0 : index
    %c16 = arith.constant 16 : index
    %57 = vector.load %arg12[%c0_22, %c16] : memref<128x256xbf16, #tpu.memory_space<vmem>>, vector<128x16xbf16>
    tpu.vector_store %arg12[%c0_22, %c16], %56 {strides = array<i32>} : memref<128x256xbf16, #tpu.memory_space<vmem>>, vector<128x16xbf16>,
    %c16_i32_23 = arith.constant 16 : i32
    %58 = arith.muli %arg1, %c16_i32_23 : i32
    %c2_i32 = arith.constant 2 : i32
    %59 = arith.addi %58, %c2_i32 : i32
    %c0_24 = arith.constant 0 : index
    %60 = arith.index_cast %59 : i32 to index
    %61 = memref.load %arg2[%c0_24, %60] : memref<2x16xi32, #tpu.memory_space<smem>>
    %c1_25 = arith.constant 1 : index
    %62 = arith.index_cast %59 : i32 to index
    %63 = memref.load %arg2[%c1_25, %62] : memref<2x16xi32, #tpu.memory_space<smem>>
    %c0_26 = arith.constant 0 : index
    %64 = arith.index_cast %59 : i32 to index
    %65 = memref.load %arg3[%c0_26, %64] : memref<2x16xf32, #tpu.memory_space<smem>>
    %c1_27 = arith.constant 1 : index
    %66 = arith.index_cast %59 : i32 to index
    %67 = memref.load %arg3[%c1_27, %66] : memref<2x16xf32, #tpu.memory_space<smem>>
    %68 = arith.index_cast %61 : i32 to index
    %c0_28 = arith.constant 0 : index
    %c0_29 = arith.constant 0 : index
    %69 = vector.load %arg11[%68, %c0_28, %c0_29] : memref<4x128x16xf32, #tpu.memory_space<vmem>>, vector<1x128x16xf32>
    %70 = vector.shape_cast %69 : vector<1x128x16xf32> to vector<128x16xf32>
    %71 = vector.broadcast %65 : f32 to vector<128x16xf32>
    %72 = arith.mulf %71, %70 : vector<128x16xf32>
    %73 = arith.index_cast %63 : i32 to index
    %c0_30 = arith.constant 0 : index
    %c0_31 = arith.constant 0 : index
    %74 = vector.load %arg11[%73, %c0_30, %c0_31] : memref<4x128x16xf32, #tpu.memory_space<vmem>>, vector<1x128x16xf32>
    %75 = vector.shape_cast %74 : vector<1x128x16xf32> to vector<128x16xf32>
    %76 = vector.broadcast %67 : f32 to vector<128x16xf32>
    %77 = arith.mulf %76, %75 : vector<128x16xf32>
    %78 = arith.addf %72, %77 : vector<128x16xf32>
    %79 = arith.addf %78, %5 : vector<128x16xf32>
    %cst_32 = arith.constant 0.000000e+00 : f32
    %80 = vector.broadcast %cst_32 : f32 to vector<128x16xf32>
    %81 = arith.maximumf %79, %80 : vector<128x16xf32>
    %82 = arith.truncf %81 : vector<128x16xf32> to vector<128x16xbf16>
    %c0_33 = arith.constant 0 : index
    %c32 = arith.constant 32 : index
    %83 = vector.load %arg12[%c0_33, %c32] : memref<128x256xbf16, #tpu.memory_space<vmem>>, vector<128x16xbf16>
    tpu.vector_store %arg12[%c0_33, %c32], %82 {strides = array<i32>} : memref<128x256xbf16, #tpu.memory_space<vmem>>, vector<128x16xbf16>,
    %c16_i32_34 = arith.constant 16 : i32
    %84 = arith.muli %arg1, %c16_i32_34 : i32
    %c3_i32 = arith.constant 3 : i32
    %85 = arith.addi %84, %c3_i32 : i32
    %c0_35 = arith.constant 0 : index
    %86 = arith.index_cast %85 : i32 to index
    %87 = memref.load %arg2[%c0_35, %86] : memref<2x16xi32, #tpu.memory_space<smem>>
    %c1_36 = arith.constant 1 : index
    %88 = arith.index_cast %85 : i32 to index
    %89 = memref.load %arg2[%c1_36, %88] : memref<2x16xi32, #tpu.memory_space<smem>>
    %c0_37 = arith.constant 0 : index
    %90 = arith.index_cast %85 : i32 to index
    %91 = memref.load %arg3[%c0_37, %90] : memref<2x16xf32, #tpu.memory_space<smem>>
    %c1_38 = arith.constant 1 : index
    %92 = arith.index_cast %85 : i32 to index
    %93 = memref.load %arg3[%c1_38, %92] : memref<2x16xf32, #tpu.memory_space<smem>>
    %94 = arith.index_cast %87 : i32 to index
    %c0_39 = arith.constant 0 : index
    %c0_40 = arith.constant 0 : index
    %95 = vector.load %arg11[%94, %c0_39, %c0_40] : memref<4x128x16xf32, #tpu.memory_space<vmem>>, vector<1x128x16xf32>
    %96 = vector.shape_cast %95 : vector<1x128x16xf32> to vector<128x16xf32>
    %97 = vector.broadcast %91 : f32 to vector<128x16xf32>
    %98 = arith.mulf %97, %96 : vector<128x16xf32>
    %99 = arith.index_cast %89 : i32 to index
    %c0_41 = arith.constant 0 : index
    %c0_42 = arith.constant 0 : index
    %100 = vector.load %arg11[%99, %c0_41, %c0_42] : memref<4x128x16xf32, #tpu.memory_space<vmem>>, vector<1x128x16xf32>
    %101 = vector.shape_cast %100 : vector<1x128x16xf32> to vector<128x16xf32>
    %102 = vector.broadcast %93 : f32 to vector<128x16xf32>
    %103 = arith.mulf %102, %101 : vector<128x16xf32>
    %104 = arith.addf %98, %103 : vector<128x16xf32>
    %105 = arith.addf %104, %5 : vector<128x16xf32>
    %cst_43 = arith.constant 0.000000e+00 : f32
    %106 = vector.broadcast %cst_43 : f32 to vector<128x16xf32>
    %107 = arith.maximumf %105, %106 : vector<128x16xf32>
    %108 = arith.truncf %107 : vector<128x16xf32> to vector<128x16xbf16>
    %c0_44 = arith.constant 0 : index
    %c48 = arith.constant 48 : index
    %109 = vector.load %arg12[%c0_44, %c48] : memref<128x256xbf16, #tpu.memory_space<vmem>>, vector<128x16xbf16>
    tpu.vector_store %arg12[%c0_44, %c48], %108 {strides = array<i32>} : memref<128x256xbf16, #tpu.memory_space<vmem>>, vector<128x16xbf16>,
    %c16_i32_45 = arith.constant 16 : i32
    %110 = arith.muli %arg1, %c16_i32_45 : i32
    %c4_i32 = arith.constant 4 : i32
    %111 = arith.addi %110, %c4_i32 : i32
    %c0_46 = arith.constant 0 : index
    %112 = arith.index_cast %111 : i32 to index
    %113 = memref.load %arg2[%c0_46, %112] : memref<2x16xi32, #tpu.memory_space<smem>>
    %c1_47 = arith.constant 1 : index
    %114 = arith.index_cast %111 : i32 to index
    %115 = memref.load %arg2[%c1_47, %114] : memref<2x16xi32, #tpu.memory_space<smem>>
    %c0_48 = arith.constant 0 : index
    %116 = arith.index_cast %111 : i32 to index
    %117 = memref.load %arg3[%c0_48, %116] : memref<2x16xf32, #tpu.memory_space<smem>>
    %c1_49 = arith.constant 1 : index
    %118 = arith.index_cast %111 : i32 to index
    %119 = memref.load %arg3[%c1_49, %118] : memref<2x16xf32, #tpu.memory_space<smem>>
    %120 = arith.index_cast %113 : i32 to index
    %c0_50 = arith.constant 0 : index
    %c0_51 = arith.constant 0 : index
    %121 = vector.load %arg11[%120, %c0_50, %c0_51] : memref<4x128x16xf32, #tpu.memory_space<vmem>>, vector<1x128x16xf32>
    %122 = vector.shape_cast %121 : vector<1x128x16xf32> to vector<128x16xf32>
    %123 = vector.broadcast %117 : f32 to vector<128x16xf32>
    %124 = arith.mulf %123, %122 : vector<128x16xf32>
    %125 = arith.index_cast %115 : i32 to index
    %c0_52 = arith.constant 0 : index
    %c0_53 = arith.constant 0 : index
    %126 = vector.load %arg11[%125, %c0_52, %c0_53] : memref<4x128x16xf32, #tpu.memory_space<vmem>>, vector<1x128x16xf32>
    %127 = vector.shape_cast %126 : vector<1x128x16xf32> to vector<128x16xf32>
    %128 = vector.broadcast %119 : f32 to vector<128x16xf32>
    %129 = arith.mulf %128, %127 : vector<128x16xf32>
    %130 = arith.addf %124, %129 : vector<128x16xf32>
    %131 = arith.addf %130, %5 : vector<128x16xf32>
    %cst_54 = arith.constant 0.000000e+00 : f32
    %132 = vector.broadcast %cst_54 : f32 to vector<128x16xf32>
    %133 = arith.maximumf %131, %132 : vector<128x16xf32>
    %134 = arith.truncf %133 : vector<128x16xf32> to vector<128x16xbf16>
    %c0_55 = arith.constant 0 : index
    %c64 = arith.constant 64 : index
    %135 = vector.load %arg12[%c0_55, %c64] : memref<128x256xbf16, #tpu.memory_space<vmem>>, vector<128x16xbf16>
    tpu.vector_store %arg12[%c0_55, %c64], %134 {strides = array<i32>} : memref<128x256xbf16, #tpu.memory_space<vmem>>, vector<128x16xbf16>,
    %c16_i32_56 = arith.constant 16 : i32
    %136 = arith.muli %arg1, %c16_i32_56 : i32
    %c5_i32 = arith.constant 5 : i32
    %137 = arith.addi %136, %c5_i32 : i32
    %c0_57 = arith.constant 0 : index
    %138 = arith.index_cast %137 : i32 to index
    %139 = memref.load %arg2[%c0_57, %138] : memref<2x16xi32, #tpu.memory_space<smem>>
    %c1_58 = arith.constant 1 : index
    %140 = arith.index_cast %137 : i32 to index
    %141 = memref.load %arg2[%c1_58, %140] : memref<2x16xi32, #tpu.memory_space<smem>>
    %c0_59 = arith.constant 0 : index
    %142 = arith.index_cast %137 : i32 to index
    %143 = memref.load %arg3[%c0_59, %142] : memref<2x16xf32, #tpu.memory_space<smem>>
    %c1_60 = arith.constant 1 : index
    %144 = arith.index_cast %137 : i32 to index
    %145 = memref.load %arg3[%c1_60, %144] : memref<2x16xf32, #tpu.memory_space<smem>>
    %146 = arith.index_cast %139 : i32 to index
    %c0_61 = arith.constant 0 : index
    %c0_62 = arith.constant 0 : index
    %147 = vector.load %arg11[%146, %c0_61, %c0_62] : memref<4x128x16xf32, #tpu.memory_space<vmem>>, vector<1x128x16xf32>
    %148 = vector.shape_cast %147 : vector<1x128x16xf32> to vector<128x16xf32>
    %149 = vector.broadcast %143 : f32 to vector<128x16xf32>
    %150 = arith.mulf %149, %148 : vector<128x16xf32>
    %151 = arith.index_cast %141 : i32 to index
    %c0_63 = arith.constant 0 : index
    %c0_64 = arith.constant 0 : index
    %152 = vector.load %arg11[%151, %c0_63, %c0_64] : memref<4x128x16xf32, #tpu.memory_space<vmem>>, vector<1x128x16xf32>
    %153 = vector.shape_cast %152 : vector<1x128x16xf32> to vector<128x16xf32>
    %154 = vector.broadcast %145 : f32 to vector<128x16xf32>
    %155 = arith.mulf %154, %153 : vector<128x16xf32>
    %156 = arith.addf %150, %155 : vector<128x16xf32>
    %157 = arith.addf %156, %5 : vector<128x16xf32>
    %cst_65 = arith.constant 0.000000e+00 : f32
    %158 = vector.broadcast %cst_65 : f32 to vector<128x16xf32>
    %159 = arith.maximumf %157, %158 : vector<128x16xf32>
    %160 = arith.truncf %159 : vector<128x16xf32> to vector<128x16xbf16>
    %c0_66 = arith.constant 0 : index
    %c80 = arith.constant 80 : index
    %161 = vector.load %arg12[%c0_66, %c80] : memref<128x256xbf16, #tpu.memory_space<vmem>>, vector<128x16xbf16>
    tpu.vector_store %arg12[%c0_66, %c80], %160 {strides = array<i32>} : memref<128x256xbf16, #tpu.memory_space<vmem>>, vector<128x16xbf16>,
    %c16_i32_67 = arith.constant 16 : i32
    %162 = arith.muli %arg1, %c16_i32_67 : i32
    %c6_i32 = arith.constant 6 : i32
    %163 = arith.addi %162, %c6_i32 : i32
    %c0_68 = arith.constant 0 : index
    %164 = arith.index_cast %163 : i32 to index
    %165 = memref.load %arg2[%c0_68, %164] : memref<2x16xi32, #tpu.memory_space<smem>>
    %c1_69 = arith.constant 1 : index
    %166 = arith.index_cast %163 : i32 to index
    %167 = memref.load %arg2[%c1_69, %166] : memref<2x16xi32, #tpu.memory_space<smem>>
    %c0_70 = arith.constant 0 : index
    %168 = arith.index_cast %163 : i32 to index
    %169 = memref.load %arg3[%c0_70, %168] : memref<2x16xf32, #tpu.memory_space<smem>>
    %c1_71 = arith.constant 1 : index
    %170 = arith.index_cast %163 : i32 to index
    %171 = memref.load %arg3[%c1_71, %170] : memref<2x16xf32, #tpu.memory_space<smem>>
    %172 = arith.index_cast %165 : i32 to index
    %c0_72 = arith.constant 0 : index
    %c0_73 = arith.constant 0 : index
    %173 = vector.load %arg11[%172, %c0_72, %c0_73] : memref<4x128x16xf32, #tpu.memory_space<vmem>>, vector<1x128x16xf32>
    %174 = vector.shape_cast %173 : vector<1x128x16xf32> to vector<128x16xf32>
    %175 = vector.broadcast %169 : f32 to vector<128x16xf32>
    %176 = arith.mulf %175, %174 : vector<128x16xf32>
    %177 = arith.index_cast %167 : i32 to index
    %c0_74 = arith.constant 0 : index
    %c0_75 = arith.constant 0 : index
    %178 = vector.load %arg11[%177, %c0_74, %c0_75] : memref<4x128x16xf32, #tpu.memory_space<vmem>>, vector<1x128x16xf32>
    %179 = vector.shape_cast %178 : vector<1x128x16xf32> to vector<128x16xf32>
    %180 = vector.broadcast %171 : f32 to vector<128x16xf32>
    %181 = arith.mulf %180, %179 : vector<128x16xf32>
    %182 = arith.addf %176, %181 : vector<128x16xf32>
    %183 = arith.addf %182, %5 : vector<128x16xf32>
    %cst_76 = arith.constant 0.000000e+00 : f32
    %184 = vector.broadcast %cst_76 : f32 to vector<128x16xf32>
    %185 = arith.maximumf %183, %184 : vector<128x16xf32>
    %186 = arith.truncf %185 : vector<128x16xf32> to vector<128x16xbf16>
    %c0_77 = arith.constant 0 : index
    %c96 = arith.constant 96 : index
    %187 = vector.load %arg12[%c0_77, %c96] : memref<128x256xbf16, #tpu.memory_space<vmem>>, vector<128x16xbf16>
    tpu.vector_store %arg12[%c0_77, %c96], %186 {strides = array<i32>} : memref<128x256xbf16, #tpu.memory_space<vmem>>, vector<128x16xbf16>,
    %c16_i32_78 = arith.constant 16 : i32
    %188 = arith.muli %arg1, %c16_i32_78 : i32
    %c7_i32 = arith.constant 7 : i32
    %189 = arith.addi %188, %c7_i32 : i32
    %c0_79 = arith.constant 0 : index
    %190 = arith.index_cast %189 : i32 to index
    %191 = memref.load %arg2[%c0_79, %190] : memref<2x16xi32, #tpu.memory_space<smem>>
    %c1_80 = arith.constant 1 : index
    %192 = arith.index_cast %189 : i32 to index
    %193 = memref.load %arg2[%c1_80, %192] : memref<2x16xi32, #tpu.memory_space<smem>>
    %c0_81 = arith.constant 0 : index
    %194 = arith.index_cast %189 : i32 to index
    %195 = memref.load %arg3[%c0_81, %194] : memref<2x16xf32, #tpu.memory_space<smem>>
    %c1_82 = arith.constant 1 : index
    %196 = arith.index_cast %189 : i32 to index
    %197 = memref.load %arg3[%c1_82, %196] : memref<2x16xf32, #tpu.memory_space<smem>>
    %198 = arith.index_cast %191 : i32 to index
    %c0_83 = arith.constant 0 : index
    %c0_84 = arith.constant 0 : index
    %199 = vector.load %arg11[%198, %c0_83, %c0_84] : memref<4x128x16xf32, #tpu.memory_space<vmem>>, vector<1x128x16xf32>
    %200 = vector.shape_cast %199 : vector<1x128x16xf32> to vector<128x16xf32>
    %201 = vector.broadcast %195 : f32 to vector<128x16xf32>
    %202 = arith.mulf %201, %200 : vector<128x16xf32>
    %203 = arith.index_cast %193 : i32 to index
    %c0_85 = arith.constant 0 : index
    %c0_86 = arith.constant 0 : index
    %204 = vector.load %arg11[%203, %c0_85, %c0_86] : memref<4x128x16xf32, #tpu.memory_space<vmem>>, vector<1x128x16xf32>
    %205 = vector.shape_cast %204 : vector<1x128x16xf32> to vector<128x16xf32>
    %206 = vector.broadcast %197 : f32 to vector<128x16xf32>
    %207 = arith.mulf %206, %205 : vector<128x16xf32>
    %208 = arith.addf %202, %207 : vector<128x16xf32>
    %209 = arith.addf %208, %5 : vector<128x16xf32>
    %cst_87 = arith.constant 0.000000e+00 : f32
    %210 = vector.broadcast %cst_87 : f32 to vector<128x16xf32>
    %211 = arith.maximumf %209, %210 : vector<128x16xf32>
    %212 = arith.truncf %211 : vector<128x16xf32> to vector<128x16xbf16>
    %c0_88 = arith.constant 0 : index
    %c112 = arith.constant 112 : index
    %213 = vector.load %arg12[%c0_88, %c112] : memref<128x256xbf16, #tpu.memory_space<vmem>>, vector<128x16xbf16>
    tpu.vector_store %arg12[%c0_88, %c112], %212 {strides = array<i32>} : memref<128x256xbf16, #tpu.memory_space<vmem>>, vector<128x16xbf16>,
    %c16_i32_89 = arith.constant 16 : i32
    %214 = arith.muli %arg1, %c16_i32_89 : i32
    %c8_i32 = arith.constant 8 : i32
    %215 = arith.addi %214, %c8_i32 : i32
    %c0_90 = arith.constant 0 : index
    %216 = arith.index_cast %215 : i32 to index
    %217 = memref.load %arg2[%c0_90, %216] : memref<2x16xi32, #tpu.memory_space<smem>>
    %c1_91 = arith.constant 1 : index
    %218 = arith.index_cast %215 : i32 to index
    %219 = memref.load %arg2[%c1_91, %218] : memref<2x16xi32, #tpu.memory_space<smem>>
    %c0_92 = arith.constant 0 : index
    %220 = arith.index_cast %215 : i32 to index
    %221 = memref.load %arg3[%c0_92, %220] : memref<2x16xf32, #tpu.memory_space<smem>>
    %c1_93 = arith.constant 1 : index
    %222 = arith.index_cast %215 : i32 to index
    %223 = memref.load %arg3[%c1_93, %222] : memref<2x16xf32, #tpu.memory_space<smem>>
    %224 = arith.index_cast %217 : i32 to index
    %c0_94 = arith.constant 0 : index
    %c0_95 = arith.constant 0 : index
    %225 = vector.load %arg11[%224, %c0_94, %c0_95] : memref<4x128x16xf32, #tpu.memory_space<vmem>>, vector<1x128x16xf32>
    %226 = vector.shape_cast %225 : vector<1x128x16xf32> to vector<128x16xf32>
    %227 = vector.broadcast %221 : f32 to vector<128x16xf32>
    %228 = arith.mulf %227, %226 : vector<128x16xf32>
    %229 = arith.index_cast %219 : i32 to index
    %c0_96 = arith.constant 0 : index
    %c0_97 = arith.constant 0 : index
    %230 = vector.load %arg11[%229, %c0_96, %c0_97] : memref<4x128x16xf32, #tpu.memory_space<vmem>>, vector<1x128x16xf32>
    %231 = vector.shape_cast %230 : vector<1x128x16xf32> to vector<128x16xf32>
    %232 = vector.broadcast %223 : f32 to vector<128x16xf32>
    %233 = arith.mulf %232, %231 : vector<128x16xf32>
    %234 = arith.addf %228, %233 : vector<128x16xf32>
    %235 = arith.addf %234, %5 : vector<128x16xf32>
    %cst_98 = arith.constant 0.000000e+00 : f32
    %236 = vector.broadcast %cst_98 : f32 to vector<128x16xf32>
    %237 = arith.maximumf %235, %236 : vector<128x16xf32>
    %238 = arith.truncf %237 : vector<128x16xf32> to vector<128x16xbf16>
    %c0_99 = arith.constant 0 : index
    %c128 = arith.constant 128 : index
    %239 = vector.load %arg12[%c0_99, %c128] : memref<128x256xbf16, #tpu.memory_space<vmem>>, vector<128x16xbf16>
    tpu.vector_store %arg12[%c0_99, %c128], %238 {strides = array<i32>} : memref<128x256xbf16, #tpu.memory_space<vmem>>, vector<128x16xbf16>,
    %c16_i32_100 = arith.constant 16 : i32
    %240 = arith.muli %arg1, %c16_i32_100 : i32
    %c9_i32 = arith.constant 9 : i32
    %241 = arith.addi %240, %c9_i32 : i32
    %c0_101 = arith.constant 0 : index
    %242 = arith.index_cast %241 : i32 to index
    %243 = memref.load %arg2[%c0_101, %242] : memref<2x16xi32, #tpu.memory_space<smem>>
    %c1_102 = arith.constant 1 : index
    %244 = arith.index_cast %241 : i32 to index
    %245 = memref.load %arg2[%c1_102, %244] : memref<2x16xi32, #tpu.memory_space<smem>>
    %c0_103 = arith.constant 0 : index
    %246 = arith.index_cast %241 : i32 to index
    %247 = memref.load %arg3[%c0_103, %246] : memref<2x16xf32, #tpu.memory_space<smem>>
    %c1_104 = arith.constant 1 : index
    %248 = arith.index_cast %241 : i32 to index
    %249 = memref.load %arg3[%c1_104, %248] : memref<2x16xf32, #tpu.memory_space<smem>>
    %250 = arith.index_cast %243 : i32 to index
    %c0_105 = arith.constant 0 : index
    %c0_106 = arith.constant 0 : index
    %251 = vector.load %arg11[%250, %c0_105, %c0_106] : memref<4x128x16xf32, #tpu.memory_space<vmem>>, vector<1x128x16xf32>
    %252 = vector.shape_cast %251 : vector<1x128x16xf32> to vector<128x16xf32>
    %253 = vector.broadcast %247 : f32 to vector<128x16xf32>
    %254 = arith.mulf %253, %252 : vector<128x16xf32>
    %255 = arith.index_cast %245 : i32 to index
    %c0_107 = arith.constant 0 : index
    %c0_108 = arith.constant 0 : index
    %256 = vector.load %arg11[%255, %c0_107, %c0_108] : memref<4x128x16xf32, #tpu.memory_space<vmem>>, vector<1x128x16xf32>
    %257 = vector.shape_cast %256 : vector<1x128x16xf32> to vector<128x16xf32>
    %258 = vector.broadcast %249 : f32 to vector<128x16xf32>
    %259 = arith.mulf %258, %257 : vector<128x16xf32>
    %260 = arith.addf %254, %259 : vector<128x16xf32>
    %261 = arith.addf %260, %5 : vector<128x16xf32>
    %cst_109 = arith.constant 0.000000e+00 : f32
    %262 = vector.broadcast %cst_109 : f32 to vector<128x16xf32>
    %263 = arith.maximumf %261, %262 : vector<128x16xf32>
    %264 = arith.truncf %263 : vector<128x16xf32> to vector<128x16xbf16>
    %c0_110 = arith.constant 0 : index
    %c144 = arith.constant 144 : index
    %265 = vector.load %arg12[%c0_110, %c144] : memref<128x256xbf16, #tpu.memory_space<vmem>>, vector<128x16xbf16>
    tpu.vector_store %arg12[%c0_110, %c144], %264 {strides = array<i32>} : memref<128x256xbf16, #tpu.memory_space<vmem>>, vector<128x16xbf16>,
    %c16_i32_111 = arith.constant 16 : i32
    %266 = arith.muli %arg1, %c16_i32_111 : i32
    %c10_i32 = arith.constant 10 : i32
    %267 = arith.addi %266, %c10_i32 : i32
    %c0_112 = arith.constant 0 : index
    %268 = arith.index_cast %267 : i32 to index
    %269 = memref.load %arg2[%c0_112, %268] : memref<2x16xi32, #tpu.memory_space<smem>>
    %c1_113 = arith.constant 1 : index
    %270 = arith.index_cast %267 : i32 to index
    %271 = memref.load %arg2[%c1_113, %270] : memref<2x16xi32, #tpu.memory_space<smem>>
    %c0_114 = arith.constant 0 : index
    %272 = arith.index_cast %267 : i32 to index
    %273 = memref.load %arg3[%c0_114, %272] : memref<2x16xf32, #tpu.memory_space<smem>>
    %c1_115 = arith.constant 1 : index
    %274 = arith.index_cast %267 : i32 to index
    %275 = memref.load %arg3[%c1_115, %274] : memref<2x16xf32, #tpu.memory_space<smem>>
    %276 = arith.index_cast %269 : i32 to index
    %c0_116 = arith.constant 0 : index
    %c0_117 = arith.constant 0 : index
    %277 = vector.load %arg11[%276, %c0_116, %c0_117] : memref<4x128x16xf32, #tpu.memory_space<vmem>>, vector<1x128x16xf32>
    %278 = vector.shape_cast %277 : vector<1x128x16xf32> to vector<128x16xf32>
    %279 = vector.broadcast %273 : f32 to vector<128x16xf32>
    %280 = arith.mulf %279, %278 : vector<128x16xf32>
    %281 = arith.index_cast %271 : i32 to index
    %c0_118 = arith.constant 0 : index
    %c0_119 = arith.constant 0 : index
    %282 = vector.load %arg11[%281, %c0_118, %c0_119] : memref<4x128x16xf32, #tpu.memory_space<vmem>>, vector<1x128x16xf32>
    %283 = vector.shape_cast %282 : vector<1x128x16xf32> to vector<128x16xf32>
    %284 = vector.broadcast %275 : f32 to vector<128x16xf32>
    %285 = arith.mulf %284, %283 : vector<128x16xf32>
    %286 = arith.addf %280, %285 : vector<128x16xf32>
    %287 = arith.addf %286, %5 : vector<128x16xf32>
    %cst_120 = arith.constant 0.000000e+00 : f32
    %288 = vector.broadcast %cst_120 : f32 to vector<128x16xf32>
    %289 = arith.maximumf %287, %288 : vector<128x16xf32>
    %290 = arith.truncf %289 : vector<128x16xf32> to vector<128x16xbf16>
    %c0_121 = arith.constant 0 : index
    %c160 = arith.constant 160 : index
    %291 = vector.load %arg12[%c0_121, %c160] : memref<128x256xbf16, #tpu.memory_space<vmem>>, vector<128x16xbf16>
    tpu.vector_store %arg12[%c0_121, %c160], %290 {strides = array<i32>} : memref<128x256xbf16, #tpu.memory_space<vmem>>, vector<128x16xbf16>,
    %c16_i32_122 = arith.constant 16 : i32
    %292 = arith.muli %arg1, %c16_i32_122 : i32
    %c11_i32 = arith.constant 11 : i32
    %293 = arith.addi %292, %c11_i32 : i32
    %c0_123 = arith.constant 0 : index
    %294 = arith.index_cast %293 : i32 to index
    %295 = memref.load %arg2[%c0_123, %294] : memref<2x16xi32, #tpu.memory_space<smem>>
    %c1_124 = arith.constant 1 : index
    %296 = arith.index_cast %293 : i32 to index
    %297 = memref.load %arg2[%c1_124, %296] : memref<2x16xi32, #tpu.memory_space<smem>>
    %c0_125 = arith.constant 0 : index
    %298 = arith.index_cast %293 : i32 to index
    %299 = memref.load %arg3[%c0_125, %298] : memref<2x16xf32, #tpu.memory_space<smem>>
    %c1_126 = arith.constant 1 : index
    %300 = arith.index_cast %293 : i32 to index
    %301 = memref.load %arg3[%c1_126, %300] : memref<2x16xf32, #tpu.memory_space<smem>>
    %302 = arith.index_cast %295 : i32 to index
    %c0_127 = arith.constant 0 : index
    %c0_128 = arith.constant 0 : index
    %303 = vector.load %arg11[%302, %c0_127, %c0_128] : memref<4x128x16xf32, #tpu.memory_space<vmem>>, vector<1x128x16xf32>
    %304 = vector.shape_cast %303 : vector<1x128x16xf32> to vector<128x16xf32>
    %305 = vector.broadcast %299 : f32 to vector<128x16xf32>
    %306 = arith.mulf %305, %304 : vector<128x16xf32>
    %307 = arith.index_cast %297 : i32 to index
    %c0_129 = arith.constant 0 : index
    %c0_130 = arith.constant 0 : index
    %308 = vector.load %arg11[%307, %c0_129, %c0_130] : memref<4x128x16xf32, #tpu.memory_space<vmem>>, vector<1x128x16xf32>
    %309 = vector.shape_cast %308 : vector<1x128x16xf32> to vector<128x16xf32>
    %310 = vector.broadcast %301 : f32 to vector<128x16xf32>
    %311 = arith.mulf %310, %309 : vector<128x16xf32>
    %312 = arith.addf %306, %311 : vector<128x16xf32>
    %313 = arith.addf %312, %5 : vector<128x16xf32>
    %cst_131 = arith.constant 0.000000e+00 : f32
    %314 = vector.broadcast %cst_131 : f32 to vector<128x16xf32>
    %315 = arith.maximumf %313, %314 : vector<128x16xf32>
    %316 = arith.truncf %315 : vector<128x16xf32> to vector<128x16xbf16>
    %c0_132 = arith.constant 0 : index
    %c176 = arith.constant 176 : index
    %317 = vector.load %arg12[%c0_132, %c176] : memref<128x256xbf16, #tpu.memory_space<vmem>>, vector<128x16xbf16>
    tpu.vector_store %arg12[%c0_132, %c176], %316 {strides = array<i32>} : memref<128x256xbf16, #tpu.memory_space<vmem>>, vector<128x16xbf16>,
    %c16_i32_133 = arith.constant 16 : i32
    %318 = arith.muli %arg1, %c16_i32_133 : i32
    %c12_i32 = arith.constant 12 : i32
    %319 = arith.addi %318, %c12_i32 : i32
    %c0_134 = arith.constant 0 : index
    %320 = arith.index_cast %319 : i32 to index
    %321 = memref.load %arg2[%c0_134, %320] : memref<2x16xi32, #tpu.memory_space<smem>>
    %c1_135 = arith.constant 1 : index
    %322 = arith.index_cast %319 : i32 to index
    %323 = memref.load %arg2[%c1_135, %322] : memref<2x16xi32, #tpu.memory_space<smem>>
    %c0_136 = arith.constant 0 : index
    %324 = arith.index_cast %319 : i32 to index
    %325 = memref.load %arg3[%c0_136, %324] : memref<2x16xf32, #tpu.memory_space<smem>>
    %c1_137 = arith.constant 1 : index
    %326 = arith.index_cast %319 : i32 to index
    %327 = memref.load %arg3[%c1_137, %326] : memref<2x16xf32, #tpu.memory_space<smem>>
    %328 = arith.index_cast %321 : i32 to index
    %c0_138 = arith.constant 0 : index
    %c0_139 = arith.constant 0 : index
    %329 = vector.load %arg11[%328, %c0_138, %c0_139] : memref<4x128x16xf32, #tpu.memory_space<vmem>>, vector<1x128x16xf32>
    %330 = vector.shape_cast %329 : vector<1x128x16xf32> to vector<128x16xf32>
    %331 = vector.broadcast %325 : f32 to vector<128x16xf32>
    %332 = arith.mulf %331, %330 : vector<128x16xf32>
    %333 = arith.index_cast %323 : i32 to index
    %c0_140 = arith.constant 0 : index
    %c0_141 = arith.constant 0 : index
    %334 = vector.load %arg11[%333, %c0_140, %c0_141] : memref<4x128x16xf32, #tpu.memory_space<vmem>>, vector<1x128x16xf32>
    %335 = vector.shape_cast %334 : vector<1x128x16xf32> to vector<128x16xf32>
    %336 = vector.broadcast %327 : f32 to vector<128x16xf32>
    %337 = arith.mulf %336, %335 : vector<128x16xf32>
    %338 = arith.addf %332, %337 : vector<128x16xf32>
    %339 = arith.addf %338, %5 : vector<128x16xf32>
    %cst_142 = arith.constant 0.000000e+00 : f32
    %340 = vector.broadcast %cst_142 : f32 to vector<128x16xf32>
    %341 = arith.maximumf %339, %340 : vector<128x16xf32>
    %342 = arith.truncf %341 : vector<128x16xf32> to vector<128x16xbf16>
    %c0_143 = arith.constant 0 : index
    %c192 = arith.constant 192 : index
    %343 = vector.load %arg12[%c0_143, %c192] : memref<128x256xbf16, #tpu.memory_space<vmem>>, vector<128x16xbf16>
    tpu.vector_store %arg12[%c0_143, %c192], %342 {strides = array<i32>} : memref<128x256xbf16, #tpu.memory_space<vmem>>, vector<128x16xbf16>,
    %c16_i32_144 = arith.constant 16 : i32
    %344 = arith.muli %arg1, %c16_i32_144 : i32
    %c13_i32 = arith.constant 13 : i32
    %345 = arith.addi %344, %c13_i32 : i32
    %c0_145 = arith.constant 0 : index
    %346 = arith.index_cast %345 : i32 to index
    %347 = memref.load %arg2[%c0_145, %346] : memref<2x16xi32, #tpu.memory_space<smem>>
    %c1_146 = arith.constant 1 : index
    %348 = arith.index_cast %345 : i32 to index
    %349 = memref.load %arg2[%c1_146, %348] : memref<2x16xi32, #tpu.memory_space<smem>>
    %c0_147 = arith.constant 0 : index
    %350 = arith.index_cast %345 : i32 to index
    %351 = memref.load %arg3[%c0_147, %350] : memref<2x16xf32, #tpu.memory_space<smem>>
    %c1_148 = arith.constant 1 : index
    %352 = arith.index_cast %345 : i32 to index
    %353 = memref.load %arg3[%c1_148, %352] : memref<2x16xf32, #tpu.memory_space<smem>>
    %354 = arith.index_cast %347 : i32 to index
    %c0_149 = arith.constant 0 : index
    %c0_150 = arith.constant 0 : index
    %355 = vector.load %arg11[%354, %c0_149, %c0_150] : memref<4x128x16xf32, #tpu.memory_space<vmem>>, vector<1x128x16xf32>
    %356 = vector.shape_cast %355 : vector<1x128x16xf32> to vector<128x16xf32>
    %357 = vector.broadcast %351 : f32 to vector<128x16xf32>
    %358 = arith.mulf %357, %356 : vector<128x16xf32>
    %359 = arith.index_cast %349 : i32 to index
    %c0_151 = arith.constant 0 : index
    %c0_152 = arith.constant 0 : index
    %360 = vector.load %arg11[%359, %c0_151, %c0_152] : memref<4x128x16xf32, #tpu.memory_space<vmem>>, vector<1x128x16xf32>
    %361 = vector.shape_cast %360 : vector<1x128x16xf32> to vector<128x16xf32>
    %362 = vector.broadcast %353 : f32 to vector<128x16xf32>
    %363 = arith.mulf %362, %361 : vector<128x16xf32>
    %364 = arith.addf %358, %363 : vector<128x16xf32>
    %365 = arith.addf %364, %5 : vector<128x16xf32>
    %cst_153 = arith.constant 0.000000e+00 : f32
    %366 = vector.broadcast %cst_153 : f32 to vector<128x16xf32>
    %367 = arith.maximumf %365, %366 : vector<128x16xf32>
    %368 = arith.truncf %367 : vector<128x16xf32> to vector<128x16xbf16>
    %c0_154 = arith.constant 0 : index
    %c208 = arith.constant 208 : index
    %369 = vector.load %arg12[%c0_154, %c208] : memref<128x256xbf16, #tpu.memory_space<vmem>>, vector<128x16xbf16>
    tpu.vector_store %arg12[%c0_154, %c208], %368 {strides = array<i32>} : memref<128x256xbf16, #tpu.memory_space<vmem>>, vector<128x16xbf16>,
    %c16_i32_155 = arith.constant 16 : i32
    %370 = arith.muli %arg1, %c16_i32_155 : i32
    %c14_i32 = arith.constant 14 : i32
    %371 = arith.addi %370, %c14_i32 : i32
    %c0_156 = arith.constant 0 : index
    %372 = arith.index_cast %371 : i32 to index
    %373 = memref.load %arg2[%c0_156, %372] : memref<2x16xi32, #tpu.memory_space<smem>>
    %c1_157 = arith.constant 1 : index
    %374 = arith.index_cast %371 : i32 to index
    %375 = memref.load %arg2[%c1_157, %374] : memref<2x16xi32, #tpu.memory_space<smem>>
    %c0_158 = arith.constant 0 : index
    %376 = arith.index_cast %371 : i32 to index
    %377 = memref.load %arg3[%c0_158, %376] : memref<2x16xf32, #tpu.memory_space<smem>>
    %c1_159 = arith.constant 1 : index
    %378 = arith.index_cast %371 : i32 to index
    %379 = memref.load %arg3[%c1_159, %378] : memref<2x16xf32, #tpu.memory_space<smem>>
    %380 = arith.index_cast %373 : i32 to index
    %c0_160 = arith.constant 0 : index
    %c0_161 = arith.constant 0 : index
    %381 = vector.load %arg11[%380, %c0_160, %c0_161] : memref<4x128x16xf32, #tpu.memory_space<vmem>>, vector<1x128x16xf32>
    %382 = vector.shape_cast %381 : vector<1x128x16xf32> to vector<128x16xf32>
    %383 = vector.broadcast %377 : f32 to vector<128x16xf32>
    %384 = arith.mulf %383, %382 : vector<128x16xf32>
    %385 = arith.index_cast %375 : i32 to index
    %c0_162 = arith.constant 0 : index
    %c0_163 = arith.constant 0 : index
    %386 = vector.load %arg11[%385, %c0_162, %c0_163] : memref<4x128x16xf32, #tpu.memory_space<vmem>>, vector<1x128x16xf32>
    %387 = vector.shape_cast %386 : vector<1x128x16xf32> to vector<128x16xf32>
    %388 = vector.broadcast %379 : f32 to vector<128x16xf32>
    %389 = arith.mulf %388, %387 : vector<128x16xf32>
    %390 = arith.addf %384, %389 : vector<128x16xf32>
    %391 = arith.addf %390, %5 : vector<128x16xf32>
    %cst_164 = arith.constant 0.000000e+00 : f32
    %392 = vector.broadcast %cst_164 : f32 to vector<128x16xf32>
    %393 = arith.maximumf %391, %392 : vector<128x16xf32>
    %394 = arith.truncf %393 : vector<128x16xf32> to vector<128x16xbf16>
    %c0_165 = arith.constant 0 : index
    %c224 = arith.constant 224 : index
    %395 = vector.load %arg12[%c0_165, %c224] : memref<128x256xbf16, #tpu.memory_space<vmem>>, vector<128x16xbf16>
    tpu.vector_store %arg12[%c0_165, %c224], %394 {strides = array<i32>} : memref<128x256xbf16, #tpu.memory_space<vmem>>, vector<128x16xbf16>,
    %c16_i32_166 = arith.constant 16 : i32
    %396 = arith.muli %arg1, %c16_i32_166 : i32
    %c15_i32 = arith.constant 15 : i32
    %397 = arith.addi %396, %c15_i32 : i32
    %c0_167 = arith.constant 0 : index
    %398 = arith.index_cast %397 : i32 to index
    %399 = memref.load %arg2[%c0_167, %398] : memref<2x16xi32, #tpu.memory_space<smem>>
    %c1_168 = arith.constant 1 : index
    %400 = arith.index_cast %397 : i32 to index
    %401 = memref.load %arg2[%c1_168, %400] : memref<2x16xi32, #tpu.memory_space<smem>>
    %c0_169 = arith.constant 0 : index
    %402 = arith.index_cast %397 : i32 to index
    %403 = memref.load %arg3[%c0_169, %402] : memref<2x16xf32, #tpu.memory_space<smem>>
    %c1_170 = arith.constant 1 : index
    %404 = arith.index_cast %397 : i32 to index
    %405 = memref.load %arg3[%c1_170, %404] : memref<2x16xf32, #tpu.memory_space<smem>>
    %406 = arith.index_cast %399 : i32 to index
    %c0_171 = arith.constant 0 : index
    %c0_172 = arith.constant 0 : index
    %407 = vector.load %arg11[%406, %c0_171, %c0_172] : memref<4x128x16xf32, #tpu.memory_space<vmem>>, vector<1x128x16xf32>
    %408 = vector.shape_cast %407 : vector<1x128x16xf32> to vector<128x16xf32>
    %409 = vector.broadcast %403 : f32 to vector<128x16xf32>
    %410 = arith.mulf %409, %408 : vector<128x16xf32>
    %411 = arith.index_cast %401 : i32 to index
    %c0_173 = arith.constant 0 : index
    %c0_174 = arith.constant 0 : index
    %412 = vector.load %arg11[%411, %c0_173, %c0_174] : memref<4x128x16xf32, #tpu.memory_space<vmem>>, vector<1x128x16xf32>
    %413 = vector.shape_cast %412 : vector<1x128x16xf32> to vector<128x16xf32>
    %414 = vector.broadcast %405 : f32 to vector<128x16xf32>
    %415 = arith.mulf %414, %413 : vector<128x16xf32>
    %416 = arith.addf %410, %415 : vector<128x16xf32>
    %417 = arith.addf %416, %5 : vector<128x16xf32>
    %cst_175 = arith.constant 0.000000e+00 : f32
    %418 = vector.broadcast %cst_175 : f32 to vector<128x16xf32>
    %419 = arith.maximumf %417, %418 : vector<128x16xf32>
    %420 = arith.truncf %419 : vector<128x16xf32> to vector<128x16xbf16>
    %c0_176 = arith.constant 0 : index
    %c240 = arith.constant 240 : index
    %421 = vector.load %arg12[%c0_176, %c240] : memref<128x256xbf16, #tpu.memory_space<vmem>>, vector<128x16xbf16>
    tpu.vector_store %arg12[%c0_176, %c240], %420 {strides = array<i32>} : memref<128x256xbf16, #tpu.memory_space<vmem>>, vector<128x16xbf16>,
    %c0_177 = arith.constant 0 : index
    %c0_178 = arith.constant 0 : index
    %422 = vector.load %arg8[%c0_177, %c0_178] : memref<8x128xbf16, #tpu.memory_space<vmem>>, vector<8x128xbf16>
    %c0_179 = arith.constant 0 : index
    %c0_180 = arith.constant 0 : index
    %423 = vector.load %arg12[%c0_179, %c0_180] : memref<128x256xbf16, #tpu.memory_space<vmem>>, vector<128x256xbf16>
    %cst_181 = arith.constant dense<0.000000e+00> : vector<8x256xf32>
    %424 = tpu.matmul %422, %423, %cst_181 {dimension_numbers = #tpu.dot_dimension_numbers<[1], [0], [0], [1], [0, 0, 1, 1], [], []>} : vector<8x128xbf16>, vector<128x256xbf16>, vector<8x256xf32> -> vector<8x256xf32>
    %c0_182 = arith.constant 0 : index
    %c0_183 = arith.constant 0 : index
    %425 = vector.load %arg9[%c0_182, %c0_183] : memref<8x1xf32, #tpu.memory_space<vmem>>, vector<8x1xf32>
    %426 = vector.broadcast %425 : vector<8x1xf32> to vector<8x256xf32>
    %427 = arith.addf %424, %426 : vector<8x256xf32>
    %c0_184 = arith.constant 0 : index
    %c0_185 = arith.constant 0 : index
    %c0_186 = arith.constant 0 : index
    %428 = vector.load %arg10[%c0_184, %c0_185, %c0_186] : memref<1x8x256xf32, #tpu.memory_space<vmem>>, vector<1x8x256xf32>
    %429 = vector.shape_cast %428 : vector<1x8x256xf32> to vector<8x256xf32>
    %430 = vector.shape_cast %427 : vector<8x256xf32> to vector<1x8x256xf32>
    tpu.vector_store %arg10[%c0_184, %c0_185, %c0_186], %430 {strides = array<i32>} : memref<1x8x256xf32, #tpu.memory_space<vmem>>, vector<1x8x256xf32>,
    return
  }
  func.func @transform_0(%arg0: i32, %arg1: i32) -> (i32, i32) {
    %c0_i32 = arith.constant 0 : i32
    %c0_i32_0 = arith.constant 0 : i32
    %c0_i32_1 = arith.constant 0 : i32
    return %c0_i32, %c0_i32_0 : i32, i32
  }
  func.func @transform_1(%arg0: i32, %arg1: i32) -> (i32, i32) {
    %c0_i32 = arith.constant 0 : i32
    %c0_i32_0 = arith.constant 0 : i32
    %c0_i32_1 = arith.constant 0 : i32
    return %c0_i32, %c0_i32_0 : i32, i32
  }
  func.func @transform_2(%arg0: i32, %arg1: i32) -> (i32, i32, i32, i32) {
    %c0_i32 = arith.constant 0 : i32
    %c0_i32_0 = arith.constant 0 : i32
    %c0_i32_1 = arith.constant 0 : i32
    %c0_i32_2 = arith.constant 0 : i32
    return %arg0, %c0_i32, %c0_i32_0, %c0_i32_1 : i32, i32, i32, i32
  }
  func.func @transform_3(%arg0: i32, %arg1: i32) -> (i32, i32) {
    %c0_i32 = arith.constant 0 : i32
    %c0_i32_0 = arith.constant 0 : i32
    %c0_i32_1 = arith.constant 0 : i32
    return %c0_i32, %c0_i32_0 : i32, i32
  }
  func.func @transform_4(%arg0: i32, %arg1: i32) -> (i32, i32) {
    %c0_i32 = arith.constant 0 : i32
    %c0_i32_0 = arith.constant 0 : i32
    %c0_i32_1 = arith.constant 0 : i32
    return %c0_i32, %c0_i32_0 : i32, i32
  }
  func.func @transform_5(%arg0: i32, %arg1: i32) -> (i32, i32) {
    %c0_i32 = arith.constant 0 : i32
    %c0_i32_0 = arith.constant 0 : i32
    %c0_i32_1 = arith.constant 0 : i32
    return %c0_i32, %c0_i32_0 : i32, i32
  }
  func.func @transform_6(%arg0: i32, %arg1: i32) -> (i32, i32) {
    %c0_i32 = arith.constant 0 : i32
    %c0_i32_0 = arith.constant 0 : i32
    %c0_i32_1 = arith.constant 0 : i32
    return %c0_i32, %c0_i32_0 : i32, i32
  }
  func.func @transform_7(%arg0: i32, %arg1: i32) -> (i32, i32) {
    %c0_i32 = arith.constant 0 : i32
    %c0_i32_0 = arith.constant 0 : i32
    %c0_i32_1 = arith.constant 0 : i32
    return %c0_i32, %c0_i32_0 : i32, i32
  }
  func.func @transform_8(%arg0: i32, %arg1: i32) -> (i32, i32, i32) {
    %c0_i32 = arith.constant 0 : i32
    %c0_i32_0 = arith.constant 0 : i32
    return %arg0, %c0_i32, %arg1 : i32, i32, i32
  }
}

</mosaic_0001>

<bundles_post_ra>
// kernel: segmentation_head_forward.1
= control target key start
LH: loop header
LB: loop body
LE: loop exit
PB: predicated region body
PF: predicated region fallthrough
CT: control target
= control target key end

     0   :  { %s8303_s0 = inlined_call_operand.vmem [shape: s32[2,16], index: 0, kind: input, shape index: {}]   ;;  %s8304_s1 = inlined_call_operand.vmem [shape: f32[2,16], index: 1, kind: input, shape index: {}]   ;;  %s8305_s2 = inlined_call_operand.vmem [shape: bf16[2,4,128,4], index: 2, kind: input, shape index: {}]   ;;  %s8306_s3 = inlined_call_operand.vmem [shape: bf16[4,16], index: 3, kind: input, shape index: {}]   ;;  %s8307_s4 = inlined_call_operand.vmem [shape: bf16[128,128], index: 4, kind: input, shape index: {}]   ;;  %s8308_s5 = inlined_call_operand.vmem [shape: f32[128,1], index: 5, kind: input, shape index: {}]   ;;  %s8309_s6 = inlined_call_operand.vmem [shape: bf16[8,128], index: 6, kind: input, shape index: {}]   ;;  %s8310_s7 = inlined_call_operand.vmem [shape: f32[8,1], index: 7, kind: input, shape index: {}]   ;;  %s8311_s8 = inlined_call_operand.vmem [shape: f32[2,8,256], index: 8, kind: output, shape index: {}]  }
   0x1   :  { %8474 = sst [smem:[#allocation71_spill]] %s8303_s0 }
   0x2   :  { %8475 = sst [smem:[#allocation72_spill]] %s8304_s1 }
   0x3   :  { %8476 = sst [smem:[#allocation73_spill]] %s8305_s2 }
   0x4   :  { %8477 = sst [smem:[#allocation74_spill]] %s8306_s3 }
   0x5   :  { %8478 = sst [smem:[#allocation75_spill]] %s8307_s4 }
   0x6   :  { %8479 = sst [smem:[#allocation76_spill]] %s8308_s5 }
   0x7   :  { %8480 = sst [smem:[#allocation77_spill]] %s8309_s6 }
   0x8   :  { %8481 = sst [smem:[#allocation78_spill]] %s8310_s7 }
   0x9   :  { %8482 = sst [smem:[#allocation79_spill]] %s8311_s8 }
   0xa   :  { %13 = vsyncpa [#allocation5], 0 }
   0xb   :  { %14 = vsyncpa [#allocation7], 0  ;;  %s5782_s27 = smov 0   ;;  %s5784_s28 = smov 0  }
   0xc   :  { %s5786_s29 = smov 0  }
   0xd LB: > { %8483 = sst [smem:[#allocation10_spill]] %s5721_s28  ;;  %s4987_s30 = sadd.s32 4294967295, %s5725_s29   ;;  %s5725_s29 = sphi %s5786_s29, %s20_s29   ;;  %s5721_s28 = sphi %s5784_s28, %s8707_s28   ;;  %s5717_s27 = sphi %s5782_s27, %s8706_s27  }
   0xe   : > { %8484 = sst [smem:[#allocation11_spill]] %s5725_s29  ;;  %s32_s9 = sadd.s32 1, %s5721_s28 }
   0xf   : > { %p34_p0 = scmp.ge.s32.totalorder %s32_s9, 2  ;;  %p4989_p1 = scmp.ge.s32.totalorder %s5725_s29, 1 }
  0x10   : > { %p238_p2 = scmp.lt.s32.totalorder %s5725_s29, 3  ;;  %p5807_p4 = scmp.eq.s32.totalorder %s4987_s30, 0 }
  0x11   : > { %s8709_s9 = smov (%p34_p0, %s32_s9), 0  ;;  %s8488_s0 = sld [smem:[#allocation71_spill]] }
  0x12   : > { %8485 = sst [smem:[#allocation12_spill]] %s8709_s9  ;;  %p5803_p3 = pnand %p4989_p1, %p238_p2 }
  0x13   : > { %s8487_s11 = scalar_select %p5807_p4, 1, 0 }
  0x14   : > { %s8486_s10 = scalar_select %p5803_p3, 1, 0 }
  0x15   : > { %p5554_p5 = pneg %p5803_p3  ;;  %s8489_s1 = sld [smem:[#allocation72_spill]] }
  0x17   : > { %s251_s14 = sshll.u32 %s8488_s0, 4  ;;  %p5821_p6 = pnand %p5807_p4, %p5554_p5  ;;  %s252_s14 = int_to_ptr.vmem [resolvable:$true] %s251_s14 }
  0x18   : > { %s5665_s19 = scalar_lea.vmem %s252_s14, 32  ;;  %p5673_p11 = scmp.lt.s32.totalorder %s252_s14, %s252_s14 }
  0x19   : > { %p5666_p7 = scmp.ne.s32.totalorder %s252_s14, %s5665_s19  ;;  %p5667_p8 = pneg %p5821_p6 }
  0x1a   : > { %p5674_p12 = scmp.lt.s32.totalorder %s5665_s19, %s5665_s19 }
  0x1b   : > { %s262_s17 = sshll.u32 %s8489_s1, 4  ;;  %p5668_p9 = pnand %p5667_p8, %p5666_p7  ;;  %s263_s17 = int_to_ptr.vmem [resolvable:$true] %s262_s17 }
  0x1c   : > { %p5675_p13 = por %p5674_p12, %p5673_p11 }
  0x1d   : > { %p5669_p10 = pneg %p5668_p9 }
  0x1f   : > { %p5676_p0 = pnand %p5675_p13, %p5669_p10 }
  0x21   : > { %5679 = shalt.err (!%p5676_p0)
}
  0x22   : > { %s5727_s20 = smov [#allocation4]   ;;  %s5680_s21 = scalar_lea.vmem %s263_s17, 32 }
  0x23   : > { %5557 = dma.vmem_to_smem (!%p5821_p6), %s252_s14, 32, %s5727_s20, [#allocation5]  }
  0x24   : > { %p5681_p1 = scmp.ne.s32.totalorder %s263_s17, %s5680_s21  ;;  %p5688_p4 = scmp.lt.s32.totalorder %s263_s17, %s263_s17 }
  0x25   : > { %p5689_p3 = scmp.lt.s32.totalorder %s5680_s21, %s5680_s21 }
  0x26   : > { %p5683_p2 = pnand %p5681_p1, %p5667_p8 }
  0x27   : > { %p5690_p7 = por %p5689_p3, %p5688_p4 }
  0x28   : > { %p5684_p5 = pneg %p5683_p2 }
  0x2a   : > { %p5691_p9 = pnand %p5690_p7, %p5684_p5 }
  0x2c   : > { %5694 = shalt.err (!%p5691_p9)
}
  0x2d   : > { %s5728_s22 = smov [#allocation6]   ;;  %p8491_p10 = scmp.ne.s32.totalorder %s8486_s10, 0 }
  0x2e   : > { %5560 = dma.vmem_to_smem (!%p5821_p6), %s263_s17, 32, %s5728_s22, [#allocation7]  }
  0x2f   : > { %298 = sbr.rel (%p8491_p10) target bundleno = 1570 (0x622), region = 52 }
  0x36   : > { %p8492_p11 = scmp.ne.s32.totalorder %s8487_s11, 0 }
  0x38   : > { %5708 = dma.done.wait (%p8492_p11), [#allocation5], 32  }
  0x39   : > { %5710 = vsyncadd (%p8492_p11), [#allocation5], 4294967264 }
  0x3a   : > { %5712 = dma.done.wait (%p8492_p11), [#allocation7], 32  }
  0x3b   : > { %5714 = vsyncadd (%p8492_p11), [#allocation7], 4294967264 }
  0x3c   : > { %308 = sfence }
  0x3d   : > { %p341_p3 = scmp.lt.s32.totalorder %s5717_s27, 1  ;;  %s8493_s4 = sld [smem:[#allocation75_spill]]  ;;  %vm620_vm0 = vcmask 1041408   ;;  %vm595_vm1 = vcmask 31744   ;;  %vm721_vm2 = vcmask 130048   ;;  %vm2279_vm3 = vcmask 261248  }
  0x3e   : > { %s8495_s2 = sld [smem:[#allocation73_spill]]  ;;  %s8496_s3 = sld [smem:[#allocation74_spill]]  ;;  %vm2458_vm4 = vcmask 392448   ;;  %vm2637_vm5 = vcmask 523648   ;;  %vm2816_vm6 = vcmask 654848   ;;  %vm2995_vm7 = vcmask 786048  }
  0x3f   : > { %s8711_s27 = smov (!%p341_p3, %s5717_s27), 1  ;;  %s8497_s5 = sld [smem:[#allocation76_spill]]  ;;  %vm3174_vm8 = vcmask 917248   ;;  %vm3353_vm9 = vcmask 1048448  }
  0x40   : > { %8494 = sst [smem:[#allocation13_spill]] %s8711_s27  ;;  %s5240_s25 = sshll.u32 %s8711_s27, 8 }
  0x41   : > { %s6136_s26 = sld [smem:[#allocation4 + $0x89]]  ;;  %s6143_s12 = sld [smem:[#allocation4 + $0xa]] }
  0x42   : > { %s6139_s30 = sld [smem:[#allocation4 + $0x1]]  ;;  %s6160_s19 = sld [smem:[#allocation4 + $0x8a]] }
  0x43   : > { %v5609_v0 = vld [vmem:[%s8493_s4] sm:$0xff]   ;;  %v5610_v9 = vld [vmem:[%s8493_s4 + $0x8] sm:$0xff]   ;;  %v5611_v10 = vld [vmem:[%s8493_s4 + $0x10] sm:$0xff]   ;;  %s6141_s11 = sld [smem:[#allocation4 + $0x81]]  ;;  %s6162_s20 = sld [smem:[#allocation6 + $0xa]] }
  0x44   : > { %5358 = vmatprep.mubr.bf16.mxu0 %v5609_v0  ;;  %s5852_s10 = scalar_lea.vmem %s8495_s2, %s5240_s25  ;;  %v5612_v11 = vld [vmem:[%s8493_s4 + $0x18] sm:$0xff]   ;;  %v5613_v12 = vld [vmem:[%s8493_s4 + $0x20] sm:$0xff]   ;;  %v5614_v13 = vld [vmem:[%s8493_s4 + $0x28] sm:$0xff]   ;;  %s6133_s25 = sld [smem:[#allocation4 + $0x9]] }
  0x45   : > { %v5601_v1 = vld [vmem:[%s5852_s10] sm:$0xff]   ;;  %v5602_v2 = vld [vmem:[%s5852_s10 + $0x8] sm:$0xff]   ;;  %v5603_v3 = vld [vmem:[%s5852_s10 + $0x10] sm:$0xff]   ;;  %s6146_s13 = sld [smem:[#allocation6 + $0x9]]  ;;  %s6164_s21 = sld [smem:[#allocation6 + $0x8a]] }
  0x46   : > { %5342 = vmatprep.subr.bf16.mxu0 %v5601_v1  ;;  %v5604_v4 = vld [vmem:[%s5852_s10 + $0x18] sm:$0xff]   ;;  %v5605_v5 = vld [vmem:[%s5852_s10 + $0x20] sm:$0xff]   ;;  %v5606_v6 = vld [vmem:[%s5852_s10 + $0x28] sm:$0xff]   ;;  %s6148_s14 = sld [smem:[#allocation6 + $0x89]]  ;;  %s6168_s24 = sld [smem:[#allocation4 + $0x2]] }
  0x47   : > { %5343 = vmatpush3.bf16.msra.mxu0 %v5601_v1  ;;  %v5607_v7 = vld [vmem:[%s5852_s10 + $0x30] sm:$0xff]   ;;  %v5608_v8 = vld [vmem:[%s5852_s10 + $0x38] sm:$0xff]   ;;  %v594_v16 = vld [vmem:[%s8496_s3] sm:$0x3]  ;;  %8499 = sst [smem:[#allocation15_spill]] %s6136_s26  ;;  %s6156_s17 = sld [smem:[#allocation6 + $0x81]] }
  0x48   : > { %5344 = vmatprep.subr.bf16.mxu0 %v5602_v2  ;;  %v5615_v14 = vld [vmem:[%s8493_s4 + $0x30] sm:$0xff]   ;;  %v5616_v15 = vld [vmem:[%s8493_s4 + $0x38] sm:$0xff]   ;;  %5542 = vmatprep.subr.msk.bf16.mxu1 %vm620_vm0, %v594_v16  ;;  %v622_v17 = vsel %vm620_vm0, %v594_v16, 0  ;;  %v5617_v18 = vld [vmem:[%s5852_s10 + $0x40] sm:$0xff]   ;;  %8500 = sst [smem:[#allocation16_spill]] %s6139_s30  ;;  %s6171_s16 = sld [smem:[#allocation4 + $0x82]] }
  0x49   : > { %5375 = vmatpush3.bf16.msra.mxu1 %v622_v17  ;;  %v5618_v25 = vld [vmem:[%s5852_s10 + $0x48] sm:$0xff]   ;;  %v5619_v28 = vld [vmem:[%s5852_s10 + $0x50] sm:$0xff]   ;;  %v5620_v33 = vld [vmem:[%s5852_s10 + $0x58] sm:$0xff]   ;;  %8501 = sst [smem:[#allocation17_spill]] %s6141_s11  ;;  %s6173_s15 = sld [smem:[#allocation6 + $0x2]] }
  0x4a   : > { %5392 = vmatprep.subr.bf16.mxu1 %v5617_v18  ;;  %v5621_v36 = vld [vmem:[%s5852_s10 + $0x60] sm:$0xff]   ;;  %v5622_v41 = vld [vmem:[%s5852_s10 + $0x68] sm:$0xff]   ;;  %v5623_v44 = vld [vmem:[%s5852_s10 + $0x70] sm:$0xff]   ;;  %8498 = sst [smem:[#allocation14_spill]] %s6133_s25  ;;  %s6176_s18 = sld [smem:[#allocation6 + $0x82]] }
  0x4b   : > { %5345 = vmatpush3.bf16.msra.mxu0 %v5602_v2  ;;  %v5625_v49 = vld [vmem:[%s8493_s4] sm:$0xff]   ;;  %v5624_v50 = vld [vmem:[%s5852_s10 + $0x78] sm:$0xff]   ;;  %v5626_v52 = vld [vmem:[%s8493_s4 + $0x8] sm:$0xff]   ;;  %8502 = sst [smem:[#allocation18_spill]] %s6143_s12  ;;  %s6178_s0 = sld [smem:[#allocation6 + $0xb]] }
  0x4c   : > { %5346 = vmatprep.subr.bf16.mxu0 %v5603_v3  ;;  %v5627_v51 = vld [vmem:[%s5852_s10 + $0x80] sm:$0xff]   ;;  %v5629_v53 = vld [vmem:[%s8493_s4 + $0x10] sm:$0xff]   ;;  %v5628_v54 = vld [vmem:[%s5852_s10 + $0x88] sm:$0xff]   ;;  %s6181_s23 = sld [smem:[#allocation6 + $0x8b]]  ;;  %s6188_s2 = sld [smem:[#allocation6 + $0xc]] }
  0x4d   : > { %v5631_v55 = vld [vmem:[%s5852_s10 + $0x90] sm:$0xff]   ;;  %v5630_v56 = vld [vmem:[%s8493_s4 + $0x18] sm:$0xff]   ;;  %v5633_v57 = vld [vmem:[%s8493_s4 + $0x20] sm:$0xff]   ;;  %s6183_s22 = sld [smem:[#allocation6 + $0x3]]  ;;  %s6196_s9 = sld [smem:[#allocation6 + $0xd]] }
  0x4e   : > { %v5632_v58 = vld [vmem:[%s5852_s10 + $0x98] sm:$0xff]   ;;  %v5635_v59 = vld [vmem:[%s5852_s10 + $0xa0] sm:$0xff]   ;;  %v5634_v60 = vld [vmem:[%s8493_s4 + $0x28] sm:$0xff]   ;;  %s6186_s1 = sld [smem:[#allocation6 + $0x83]]  ;;  %s6198_s28 = sld [smem:[#allocation6 + $0x8d]] }
  0x4f   : > { %5347 = vmatpush3.bf16.msra.mxu0 %v5603_v3  ;;  %v5637_v61 = vld [vmem:[%s8493_s4 + $0x30] sm:$0xff]   ;;  %v5636_v62 = vld [vmem:[%s5852_s10 + $0xa8] sm:$0xff]   ;;  %v5638_v0 = vld [vmem:[%s8493_s4 + $0x38] sm:$0xff]   ;;  %s6200_s29 = sld [smem:[#allocation6 + $0x5]]  ;;  %s6204_s6 = sld [smem:[#allocation6 + $0xe]] }
  0x50   : > { %5348 = vmatprep.subr.bf16.mxu0 %v5604_v4  ;;  %v5639_v63 = vld [vmem:[%s5852_s10 + $0xb0] sm:$0xff]   ;;  %v5641_v1 = vld [vmem:[%s8493_s4] sm:$0xff]   ;;  %v5640_v2 = vld [vmem:[%s5852_s10 + $0xb8] sm:$0xff]   ;;  %s6202_s8 = sld [smem:[#allocation6 + $0x85]]  ;;  %s6207_s27 = sld [smem:[#allocation6 + $0x8e]] }
  0x51   : > { %v5643_v3 = vld [vmem:[%s5852_s10 + $0xc0] sm:$0xff]   ;;  %v5654_v16 = vld [vmem:[%s8493_s4 + $0x38] sm:$0xff]   ;;  %s6209_s7 = sld [smem:[#allocation6 + $0x6]]  ;;  %s6214_s11 = sld [smem:[#allocation6 + $0xf]] }
  0x52   : > { %v5657_v17 = vld [vmem:[%s8493_s4] sm:$0xff]   ;;  %s6212_s12 = sld [smem:[#allocation6 + $0x86]]  ;;  %s6217_s30 = sld [smem:[#allocation4 + $0xb]] }
  0x53   : > { %5349 = vmatpush3.bf16.msra.mxu0 %v5604_v4  ;;  %v5642_v4 = vld [vmem:[%s8493_s4 + $0x8] sm:$0xff]   ;;  %s6219_s26 = sld [smem:[#allocation6 + $0x8f]]  ;;  %s6225_s25 = sld [smem:[#allocation4 + $0x8b]] }
  0x54   : > { %5350 = vmatprep.subr.bf16.mxu0 %v5605_v5 }
  0x57   : > { %5351 = vmatpush3.bf16.msra.mxu0 %v5605_v5  ;;  %v5645_v5 = vld [vmem:[%s8493_s4 + $0x10] sm:$0xff]   ;;  %8503 = sst [smem:[#allocation19_spill]] %s6214_s11  ;;  %s6227_s11 = sld [smem:[#allocation6 + $0x7]] }
  0x58   : > { %5352 = vmatprep.subr.bf16.mxu0 %v5606_v6 }
  0x59   : > { %8504 = sst [smem:[#allocation20_spill]] %s6219_s26  ;;  %s6241_s26 = sld [smem:[#allocation4 + $0x3]] }
  0x5a   : > { %8506 = sst [smem:[#allocation22_spill]] %s6225_s25  ;;  %s5207_s25 = sshll.u32 %s6160_s19, 7 }
  0x5b   : > { %5353 = vmatpush3.bf16.msra.mxu0 %v5606_v6  ;;  %v5644_v6 = vld [vmem:[%s5852_s10 + $0xc8] sm:$0xff]  }
  0x5c   : > { %5354 = vmatprep.subr.bf16.mxu0 %v5607_v7 }
  0x5f   : > { %5355 = vmatpush3.bf16.msra.mxu0 %v5607_v7  ;;  %v5647_v7 = vld [vmem:[%s5852_s10 + $0xd0] sm:$0xff]  }
  0x60   : > { %5356 = vmatprep.subr.bf16.mxu0 %v5608_v8 }
  0x63   : > { %5357 = vmatpush3.bf16.msra.mxu0 %v5608_v8  ;;  %v5646_v8 = vld [vmem:[%s8493_s4 + $0x18] sm:$0xff]  }
  0x66   : > { %5359 = vmatmul.mubr.bf16.vlgmr.msra.gmra.mrb[0].mxu0 %v5610_v9  ;;  %v5649_v9 = vld [vmem:[%s8493_s4 + $0x20] sm:$0xff]  }
  0x67   : > { %5362 = vmatprep.mubr.bf16.mxu0 %v5611_v10  ;;  %v5648_v10 = vld [vmem:[%s5852_s10 + $0xd8] sm:$0xff]  }
  0x6e   : > { %5363 = vmatmul.mubr.bf16.gmra.mrb[4].mxu0 %v5612_v11  ;;  %v5651_v11 = vld [vmem:[%s5852_s10 + $0xe0] sm:$0xff]  }
  0x6f   : > { %5366 = vmatprep.mubr.bf16.mxu0 %v5613_v12  ;;  %v5650_v12 = vld [vmem:[%s8493_s4 + $0x28] sm:$0xff]  }
  0x76   : > { %5367 = vmatmul.mubr.bf16.gmra.mrb[8].mxu0 %v5614_v13  ;;  %v5653_v13 = vld [vmem:[%s8493_s4 + $0x30] sm:$0xff]  }
  0x77   : > { %5370 = vmatprep.mubr.bf16.mxu0 %v5615_v14  ;;  %v5652_v14 = vld [vmem:[%s5852_s10 + $0xe8] sm:$0xff]  }
  0x7e   : > { %5371 = vmatmul.mubr.bf16.gmra.mrb[12].mxu0 %v5616_v15  ;;  %v5655_v15 = vld [vmem:[%s5852_s10 + $0xf0] sm:$0xff]  }
 0x139   : > { %v5360_v19 = vpop.f32.mrb[0].mxu0 }
 0x13a   : > { %v523_v20 = vpop.f32.mrb[1].mxu0 }
 0x13b   : > { %v5361_v21 = vpop.f32.mrb[2].mxu0 }
 0x13c   : > { %v587_v22 = vpack.c.bf16 %v5361_v21, %v5360_v19  ;;  %v526_v23 = vpop.f32.mrb[3].mxu0  ;;  %v972_v19 = vld [vmem:[%s8496_s3] sm:$0x3] }
 0x13d   : > { %v586_v24 = vpack.c.bf16 %v526_v23, %v523_v20  ;;  %5543 = vmatprep.subr.msk.bf16.mxu0 %vm620_vm0, %v972_v19  ;;  %v5658_v20 = vld [vmem:[%s8493_s4 + $0x8] sm:$0xff]   ;;  %v998_v21 = vsel %vm620_vm0, %v972_v19, 0  ;;  %v5660_v23 = vld [vmem:[%s8493_s4 + $0x18] sm:$0xff]  }
 0x13e   : > { %5425 = vmatpush3.bf16.msra.mxu0 %v998_v21 }
 0x13f   : > { %5376 = vmatprep.mubr.msk.bf16.mxu1 %vm595_vm1, %v586_v24  ;;  %v5661_v24 = vld [vmem:[%s8493_s4 + $0x20] sm:$0xff]  }
 0x140   : > { %5377 = vmatmul.mubr.msk.bf16.vlgmr.msra.gmra.mrb[0].mxu1 %vm595_vm1, %v587_v22  ;;  %v5659_v22 = vld [vmem:[%s8493_s4 + $0x10] sm:$0xff]  }
 0x141   : > { %v5364_v26 = vpop.f32.mrb[4].mxu0  ;;  %5393 = vmatpush3.bf16.msra.mxu1 %v5617_v18  ;;  %v5656_v18 = vld [vmem:[%s5852_s10 + $0xf8] sm:$0xff]   ;;  %s6152_s10 = sld [smem:[#allocation6 + $0x1]] }
 0x142   : > { %v539_v27 = vpop.f32.mrb[5].mxu0  ;;  %5394 = vmatprep.subr.bf16.mxu1 %v5618_v25 }
 0x143   : > { %v5365_v29 = vpop.f32.mrb[6].mxu0 }
 0x144   : > { %v589_v30 = vpack.c.bf16 %v5365_v29, %v5364_v26  ;;  %v542_v31 = vpop.f32.mrb[7].mxu0  ;;  %v5663_v26 = vld [vmem:[%s8493_s4 + $0x30] sm:$0xff]   ;;  %v1866_v29 = vld [vmem:[%s8497_s5] sm:$0xff] }
 0x145   : > { %v588_v32 = vpack.c.bf16 %v542_v31, %v539_v27  ;;  %5395 = vmatpush3.bf16.msra.mxu1 %v5618_v25  ;;  %v5662_v25 = vld [vmem:[%s8493_s4 + $0x28] sm:$0xff]   ;;  %v5664_v27 = vld [vmem:[%s8493_s4 + $0x38] sm:$0xff]   ;;  %s6192_s4 = sld [smem:[#allocation6 + $0x4]] }
 0x146   : > { %5396 = vmatprep.subr.bf16.mxu1 %v5619_v28 }
 0x147   : > { %5380 = vmatprep.mubr.msk.bf16.mxu1 %vm595_vm1, %v588_v32  ;;  %v5729_v32 = vmov 0  }
 0x148   : > { %5381 = vmatmul.mubr.msk.bf16.gmra.mrb[4].mxu1 %vm595_vm1, %v589_v30  ;;  %v1868_v30 = vld [vmem:[%s8497_s5 + $0x10] sm:$0xff]  ;;  %5599 = vset.pattern.permute.xlu0 %v5729_v32 }
 0x149   : > { %v5368_v34 = vpop.f32.mrb[8].mxu0  ;;  %5397 = vmatpush3.bf16.msra.mxu1 %v5619_v28  ;;  %v6000_v28 = vld [vmem:[%s8496_s3] sm:$0x3]  ;;  %5600 = vset.pattern.permute.xlu1 %v5729_v32 }
 0x14a   : > { %v555_v35 = vpop.f32.mrb[9].mxu0  ;;  %5398 = vmatprep.subr.bf16.mxu1 %v5620_v33  ;;  %5544 = vmatprep.subr.msk.bf16.mxu0 %vm620_vm0, %v6000_v28 }
 0x14b   : > { %v5369_v37 = vpop.f32.mrb[10].mxu0  ;;  %1884 = vperm.xlu0 %5599, %v1866_v29   ;;  %1894 = vperm.xlu1 %5600, %v1868_v30  }
 0x14c   : > { %v591_v38 = vpack.c.bf16 %v5369_v37, %v5368_v34  ;;  %v558_v39 = vpop.f32.mrb[11].mxu0 }
 0x14d   : > { %v590_v40 = vpack.c.bf16 %v558_v39, %v555_v35  ;;  %5399 = vmatpush3.bf16.msra.mxu1 %v5620_v33  ;;  %v1867_v35 = vld [vmem:[%s8497_s5 + $0x8] sm:$0xff] }
 0x14e   : > { %5400 = vmatprep.subr.bf16.mxu1 %v5621_v36  ;;  %v1871_v39 = vld [vmem:[%s8497_s5 + $0x28] sm:$0xff] }
 0x14f   : > { %5384 = vmatprep.mubr.msk.bf16.mxu1 %vm595_vm1, %v590_v40  ;;  %1889 = vperm.xlu0 %5599, %v1867_v35  }
 0x150   : > { %5385 = vmatmul.mubr.msk.bf16.gmra.mrb[8].mxu1 %vm595_vm1, %v591_v38  ;;  %v1870_v38 = vld [vmem:[%s8497_s5 + $0x20] sm:$0xff] }
 0x151   : > { %v5372_v42 = vpop.f32.mrb[12].mxu0  ;;  %5401 = vmatpush3.bf16.msra.mxu1 %v5621_v36  ;;  %v1869_v36 = vld [vmem:[%s8497_s5 + $0x18] sm:$0xff] }
 0x152   : > { %v571_v43 = vpop.f32.mrb[13].mxu0  ;;  %5402 = vmatprep.subr.bf16.mxu1 %v5622_v41  ;;  %1899 = vperm.xlu1 %5600, %v1869_v36  }
 0x153   : > { %v5373_v45 = vpop.f32.mrb[14].mxu0  ;;  %1904 = vperm.xlu0 %5599, %v1870_v38  }
 0x154   : > { %v593_v46 = vpack.c.bf16 %v5373_v45, %v5372_v42  ;;  %v574_v47 = vpop.f32.mrb[15].mxu0 }
 0x155   : > { %v592_v48 = vpack.c.bf16 %v574_v47, %v571_v43  ;;  %5403 = vmatpush3.bf16.msra.mxu1 %v5622_v41  ;;  %v1872_v43 = vld [vmem:[%s8497_s5 + $0x30] sm:$0xff]  ;;  %v1875_v47 = vld [vmem:[%s8497_s5 + $0x48] sm:$0xff] }
 0x156   : > { %5404 = vmatprep.subr.bf16.mxu1 %v5623_v44  ;;  %1909 = vperm.xlu1 %5600, %v1871_v39  }
 0x157   : > { %5388 = vmatprep.mubr.msk.bf16.mxu1 %vm595_vm1, %v592_v48  ;;  %1914 = vperm.xlu0 %5599, %v1872_v43  }
 0x158   : > { %5389 = vmatmul.mubr.msk.bf16.gmra.mrb[12].mxu1 %vm595_vm1, %v593_v46  ;;  %v1874_v46 = vld [vmem:[%s8497_s5 + $0x40] sm:$0xff] }
 0x159   : > { %5405 = vmatpush3.bf16.msra.mxu1 %v5623_v44  ;;  %5408 = vmatprep.mubr.bf16.mxu1 %v5625_v49  ;;  %v1873_v44 = vld [vmem:[%s8497_s5 + $0x38] sm:$0xff] }
 0x15a   : > { %5406 = vmatprep.subr.bf16.mxu1 %v5624_v50  ;;  %1919 = vperm.xlu1 %5600, %v1873_v44  }
 0x15b   : > { %1924 = vperm.xlu0 %5599, %v1874_v46  }
 0x15d   : > { %5407 = vmatpush3.bf16.msra.mxu1 %v5624_v50 }
 0x15e   : > { %5442 = vmatprep.subr.bf16.mxu1 %v5627_v51  ;;  %1929 = vperm.xlu1 %5600, %v1875_v47  }
 0x160   : > { %5409 = vmatmul.mubr.bf16.vlgmr.msra.gmra.mrb[16].mxu1 %v5626_v52  ;;  %v1877_v52 = vld [vmem:[%s8497_s5 + $0x58] sm:$0xff] }
 0x161   : > { %5443 = vmatpush3.bf16.msra.mxu1 %v5627_v51  ;;  %5412 = vmatprep.mubr.bf16.mxu1 %v5629_v53  ;;  %v1876_v51 = vld [vmem:[%s8497_s5 + $0x50] sm:$0xff] }
 0x162   : > { %5444 = vmatprep.subr.bf16.mxu1 %v5628_v54  ;;  %1934 = vperm.xlu0 %5599, %v1876_v51  }
 0x163   : > { %1939 = vperm.xlu1 %5600, %v1877_v52  }
 0x165   : > { %5445 = vmatpush3.bf16.msra.mxu1 %v5628_v54  ;;  %v1878_v54 = vld [vmem:[%s8497_s5 + $0x60] sm:$0xff] }
 0x166   : > { %5446 = vmatprep.subr.bf16.mxu1 %v5631_v55  ;;  %1944 = vperm.xlu0 %5599, %v1878_v54  }
 0x168   : > { %5413 = vmatmul.mubr.bf16.gmra.mrb[20].mxu1 %v5630_v56 }
 0x169   : > { %5447 = vmatpush3.bf16.msra.mxu1 %v5631_v55  ;;  %5416 = vmatprep.mubr.bf16.mxu1 %v5633_v57  ;;  %v1879_v55 = vld [vmem:[%s8497_s5 + $0x68] sm:$0xff] }
 0x16a   : > { %5448 = vmatprep.subr.bf16.mxu1 %v5632_v58  ;;  %1949 = vperm.xlu1 %5600, %v1879_v55  }
 0x16d   : > { %5449 = vmatpush3.bf16.msra.mxu1 %v5632_v58 }
 0x16e   : > { %5450 = vmatprep.subr.bf16.mxu1 %v5635_v59 }
 0x170   : > { %5417 = vmatmul.mubr.bf16.gmra.mrb[24].mxu1 %v5634_v60  ;;  %v1881_v60 = vld [vmem:[%s8497_s5 + $0x78] sm:$0xff] }
 0x171   : > { %5451 = vmatpush3.bf16.msra.mxu1 %v5635_v59  ;;  %5420 = vmatprep.mubr.bf16.mxu1 %v5637_v61  ;;  %v1880_v59 = vld [vmem:[%s8497_s5 + $0x70] sm:$0xff]  ;;  %s6194_s5 = sld [smem:[#allocation6 + $0x84]] }
 0x172   : > { %5452 = vmatprep.subr.bf16.mxu1 %v5636_v62  ;;  %1954 = vperm.xlu0 %5599, %v1880_v59  }
 0x173   : > { %1959 = vperm.xlu1 %5600, %v1881_v60  }
 0x175   : > { %5453 = vmatpush3.bf16.msra.mxu1 %v5636_v62 }
 0x176   : > { %5454 = vmatprep.subr.bf16.mxu1 %v5639_v63 }
 0x178   : > { %5421 = vmatmul.mubr.bf16.gmra.mrb[28].mxu1 %v5638_v0 }
 0x179   : > { %5455 = vmatpush3.bf16.msra.mxu1 %v5639_v63  ;;  %5458 = vmatprep.mubr.bf16.mxu1 %v5641_v1 }
 0x17a   : > { %5456 = vmatprep.subr.bf16.mxu1 %v5640_v2 }
 0x17d   : > { %5457 = vmatpush3.bf16.msra.mxu1 %v5640_v2 }
 0x17e   : > { %5492 = vmatprep.subr.bf16.mxu1 %v5643_v3 }
 0x180   : > { %5459 = vmatmul.mubr.bf16.vlgmr.msra.gmra.mrb[32].mxu1 %v5642_v4  ;;  %v1374_v4 = vsel %vm620_vm0, %v6000_v28, 0 }
 0x181   : > { %5493 = vmatpush3.bf16.msra.mxu1 %v5643_v3  ;;  %5462 = vmatprep.mubr.bf16.mxu1 %v5645_v5  ;;  %v1724_v5 = vld [vmem:[%s8496_s3] sm:$0x3]  ;;  %s6190_s3 = sld [smem:[#allocation6 + $0x8c]] }
 0x182   : > { %5494 = vmatprep.subr.bf16.mxu1 %v5644_v6  ;;  %v1750_v30 = vsel %vm620_vm0, %v1724_v5, 0 }
 0x185   : > { %5495 = vmatpush3.bf16.msra.mxu1 %v5644_v6 }
 0x186   : > { %5496 = vmatprep.subr.bf16.mxu1 %v5647_v7 }
 0x188   : > { %5463 = vmatmul.mubr.bf16.gmra.mrb[36].mxu1 %v5646_v8 }
 0x189   : > { %5497 = vmatpush3.bf16.msra.mxu1 %v5647_v7  ;;  %5466 = vmatprep.mubr.bf16.mxu1 %v5649_v9 }
 0x18a   : > { %5498 = vmatprep.subr.bf16.mxu1 %v5648_v10 }
 0x18d   : > { %5499 = vmatpush3.bf16.msra.mxu1 %v5648_v10 }
 0x18e   : > { %5500 = vmatprep.subr.bf16.mxu1 %v5651_v11 }
 0x190   : > { %5467 = vmatmul.mubr.bf16.gmra.mrb[40].mxu1 %v5650_v12 }
 0x191   : > { %5501 = vmatpush3.bf16.msra.mxu1 %v5651_v11  ;;  %5470 = vmatprep.mubr.bf16.mxu1 %v5653_v13 }
 0x192   : > { %5502 = vmatprep.subr.bf16.mxu1 %v5652_v14 }
 0x195   : > { %5503 = vmatpush3.bf16.msra.mxu1 %v5652_v14 }
 0x196   : > { %5504 = vmatprep.subr.bf16.mxu1 %v5655_v15 }
 0x198   : > { %5471 = vmatmul.mubr.bf16.gmra.mrb[44].mxu1 %v5654_v16 }
 0x199   : > { %5505 = vmatpush3.bf16.msra.mxu1 %v5655_v15  ;;  %5508 = vmatprep.mubr.bf16.mxu1 %v5657_v17 }
 0x19a   : > { %5506 = vmatprep.subr.bf16.mxu1 %v5656_v18 }
 0x19d   : > { %5507 = vmatpush3.bf16.msra.mxu1 %v5656_v18 }
 0x1a0   : > { %5509 = vmatmul.mubr.bf16.vlgmr.msra.gmra.mrb[48].mxu1 %v5658_v20 }
 0x1a1   : > { %5512 = vmatprep.mubr.bf16.mxu1 %v5659_v22 }
 0x1a8   : > { %5513 = vmatmul.mubr.bf16.gmra.mrb[52].mxu1 %v5660_v23 }
 0x1a9   : > { %5516 = vmatprep.mubr.bf16.mxu1 %v5661_v24 }
 0x1b0   : > { %5517 = vmatmul.mubr.bf16.gmra.mrb[56].mxu1 %v5662_v25 }
 0x1b1   : > { %5520 = vmatprep.mubr.bf16.mxu1 %v5663_v26 }
 0x1b8   : > { %5521 = vmatmul.mubr.bf16.gmra.mrb[60].mxu1 %v5664_v27 }
 0x1b9   : > { %4809 = vmatprep.mubr.bf16.mxu1 %v5729_v32 }
 0x213   : > { %v5378_v31 = vpop.f32.mrb[0].mxu1 }
 0x214   : > { %724 = vst.msk [vmem:[#allocation2 + $0x10] sm:$0xff] %vm721_vm2, %v5378_v31  ;;  %v658_v33 = vpop.f32.mrb[1].mxu1 }
 0x215   : > { %722 = vst.msk [vmem:[#allocation2] sm:$0xff] %vm721_vm2, %v658_v33  ;;  %v5379_v34 = vpop.f32.mrb[2].mxu1 }
 0x216   : > { %725 = vst.msk [vmem:[#allocation2 + $0x18] sm:$0xff] %vm721_vm2, %v5379_v34  ;;  %v661_v37 = vpop.f32.mrb[3].mxu1 }
 0x217   : > { %723 = vst.msk [vmem:[#allocation2 + $0x8] sm:$0xff] %vm721_vm2, %v661_v37 }
 0x21b   : > { %v5382_v40 = vpop.f32.mrb[4].mxu1 }
 0x21c   : > { %728 = vst.msk [vmem:[#allocation2 + $0x30] sm:$0xff] %vm721_vm2, %v5382_v40  ;;  %v674_v41 = vpop.f32.mrb[5].mxu1 }
 0x21d   : > { %726 = vst.msk [vmem:[#allocation2 + $0x20] sm:$0xff] %vm721_vm2, %v674_v41  ;;  %v5383_v42 = vpop.f32.mrb[6].mxu1 }
 0x21e   : > { %729 = vst.msk [vmem:[#allocation2 + $0x38] sm:$0xff] %vm721_vm2, %v5383_v42  ;;  %v677_v45 = vpop.f32.mrb[7].mxu1 }
 0x21f   : > { %727 = vst.msk [vmem:[#allocation2 + $0x28] sm:$0xff] %vm721_vm2, %v677_v45 }
 0x223   : > { %v5386_v48 = vpop.f32.mrb[8].mxu1 }
 0x224   : > { %732 = vst.msk [vmem:[#allocation2 + $0x50] sm:$0xff] %vm721_vm2, %v5386_v48  ;;  %v690_v49 = vpop.f32.mrb[9].mxu1 }
 0x225   : > { %730 = vst.msk [vmem:[#allocation2 + $0x40] sm:$0xff] %vm721_vm2, %v690_v49  ;;  %v5387_v50 = vpop.f32.mrb[10].mxu1 }
 0x226   : > { %733 = vst.msk [vmem:[#allocation2 + $0x58] sm:$0xff] %vm721_vm2, %v5387_v50  ;;  %v693_v53 = vpop.f32.mrb[11].mxu1 }
 0x227   : > { %731 = vst.msk [vmem:[#allocation2 + $0x48] sm:$0xff] %vm721_vm2, %v693_v53 }
 0x22b   : > { %v5390_v56 = vpop.f32.mrb[12].mxu1 }
 0x22c   : > { %736 = vst.msk [vmem:[#allocation2 + $0x70] sm:$0xff] %vm721_vm2, %v5390_v56  ;;  %v706_v57 = vpop.f32.mrb[13].mxu1 }
 0x22d   : > { %734 = vst.msk [vmem:[#allocation2 + $0x60] sm:$0xff] %vm721_vm2, %v706_v57  ;;  %v5391_v58 = vpop.f32.mrb[14].mxu1 }
 0x22e   : > { %737 = vst.msk [vmem:[#allocation2 + $0x78] sm:$0xff] %vm721_vm2, %v5391_v58  ;;  %v709_v61 = vpop.f32.mrb[15].mxu1 }
 0x22f   : > { %735 = vst.msk [vmem:[#allocation2 + $0x68] sm:$0xff] %vm721_vm2, %v709_v61 }
 0x233   : > { %v5410_v62 = vpop.f32.mrb[16].mxu1 }
 0x234   : > { %v901_v63 = vpop.f32.mrb[17].mxu1 }
 0x235   : > { %v5411_v0 = vpop.f32.mrb[18].mxu1 }
 0x236   : > { %v965_v1 = vpack.c.bf16 %v5411_v0, %v5410_v62  ;;  %v904_v2 = vpop.f32.mrb[19].mxu1 }
 0x237   : > { %v964_v3 = vpack.c.bf16 %v904_v2, %v901_v63 }
 0x239   : > { %5426 = vmatprep.mubr.msk.bf16.mxu0 %vm595_vm1, %v964_v3 }
 0x23a   : > { %5427 = vmatmul.mubr.msk.bf16.vlgmr.msra.gmra.mrb[16].mxu0 %vm595_vm1, %v965_v1 }
 0x23b   : > { %v5414_v6 = vpop.f32.mrb[20].mxu1  ;;  %5475 = vmatpush3.bf16.msra.mxu0 %v1374_v4 }
 0x23c   : > { %v917_v7 = vpop.f32.mrb[21].mxu1  ;;  %5545 = vmatprep.subr.msk.bf16.mxu0 %vm620_vm0, %v1724_v5 }
 0x23d   : > { %v5415_v8 = vpop.f32.mrb[22].mxu1 }
 0x23e   : > { %v967_v9 = vpack.c.bf16 %v5415_v8, %v5414_v6  ;;  %v920_v10 = vpop.f32.mrb[23].mxu1 }
 0x23f   : > { %v966_v11 = vpack.c.bf16 %v920_v10, %v917_v7 }
 0x241   : > { %5430 = vmatprep.mubr.msk.bf16.mxu0 %vm595_vm1, %v966_v11 }
 0x242   : > { %5431 = vmatmul.mubr.msk.bf16.gmra.mrb[20].mxu0 %vm595_vm1, %v967_v9 }
 0x243   : > { %v5418_v12 = vpop.f32.mrb[24].mxu1 }
 0x244   : > { %v933_v13 = vpop.f32.mrb[25].mxu1 }
 0x245   : > { %v5419_v14 = vpop.f32.mrb[26].mxu1 }
 0x246   : > { %v969_v15 = vpack.c.bf16 %v5419_v14, %v5418_v12  ;;  %v936_v16 = vpop.f32.mrb[27].mxu1 }
 0x247   : > { %v968_v17 = vpack.c.bf16 %v936_v16, %v933_v13 }
 0x249   : > { %5434 = vmatprep.mubr.msk.bf16.mxu0 %vm595_vm1, %v968_v17 }
 0x24a   : > { %5435 = vmatmul.mubr.msk.bf16.gmra.mrb[24].mxu0 %vm595_vm1, %v969_v15 }
 0x24b   : > { %v5422_v18 = vpop.f32.mrb[28].mxu1 }
 0x24c   : > { %v949_v19 = vpop.f32.mrb[29].mxu1 }
 0x24d   : > { %v5423_v20 = vpop.f32.mrb[30].mxu1 }
 0x24e   : > { %v971_v21 = vpack.c.bf16 %v5423_v20, %v5422_v18  ;;  %v952_v22 = vpop.f32.mrb[31].mxu1 }
 0x24f   : > { %v970_v23 = vpack.c.bf16 %v952_v22, %v949_v19 }
 0x251   : > { %5438 = vmatprep.mubr.msk.bf16.mxu0 %vm595_vm1, %v970_v23 }
 0x252   : > { %5439 = vmatmul.mubr.msk.bf16.gmra.mrb[28].mxu0 %vm595_vm1, %v971_v21 }
 0x253   : > { %v5460_v24 = vpop.f32.mrb[32].mxu1 }
 0x254   : > { %v1277_v25 = vpop.f32.mrb[33].mxu1 }
 0x255   : > { %v5461_v26 = vpop.f32.mrb[34].mxu1 }
 0x256   : > { %v1341_v27 = vpack.c.bf16 %v5461_v26, %v5460_v24  ;;  %v1280_v28 = vpop.f32.mrb[35].mxu1 }
 0x257   : > { %v1340_v29 = vpack.c.bf16 %v1280_v28, %v1277_v25 }
 0x259   : > { %5476 = vmatprep.mubr.msk.bf16.mxu0 %vm595_vm1, %v1340_v29 }
 0x25a   : > { %5477 = vmatmul.mubr.msk.bf16.vlgmr.msra.gmra.mrb[32].mxu0 %vm595_vm1, %v1341_v27 }
 0x25b   : > { %v5464_v31 = vpop.f32.mrb[36].mxu1  ;;  %5525 = vmatpush3.bf16.msra.mxu0 %v1750_v30 }
 0x25c   : > { %v1293_v32 = vpop.f32.mrb[37].mxu1 }
 0x25d   : > { %v5465_v33 = vpop.f32.mrb[38].mxu1 }
 0x25e   : > { %v1343_v34 = vpack.c.bf16 %v5465_v33, %v5464_v31  ;;  %v1296_v35 = vpop.f32.mrb[39].mxu1 }
 0x25f   : > { %v1342_v36 = vpack.c.bf16 %v1296_v35, %v1293_v32 }
 0x261   : > { %5480 = vmatprep.mubr.msk.bf16.mxu0 %vm595_vm1, %v1342_v36 }
 0x262   : > { %5481 = vmatmul.mubr.msk.bf16.gmra.mrb[36].mxu0 %vm595_vm1, %v1343_v34 }
 0x263   : > { %v5468_v37 = vpop.f32.mrb[40].mxu1 }
 0x264   : > { %v1309_v38 = vpop.f32.mrb[41].mxu1 }
 0x265   : > { %v5469_v39 = vpop.f32.mrb[42].mxu1 }
 0x266   : > { %v1345_v40 = vpack.c.bf16 %v5469_v39, %v5468_v37  ;;  %v1312_v41 = vpop.f32.mrb[43].mxu1 }
 0x267   : > { %v1344_v42 = vpack.c.bf16 %v1312_v41, %v1309_v38 }
 0x269   : > { %5484 = vmatprep.mubr.msk.bf16.mxu0 %vm595_vm1, %v1344_v42 }
 0x26a   : > { %5485 = vmatmul.mubr.msk.bf16.gmra.mrb[40].mxu0 %vm595_vm1, %v1345_v40 }
 0x26b   : > { %v5472_v43 = vpop.f32.mrb[44].mxu1 }
 0x26c   : > { %v1325_v44 = vpop.f32.mrb[45].mxu1 }
 0x26d   : > { %v5473_v45 = vpop.f32.mrb[46].mxu1 }
 0x26e   : > { %v1347_v46 = vpack.c.bf16 %v5473_v45, %v5472_v43  ;;  %v1328_v47 = vpop.f32.mrb[47].mxu1 }
 0x26f   : > { %v1346_v48 = vpack.c.bf16 %v1328_v47, %v1325_v44 }
 0x271   : > { %5488 = vmatprep.mubr.msk.bf16.mxu0 %vm595_vm1, %v1346_v48 }
 0x272   : > { %5489 = vmatmul.mubr.msk.bf16.gmra.mrb[44].mxu0 %vm595_vm1, %v1347_v46 }
 0x273   : > { %v5510_v49 = vpop.f32.mrb[48].mxu1 }
 0x274   : > { %v1653_v50 = vpop.f32.mrb[49].mxu1 }
 0x275   : > { %v5511_v51 = vpop.f32.mrb[50].mxu1 }
 0x276   : > { %v1717_v52 = vpack.c.bf16 %v5511_v51, %v5510_v49  ;;  %v1656_v53 = vpop.f32.mrb[51].mxu1 }
 0x277   : > { %v1716_v54 = vpack.c.bf16 %v1656_v53, %v1653_v50 }
 0x279   : > { %5526 = vmatprep.mubr.msk.bf16.mxu0 %vm595_vm1, %v1716_v54 }
 0x27a   : > { %5527 = vmatmul.mubr.msk.bf16.vlgmr.msra.gmra.mrb[48].mxu0 %vm595_vm1, %v1717_v52 }
 0x27b   : > { %v5514_v55 = vpop.f32.mrb[52].mxu1 }
 0x27c   : > { %v1669_v56 = vpop.f32.mrb[53].mxu1 }
 0x27d   : > { %v5515_v57 = vpop.f32.mrb[54].mxu1 }
 0x27e   : > { %v1719_v58 = vpack.c.bf16 %v5515_v57, %v5514_v55  ;;  %v1672_v59 = vpop.f32.mrb[55].mxu1  ;;  %v6223_v57 = vstv %s6146_s13  ;;  %s6243_s13 = sld [smem:[#allocation6 + $0x87]] }
 0x27f   : > { %v1718_v60 = vpack.c.bf16 %v1672_v59, %v1669_v56  ;;  %8505 = vst [vmem:[#allocation21_spill] sm:$0xff] %v6223_v57  ;;  %v6233_v59 = vstv %s6152_s10  ;;  %s6262_s10 = sld [smem:[#allocation4 + $0x83]] }
 0x280   : > { %8508 = vst [vmem:[#allocation24_spill] sm:$0xff] %v6233_v59 }
 0x281   : > { %5530 = vmatprep.mubr.msk.bf16.mxu0 %vm595_vm1, %v1718_v60  ;;  %v6236_v60 = vstv %s6156_s17  ;;  %s6273_s17 = sld [smem:[#allocation4 + $0xc]] }
 0x282   : > { %5531 = vmatmul.mubr.msk.bf16.gmra.mrb[52].mxu0 %vm595_vm1, %v1719_v58  ;;  %v6230_v58 = vstv %s6148_s14  ;;  %8509 = vst [vmem:[#allocation25_spill] sm:$0xff] %v6236_v60  ;;  %s5158_s14 = sshll.u32 %s6168_s24, 7 }
 0x283   : > { %v5518_v61 = vpop.f32.mrb[56].mxu1  ;;  %8507 = vst [vmem:[#allocation23_spill] sm:$0xff] %v6230_v58 }
 0x284   : > { %v1685_v62 = vpop.f32.mrb[57].mxu1 }
 0x285   : > { %v5519_v63 = vpop.f32.mrb[58].mxu1  ;;  %s5165_s19 = sshll.u32 %s6262_s10, 7  ;;  %s6446_s10 = sld [smem:[#allocation4 + $0x5]] }
 0x286   : > { %v1721_v0 = vpack.c.bf16 %v5519_v63, %v5518_v61  ;;  %v1688_v1 = vpop.f32.mrb[59].mxu1  ;;  %v6239_v61 = vstv %s6162_s20  ;;  %v6250_v63 = vstv %s6173_s15  ;;  %s8514_s15 = sld [smem:[#allocation19_spill]]  ;;  %s5159_s20 = sshll.u32 %s6171_s16, 7 }
 0x287   : > { %v1720_v2 = vpack.c.bf16 %v1688_v1, %v1685_v62  ;;  %8510 = vst [vmem:[#allocation26_spill] sm:$0xff] %v6239_v61  ;;  %v6247_v62 = vstv %s6164_s21  ;;  %8511 = vst [vmem:[#allocation27_spill] sm:$0xff] %v6250_v63  ;;  %v6256_v1 = vstv %s6178_s0  ;;  %s8515_s0 = sld [smem:[#allocation14_spill]]  ;;  %s5218_s24 = sshll.u32 %s6273_s17, 7 }
 0x288   : > { %8513 = vst [vmem:[#allocation29_spill] sm:$0xff] %v6256_v1 }
 0x289   : > { %5534 = vmatprep.mubr.msk.bf16.mxu0 %vm595_vm1, %v1720_v2  ;;  %v6260_v2 = vstv %s6181_s23 }
 0x28a   : > { %5535 = vmatmul.mubr.msk.bf16.gmra.mrb[56].mxu0 %vm595_vm1, %v1721_v0  ;;  %v6253_v0 = vstv %s6176_s18  ;;  %s8517_s18 = sld [smem:[#allocation15_spill]] }
 0x28b   : > { %v5522_v3 = vpop.f32.mrb[60].mxu1  ;;  %8512 = vst [vmem:[#allocation28_spill] sm:$0xff] %v6253_v0 }
 0x28c   : > { %v1701_v4 = vpop.f32.mrb[61].mxu1 }
 0x28d   : > { %v5523_v5 = vpop.f32.mrb[62].mxu1 }
 0x28e   : > { %v1723_v6 = vpack.c.bf16 %v5523_v5, %v5522_v3  ;;  %v1704_v7 = vpop.f32.mrb[63].mxu1  ;;  %v6265_v3 = vstv %s6183_s22  ;;  %v6271_v5 = vstv %s6188_s2  ;;  %s8520_s2 = sld [smem:[#allocation20_spill]] }
 0x28f   : > { %v1722_v8 = vpack.c.bf16 %v1704_v7, %v1701_v4  ;;  %v6268_v4 = vstv %s6186_s1  ;;  %v6279_v7 = vstv %s6192_s4  ;;  %s6288_s1 = sld [smem:[#allocation4 + $0x8c]]  ;;  %s8527_s4 = sshll.u32 %s8515_s0, 7 }
 0x291   : > { %5538 = vmatprep.mubr.msk.bf16.mxu0 %vm595_vm1, %v1722_v8  ;;  %v6282_v8 = vstv %s6194_s5  ;;  %s8528_s5 = sld [smem:[#allocation22_spill]] }
 0x292   : > { %5539 = vmatmul.mubr.msk.bf16.gmra.mrb[60].mxu0 %vm595_vm1, %v1723_v6  ;;  %v6276_v6 = vstv %s6190_s3  ;;  %8516 = vst [vmem:[#allocation30_spill] sm:$0xff] %v6282_v8  ;;  %s8524_s3 = sld [smem:[#allocation16_spill]] }
 0x297   : > { %s5213_s22 = sshll.u32 %s8528_s5, 7  ;;  %s6433_s5 = scalar_lea.vmem [#allocation2], %s5165_s19 }
 0x298   : > { %s5176_s19 = sshll.u32 %s6446_s10, 7 }
 0x30d   : > { %v5428_v9 = vpop.f32.mrb[16].mxu0 }
 0x30e   : > { %1100 = vst.msk [vmem:[#allocation2 + $0x90] sm:$0xff] %vm721_vm2, %v5428_v9  ;;  %v1034_v10 = vpop.f32.mrb[17].mxu0  ;;  %v6285_v9 = vstv %s6196_s9  ;;  %s8532_s9 = sld [smem:[#allocation18_spill]] }
 0x30f   : > { %1098 = vst.msk [vmem:[#allocation2 + $0x80] sm:$0xff] %vm721_vm2, %v1034_v10  ;;  %v5429_v11 = vpop.f32.mrb[18].mxu0  ;;  %8518 = vst [vmem:[#allocation31_spill] sm:$0xff] %v6285_v9  ;;  %v6291_v10 = vstv %s6198_s28  ;;  %s6318_s28 = scalar_lea.vmem [#allocation2], %s8527_s4  ;;  %s6411_s4 = sld [smem:[#allocation4 + $0x8d]] }
 0x310   : > { %1101 = vst.msk [vmem:[#allocation2 + $0x98] sm:$0xff] %vm721_vm2, %v5429_v11  ;;  %v1037_v12 = vpop.f32.mrb[19].mxu0  ;;  %8519 = vst [vmem:[#allocation32_spill] sm:$0xff] %v6291_v10  ;;  %v6294_v11 = vstv %s6200_s29  ;;  %8529 = sst [smem:[#allocation19_spill]] %s6318_s28  ;;  %s6328_s29 = sld [smem:[#allocation4 + $0x4]] }
 0x311   : > { %1099 = vst.msk [vmem:[#allocation2 + $0x88] sm:$0xff] %vm721_vm2, %v1037_v12  ;;  %8521 = vst [vmem:[#allocation33_spill] sm:$0xff] %v6294_v11  ;;  %v6297_v12 = vstv %s6202_s8 }
 0x312   : > { %8522 = vst [vmem:[#allocation34_spill] sm:$0xff] %v6297_v12 }
 0x314   : > { %s8536_s0 = sshll.u32 %s8532_s9, 7  ;;  %s8338_s9 = smov 16  }
 0x315   : > { %v5432_v13 = vpop.f32.mrb[20].mxu0 }
 0x316   : > { %1104 = vst.msk [vmem:[#allocation2 + $0xb0] sm:$0xff] %vm721_vm2, %v5432_v13  ;;  %v1050_v14 = vpop.f32.mrb[21].mxu0  ;;  %v6300_v13 = vstv %s6204_s6  ;;  %s8530_s6 = sshll.u32 %s8517_s18, 7  ;;  %s6358_s18 = scalar_lea.vmem [#allocation2], %s8536_s0 }
 0x317   : > { %1102 = vst.msk [vmem:[#allocation2 + $0xa0] sm:$0xff] %vm721_vm2, %v1050_v14  ;;  %v5433_v15 = vpop.f32.mrb[22].mxu0  ;;  %v6302_v14 = vpop.permute.xlu0 %1884  ;;  %s6324_s8 = scalar_lea.vmem [#allocation2], %s8530_s6  ;;  %8537 = sst [smem:[#allocation15_spill]] %s6358_s18 }
 0x318   : > { %1105 = vst.msk [vmem:[#allocation2 + $0xb8] sm:$0xff] %vm721_vm2, %v5433_v15  ;;  %v1053_v16 = vpop.f32.mrb[23].mxu0  ;;  %v6305_v15 = vstv %s6207_s27  ;;  %s5212_s27 = sshll.u32 %s6217_s30, 7  ;;  %s6419_s30 = scalar_lea.vmem [#allocation2], %s5213_s22 }
 0x319   : > { %1103 = vst.msk [vmem:[#allocation2 + $0xa8] sm:$0xff] %vm721_vm2, %v1053_v16  ;;  %8523 = vst [vmem:[#allocation35_spill] sm:$0xff] %v6305_v15  ;;  %v6308_v16 = vstv %s6209_s7  ;;  %s8531_s7 = sld [smem:[#allocation17_spill]]  ;;  %s6402_s16 = scalar_lea.vmem [#allocation2], %s5212_s27 }
 0x31a   : > { %8525 = vst [vmem:[#allocation36_spill] sm:$0xff] %v6308_v16  ;;  %s5170_s6 = sshll.u32 %s6328_s29, 7  ;;  %s8326_s0 = smov 32  }
 0x31d   : > { %v5436_v17 = vpop.f32.mrb[24].mxu0 }
 0x31e   : > { %1108 = vst.msk [vmem:[#allocation2 + $0xd0] sm:$0xff] %vm721_vm2, %v5436_v17  ;;  %v1066_v18 = vpop.f32.mrb[25].mxu0  ;;  %v6311_v17 = vstv %s6212_s12  ;;  %s8533_s12 = sshll.u32 %s8524_s3, 7  ;;  %s6373_s3 = scalar_lea.vmem [#allocation2], %s5207_s25 }
 0x31f   : > { %1106 = vst.msk [vmem:[#allocation2 + $0xc0] sm:$0xff] %vm721_vm2, %v1066_v18  ;;  %v5437_v19 = vpop.f32.mrb[26].mxu0  ;;  %8526 = vst [vmem:[#allocation37_spill] sm:$0xff] %v6311_v17  ;;  %v6314_v18 = vstv %s8514_s15  ;;  %s6339_s21 = scalar_lea.vmem [#allocation2], %s8533_s12  ;;  %s8535_s23 = sshll.u32 %s8531_s7, 7 }
 0x320   : > { %1109 = vst.msk [vmem:[#allocation2 + $0xd8] sm:$0xff] %vm721_vm2, %v5437_v19  ;;  %v1069_v20 = vpop.f32.mrb[27].mxu0  ;;  %8534 = sst [smem:[#allocation14_spill]] %s6339_s21  ;;  %s6352_s15 = scalar_lea.vmem [#allocation2], %s8535_s23 }
 0x321   : > { %1107 = vst.msk [vmem:[#allocation2 + $0xc8] sm:$0xff] %vm721_vm2, %v1069_v20  ;;  %8538 = sst [smem:[#allocation20_spill]] %s6373_s3  ;;  %s6388_s25 = scalar_lea.vmem [#allocation2], %s5159_s20 }
 0x322   : > { %8540 = sst [smem:[#allocation22_spill]] %s6388_s25  ;;  %s6406_s20 = sld [smem:[#allocation4 + $0xd]] }
 0x323   : > { %s6462_s12 = sld [smem:[#allocation4 + $0x85]]  ;;  %s5225_s23 = sshll.u32 %s6411_s4, 7 }
 0x324   : > { %s6525_s4 = sld [smem:[#allocation4 + $0x6]] }
 0x325   : > { %v5440_v21 = vpop.f32.mrb[28].mxu0 }
 0x326   : > { %1112 = vst.msk [vmem:[#allocation2 + $0xf0] sm:$0xff] %vm721_vm2, %v5440_v21  ;;  %v1082_v22 = vpop.f32.mrb[29].mxu0 }
 0x327   : > { %1110 = vst.msk [vmem:[#allocation2 + $0xe0] sm:$0xff] %vm721_vm2, %v1082_v22  ;;  %v5441_v23 = vpop.f32.mrb[30].mxu0  ;;  %v6331_v22 = vstv %s8520_s2  ;;  %s6362_s2 = sld [smem:[#allocation4 + $0x84]] }
 0x328   : > { %1113 = vst.msk [vmem:[#allocation2 + $0xf8] sm:$0xff] %vm721_vm2, %v5441_v23  ;;  %v1085_v24 = vpop.f32.mrb[31].mxu0  ;;  %s5224_s22 = sshll.u32 %s6406_s20, 7 }
 0x329   : > { %1111 = vst.msk [vmem:[#allocation2 + $0xe8] sm:$0xff] %vm721_vm2, %v1085_v24  ;;  %s5177_s20 = sshll.u32 %s6462_s12, 7  ;;  %s6572_s12 = sld [smem:[#allocation4 + $0x8f]] }
 0x32d   : > { %v5478_v25 = vpop.f32.mrb[32].mxu0  ;;  %s5171_s27 = sshll.u32 %s6362_s2, 7  ;;  %s6495_s2 = sld [smem:[#allocation4 + $0x8e]] }
 0x32e   : > { %1476 = vst.msk [vmem:[#allocation2 + $0x110] sm:$0xff] %vm721_vm2, %v5478_v25  ;;  %v1410_v26 = vpop.f32.mrb[33].mxu0  ;;  %s6482_s29 = scalar_lea.vmem [#allocation2], %s5171_s27  ;;  %s6532_s27 = sld [smem:[#allocation4 + $0x86]] }
 0x32f   : > { %1474 = vst.msk [vmem:[#allocation2 + $0x100] sm:$0xff] %vm721_vm2, %v1410_v26  ;;  %v5479_v27 = vpop.f32.mrb[34].mxu0 }
 0x330   : > { %1477 = vst.msk [vmem:[#allocation2 + $0x118] sm:$0xff] %vm721_vm2, %v5479_v27  ;;  %v1413_v28 = vpop.f32.mrb[35].mxu0 }
 0x331   : > { %1475 = vst.msk [vmem:[#allocation2 + $0x108] sm:$0xff] %vm721_vm2, %v1413_v28 }
 0x335   : > { %v5482_v29 = vpop.f32.mrb[36].mxu0 }
 0x336   : > { %1480 = vst.msk [vmem:[#allocation2 + $0x130] sm:$0xff] %vm721_vm2, %v5482_v29  ;;  %v1426_v30 = vpop.f32.mrb[37].mxu0  ;;  %v6345_v29 = vstv %s6227_s11  ;;  %s5164_s11 = sshll.u32 %s6241_s26, 7  ;;  %s6443_s26 = scalar_lea.vmem [#allocation2], %s5218_s24 }
 0x337   : > { %1478 = vst.msk [vmem:[#allocation2 + $0x120] sm:$0xff] %vm721_vm2, %v1426_v30  ;;  %v5483_v31 = vpop.f32.mrb[38].mxu0  ;;  %s6427_s7 = scalar_lea.vmem [#allocation2], %s5164_s11  ;;  %s6489_s11 = sld [smem:[#allocation4 + $0xe]] }
 0x338   : > { %1481 = vst.msk [vmem:[#allocation2 + $0x138] sm:$0xff] %vm721_vm2, %v5483_v31  ;;  %v1429_v32 = vpop.f32.mrb[39].mxu0  ;;  %s6509_s24 = scalar_lea.vmem [#allocation2], %s5224_s22  ;;  %s6544_s22 = scalar_lea.vmem [#allocation2], %s5176_s19 }
 0x339   : > { %1479 = vst.msk [vmem:[#allocation2 + $0x128] sm:$0xff] %vm721_vm2, %v1429_v32  ;;  %8544 = sst [smem:[#allocation39_spill]] %s6509_s24  ;;  %s6558_s19 = scalar_lea.vmem [#allocation2], %s5177_s20 }
 0x33a   : > { %8547 = sst [smem:[#allocation42_spill]] %s6544_s22  ;;  %s8550_s20 = sshll.u32 %s6495_s2, 7 }
 0x33b   : > { %8548 = sst [smem:[#allocation43_spill]] %s6558_s19 }
 0x33c   : > { %s6605_s2 = sld [smem:[#allocation4 + $0x87]] }
 0x33d   : > { %v5486_v33 = vpop.f32.mrb[40].mxu0 }
 0x33e   : > { %1484 = vst.msk [vmem:[#allocation2 + $0x150] sm:$0xff] %vm721_vm2, %v5486_v33  ;;  %v1442_v34 = vpop.f32.mrb[41].mxu0 }
 0x33f   : > { %1482 = vst.msk [vmem:[#allocation2 + $0x140] sm:$0xff] %vm721_vm2, %v1442_v34  ;;  %v5487_v35 = vpop.f32.mrb[42].mxu0 }
 0x340   : > { %1485 = vst.msk [vmem:[#allocation2 + $0x158] sm:$0xff] %vm721_vm2, %v5487_v35  ;;  %v1445_v36 = vpop.f32.mrb[43].mxu0 }
 0x341   : > { %1483 = vst.msk [vmem:[#allocation2 + $0x148] sm:$0xff] %vm721_vm2, %v1445_v36  ;;  %v6365_v36 = vstv %s6243_s13  ;;  %s6382_s13 = scalar_lea.vmem [#allocation2], %s5158_s14  ;;  %s5219_s14 = sshll.u32 %s6288_s1, 7 }
 0x342   : > { %8539 = sst [smem:[#allocation16_spill]] %s6382_s13  ;;  %s6455_s17 = scalar_lea.vmem [#allocation2], %s5219_s14 }
 0x343   : > { %8541 = sst [smem:[#allocation17_spill]] %s6455_s17  ;;  %s6468_s1 = scalar_lea.vmem [#allocation2], %s5170_s6 }
 0x344   : > { %8542 = sst [smem:[#allocation18_spill]] %s6468_s1  ;;  %s6516_s14 = scalar_lea.vmem [#allocation2], %s5225_s23 }
 0x345   : > { %v5490_v37 = vpop.f32.mrb[44].mxu0  ;;  %8545 = sst [smem:[#allocation40_spill]] %s6516_s14  ;;  %s8324_s6 = smov 48  }
 0x346   : > { %1488 = vst.msk [vmem:[#allocation2 + $0x170] sm:$0xff] %vm721_vm2, %v5490_v37  ;;  %v1458_v38 = vpop.f32.mrb[45].mxu0  ;;  %s5230_s23 = sshll.u32 %s6489_s11, 7  ;;  %s6598_s11 = sld [smem:[#allocation4 + $0x7]] }
 0x347   : > { %1486 = vst.msk [vmem:[#allocation2 + $0x160] sm:$0xff] %vm721_vm2, %v1458_v38  ;;  %v5491_v39 = vpop.f32.mrb[46].mxu0 }
 0x348   : > { %1489 = vst.msk [vmem:[#allocation2 + $0x178] sm:$0xff] %vm721_vm2, %v5491_v39  ;;  %v1461_v40 = vpop.f32.mrb[47].mxu0 }
 0x349   : > { %1487 = vst.msk [vmem:[#allocation2 + $0x168] sm:$0xff] %vm721_vm2, %v1461_v40 }
 0x34d   : > { %v5528_v41 = vpop.f32.mrb[48].mxu0 }
 0x34e   : > { %1852 = vst.msk [vmem:[#allocation2 + $0x190] sm:$0xff] %vm721_vm2, %v5528_v41  ;;  %v1786_v42 = vpop.f32.mrb[49].mxu0 }
 0x34f   : > { %1850 = vst.msk [vmem:[#allocation2 + $0x180] sm:$0xff] %vm721_vm2, %v1786_v42  ;;  %v5529_v43 = vpop.f32.mrb[50].mxu0 }
 0x350   : > { %1853 = vst.msk [vmem:[#allocation2 + $0x198] sm:$0xff] %vm721_vm2, %v5529_v43  ;;  %v1789_v44 = vpop.f32.mrb[51].mxu0 }
 0x351   : > { %1851 = vst.msk [vmem:[#allocation2 + $0x188] sm:$0xff] %vm721_vm2, %v1789_v44 }
 0x355   : > { %v5532_v45 = vpop.f32.mrb[52].mxu0 }
 0x356   : > { %1856 = vst.msk [vmem:[#allocation2 + $0x1b0] sm:$0xff] %vm721_vm2, %v5532_v45  ;;  %v1802_v46 = vpop.f32.mrb[53].mxu0 }
 0x357   : > { %1854 = vst.msk [vmem:[#allocation2 + $0x1a0] sm:$0xff] %vm721_vm2, %v1802_v46  ;;  %v5533_v47 = vpop.f32.mrb[54].mxu0 }
 0x358   : > { %1857 = vst.msk [vmem:[#allocation2 + $0x1b8] sm:$0xff] %vm721_vm2, %v5533_v47  ;;  %v1805_v48 = vpop.f32.mrb[55].mxu0 }
 0x359   : > { %1855 = vst.msk [vmem:[#allocation2 + $0x1a8] sm:$0xff] %vm721_vm2, %v1805_v48 }
 0x35d   : > { %v5536_v49 = vpop.f32.mrb[56].mxu0 }
 0x35e   : > { %1860 = vst.msk [vmem:[#allocation2 + $0x1d0] sm:$0xff] %vm721_vm2, %v5536_v49  ;;  %v1818_v50 = vpop.f32.mrb[57].mxu0 }
 0x35f   : > { %1858 = vst.msk [vmem:[#allocation2 + $0x1c0] sm:$0xff] %vm721_vm2, %v1818_v50  ;;  %v5537_v51 = vpop.f32.mrb[58].mxu0 }
 0x360   : > { %1861 = vst.msk [vmem:[#allocation2 + $0x1d8] sm:$0xff] %vm721_vm2, %v5537_v51  ;;  %v1821_v52 = vpop.f32.mrb[59].mxu0  ;;  %v6392_v51 = vpop.permute.xlu0 %1889 }
 0x361   : > { %1859 = vst.msk [vmem:[#allocation2 + $0x1c8] sm:$0xff] %vm721_vm2, %v1821_v52 }
 0x365   : > { %v5540_v53 = vpop.f32.mrb[60].mxu0 }
 0x366   : > { %1864 = vst.msk [vmem:[#allocation2 + $0x1f0] sm:$0xff] %vm721_vm2, %v5540_v53  ;;  %v1834_v54 = vpop.f32.mrb[61].mxu0 }
 0x367   : > { %1862 = vst.msk [vmem:[#allocation2 + $0x1e0] sm:$0xff] %vm721_vm2, %v1834_v54  ;;  %v5541_v55 = vpop.f32.mrb[62].mxu0 }
 0x368   : > { %1865 = vst.msk [vmem:[#allocation2 + $0x1f8] sm:$0xff] %vm721_vm2, %v5541_v55  ;;  %v1837_v56 = vpop.f32.mrb[63].mxu0 }
 0x369   : > { %1863 = vst.msk [vmem:[#allocation2 + $0x1e8] sm:$0xff] %vm721_vm2, %v1837_v56 }
 0x370   : > { %v3522_v19 = vld [vmem:[%s6318_s28] sm:$0xff]  ;;  %v3523_v20 = vld [vmem:[%s6318_s28 + $0x8] sm:$0xff] }
 0x371   : > { %v3557_v21 = vld [vmem:[%s6324_s8] sm:$0xff]  ;;  %v3539_v23 = vmul.f32 %v6223_v57, %v3522_v19  ;;  %v3540_v24 = vmul.f32 %v6223_v57, %v3523_v20  ;;  %v3558_v25 = vld [vmem:[%s6324_s8 + $0x8] sm:$0xff] }
 0x372   : > { %v3574_v26 = vmul.f32 %v6230_v58, %v3557_v21  ;;  %v2123_v27 = vld [vmem:[%s6339_s21] sm:$0xff]  ;;  %v2124_v28 = vld [vmem:[%s6339_s21 + $0x8] sm:$0xff]  ;;  %v3575_v30 = vmul.f32 %v6230_v58, %v3558_v25 }
 0x373   : > { %v2140_v31 = vmul.f32 %v6233_v59, %v2123_v27  ;;  %v2141_v32 = vmul.f32 %v6233_v59, %v2124_v28  ;;  %v2158_v33 = vld [vmem:[%s6352_s15] sm:$0xff]  ;;  %v2159_v34 = vld [vmem:[%s6352_s15 + $0x8] sm:$0xff] }
 0x374   : > { %v3700_v35 = vld [vmem:[%s6358_s18] sm:$0xff]  ;;  %v3590_v37 = vadd.f32 %v3574_v26, %v3539_v23  ;;  %v2175_v38 = vmul.f32 %v6236_v60, %v2158_v33  ;;  %v2176_v39 = vmul.f32 %v6236_v60, %v2159_v34  ;;  %v3701_v40 = vld [vmem:[%s6358_s18 + $0x8] sm:$0xff]  ;;  %v3591_v44 = vadd.f32 %v3575_v30, %v3540_v24 }
 0x375   : > { %v3717_v41 = vmul.f32 %v6239_v61, %v3700_v35  ;;  %v3735_v42 = vld [vmem:[%s6373_s3] sm:$0xff]  ;;  %v3736_v43 = vld [vmem:[%s6373_s3 + $0x8] sm:$0xff]  ;;  %v3718_v45 = vmul.f32 %v6239_v61, %v3701_v40 }
 0x376   : > { %v3752_v46 = vmul.f32 %v6247_v62, %v3735_v42  ;;  %v3753_v47 = vmul.f32 %v6247_v62, %v3736_v43  ;;  %v2302_v48 = vld [vmem:[%s6382_s13] sm:$0xff]  ;;  %v2303_v49 = vld [vmem:[%s6382_s13 + $0x8] sm:$0xff]  ;;  %v3606_v52 = vadd.f32 %v3590_v37, %v6302_v14  ;;  %v2191_v53 = vadd.f32 %v2175_v38, %v2140_v31 }
 0x377   : > { %v2337_v50 = vld [vmem:[%s6388_s25] sm:$0xff]  ;;  %v2192_v54 = vadd.f32 %v2176_v39, %v2141_v32  ;;  %v2319_v55 = vmul.f32 %v6250_v63, %v2302_v48  ;;  %v2338_v56 = vld [vmem:[%s6388_s25 + $0x8] sm:$0xff]  ;;  %v3607_v19 = vadd.f32 %v3591_v44, %v6392_v51  ;;  %v2320_v23 = vmul.f32 %v6250_v63, %v2303_v49 }
 0x378   : > { %v3768_v20 = vadd.f32 %v3752_v46, %v3717_v41  ;;  %v3769_v21 = vadd.f32 %v3753_v47, %v3718_v45  ;;  %v3878_v24 = vld [vmem:[%s6402_s16] sm:$0xff]  ;;  %v3622_v25 = vmax.f32 %v3606_v52, 0.0  ;;  %v2207_v26 = vadd.f32 %v2191_v53, %v6302_v14  ;;  %v3879_v34 = vld [vmem:[%s6402_s16 + $0x8] sm:$0xff] }
 0x379   : > { %v2208_v27 = vadd.f32 %v2192_v54, %v6392_v51  ;;  %v2354_v28 = vmul.f32 %v6253_v0, %v2337_v50  ;;  %v3623_v30 = vmax.f32 %v3607_v19, 0.0  ;;  %v2355_v33 = vmul.f32 %v6253_v0, %v2338_v56  ;;  %v3913_v35 = vld [vmem:[%s6419_s30] sm:$0xff]  ;;  %v3914_v41 = vld [vmem:[%s6419_s30 + $0x8] sm:$0xff] }
 0x37a   : > { %v3784_v31 = vadd.f32 %v3768_v20, %v6302_v14  ;;  %v3785_v32 = vadd.f32 %v3769_v21, %v6392_v51  ;;  %v2223_v37 = vmax.f32 %v2207_v26, 0.0  ;;  %v3895_v40 = vmul.f32 %v6256_v1, %v3878_v24  ;;  %v2481_v42 = vld [vmem:[%s6427_s7] sm:$0xff]  ;;  %v2482_v47 = vld [vmem:[%s6427_s7 + $0x8] sm:$0xff] }
 0x37b   : > { %v2224_v38 = vmax.f32 %v2208_v27, 0.0  ;;  %v2370_v39 = vadd.f32 %v2354_v28, %v2319_v55  ;;  %v3638_v43 = vpack.c.bf16 %v3623_v30, %v3622_v25  ;;  %v2371_v46 = vadd.f32 %v2355_v33, %v2320_v23  ;;  %v2516_v48 = vld [vmem:[%s6433_s5] sm:$0xff]  ;;  %v2517_v54 = vld [vmem:[%s6433_s5 + $0x8] sm:$0xff] }
 0x37c   : > { %v3800_v44 = vmax.f32 %v3784_v31, 0.0  ;;  %v3801_v45 = vmax.f32 %v3785_v32, 0.0  ;;  %v3896_v52 = vmul.f32 %v6256_v1, %v3879_v34  ;;  %v3930_v53 = vmul.f32 %v6260_v2, %v3913_v35  ;;  %v4056_v55 = vld [vmem:[%s6443_s26] sm:$0xff]  ;;  %v4057_v23 = vld [vmem:[%s6443_s26 + $0x8] sm:$0xff] }
 0x37d   : > { %v2239_v49 = vpack.c.bf16 %v2224_v38, %v2223_v37  ;;  %v2386_v50 = vadd.f32 %v2370_v39, %v6302_v14  ;;  %3654 = vrot.lane.b32.xlu0 %v3638_v43, %s8338_s9  ;;  %v2387_v19 = vadd.f32 %v2371_v46, %v6392_v51  ;;  %v3931_v20 = vmul.f32 %v6260_v2, %v3914_v41  ;;  %v4091_v24 = vld [vmem:[%s6455_s17] sm:$0xff]  ;;  %v4092_v30 = vld [vmem:[%s6455_s17 + $0x8] sm:$0xff] }
 0x37e   : > { %v3816_v56 = vpack.c.bf16 %v3801_v45, %v3800_v44  ;;  %v2498_v21 = vmul.f32 %v6265_v3, %v2481_v42  ;;  %v3946_v26 = vadd.f32 %v3930_v53, %v3895_v40  ;;  %v2499_v27 = vmul.f32 %v6265_v3, %v2482_v47  ;;  %v2660_v35 = vld [vmem:[%s6468_s1] sm:$0xff]  ;;  %v2661_v41 = vld [vmem:[%s6468_s1 + $0x8] sm:$0xff]  ;;  %v3524_v53 = vld [vmem:[%s6318_s28 + $0x10] sm:$0xff] }
 0x37f   : > { %2255 = vrot.lane.b32.xlu1 %v2239_v49, %s8338_s9  ;;  %v2402_v25 = vmax.f32 %v2386_v50, 0.0  ;;  %v2533_v28 = vmul.f32 %v6268_v4, %v2516_v48  ;;  %v2403_v31 = vmax.f32 %v2387_v19, 0.0  ;;  %v3947_v32 = vadd.f32 %v3931_v20, %v3896_v52  ;;  %v2695_v46 = vld [vmem:[%s6482_s29] sm:$0xff]  ;;  %v2696_v47 = vld [vmem:[%s6482_s29 + $0x8] sm:$0xff]  ;;  %v3525_v20 = vld [vmem:[%s6318_s28 + $0x18] sm:$0xff] }
 0x380   : > { %v2534_v33 = vmul.f32 %v6268_v4, %v2517_v54  ;;  %v4073_v34 = vmul.f32 %v6271_v5, %v4056_v55  ;;  %v3962_v37 = vadd.f32 %v3946_v26, %v6302_v14  ;;  %v4074_v39 = vmul.f32 %v6271_v5, %v4057_v23 }
 0x381   : > { %v2549_v38 = vadd.f32 %v2533_v28, %v2498_v21  ;;  %v4108_v40 = vmul.f32 %v6276_v6, %v4091_v24  ;;  %3832 = vrot.lane.b32.xlu0 %v3816_v56, %s8326_s0  ;;  %v2418_v42 = vpack.c.bf16 %v2403_v31, %v2402_v25  ;;  %v3963_v43 = vadd.f32 %v3947_v32, %v6392_v51  ;;  %v6497_v21 = vpop.permute.xlu1 %1894  ;;  %v3560_v28 = vld [vmem:[%s6324_s8 + $0x18] sm:$0xff] }
 0x382   : > { %v2550_v44 = vadd.f32 %v2534_v33, %v2499_v27  ;;  %v4109_v45 = vmul.f32 %v6276_v6, %v4092_v30  ;;  %v3978_v48 = vmax.f32 %v3962_v37, 0.0  ;;  %v2677_v52 = vmul.f32 %v6279_v7, %v2660_v35  ;;  %8543 = vst [vmem:[#allocation38_spill] sm:$0xff] %v6497_v21  ;;  %v3559_v27 = vld [vmem:[%s6324_s8 + $0x10] sm:$0xff]  ;;  %v4235_v35 = vld [vmem:[%s6509_s24 + $0x8] sm:$0xff] }
 0x383   : > { %v2565_v49 = vadd.f32 %v2549_v38, %v6302_v14  ;;  %v4124_v50 = vadd.f32 %v4108_v40, %v4073_v34  ;;  %2434 = vrot.lane.b32.xlu1 %v2418_v42, %s8326_s0  ;;  %v3979_v54 = vmax.f32 %v3963_v43, 0.0  ;;  %v2678_v19 = vmul.f32 %v6279_v7, %v2661_v41  ;;  %v4234_v34 = vld [vmem:[%s6509_s24] sm:$0xff]  ;;  %s6565_s0 = sld [smem:[#allocation4 + $0xf]] }
 0x384   : > { %v2566_v55 = vadd.f32 %v2550_v44, %v6392_v51  ;;  %v4125_v56 = vadd.f32 %v4109_v45, %v4074_v39  ;;  %v2712_v25 = vmul.f32 %v6282_v8, %v2695_v46  ;;  %v2713_v26 = vmul.f32 %v6282_v8, %v2696_v47  ;;  %v4269_v41 = vld [vmem:[%s6516_s14] sm:$0xff]  ;;  %v4270_v46 = vld [vmem:[%s6516_s14 + $0x8] sm:$0xff]  ;;  %v2125_v47 = vld [vmem:[%s6339_s21 + $0x10] sm:$0xff] }
 0x385   : > { %v2581_v23 = vmax.f32 %v2565_v49, 0.0  ;;  %v4140_v24 = vadd.f32 %v4124_v50, %v6302_v14  ;;  %v3994_v30 = vpack.c.bf16 %v3979_v54, %v3978_v48  ;;  %v3541_v33 = vmul.f32 %v6223_v57, %v3524_v53  ;;  %v2126_v53 = vld [vmem:[%s6339_s21 + $0x18] sm:$0xff] }
 0x386   : > { %v2582_v31 = vmax.f32 %v2566_v55, 0.0  ;;  %v4141_v32 = vadd.f32 %v4125_v56, %v6392_v51  ;;  %v2728_v38 = vadd.f32 %v2712_v25, %v2677_v52  ;;  %v2729_v39 = vadd.f32 %v2713_v26, %v2678_v19 }
 0x387   : > { %v4156_v37 = vmax.f32 %v4140_v24, 0.0  ;;  %v3542_v40 = vmul.f32 %v6223_v57, %v3525_v20  ;;  %4010 = vrot.lane.b32.xlu0 %v3994_v30, %s8324_s6  ;;  %v3576_v44 = vmul.f32 %v6230_v58, %v3559_v27  ;;  %v3577_v45 = vmul.f32 %v6230_v58, %v3560_v28  ;;  %v2160_v20 = vld [vmem:[%s6352_s15 + $0x10] sm:$0xff]  ;;  %v6538_v24 = vpop.permute.xlu1 %1899  ;;  %v2839_v30 = vld [vmem:[%s6544_s22] sm:$0xff] }
 0x388   : > { %v2597_v42 = vpack.c.bf16 %v2582_v31, %v2581_v23  ;;  %v4157_v43 = vmax.f32 %v4141_v32, 0.0  ;;  %v2744_v48 = vadd.f32 %v2728_v38, %v6302_v14  ;;  %v2745_v49 = vadd.f32 %v2729_v39, %v6392_v51  ;;  %v2161_v23 = vld [vmem:[%s6352_s15 + $0x18] sm:$0xff]  ;;  %8546 = vst [vmem:[#allocation41_spill] sm:$0xff] %v6538_v24 }
 0x389   : > { %v4251_v50 = vmul.f32 %v6285_v9, %v4234_v34  ;;  %v4252_v52 = vmul.f32 %v6285_v9, %v4235_v35  ;;  %v3592_v55 = vadd.f32 %v3576_v44, %v3541_v33  ;;  %v3593_v56 = vadd.f32 %v3577_v45, %v3542_v40  ;;  %v2840_v35 = vld [vmem:[%s6544_s22 + $0x8] sm:$0xff] }
 0x38a   : > { %2613 = vrot.lane.b32.xlu1 %v2597_v42, %s8324_s6  ;;  %v4172_v54 = vpack.c.bf16 %v4157_v43, %v4156_v37  ;;  %v4286_v19 = vmul.f32 %v6291_v10, %v4269_v41  ;;  %v2760_v25 = vmax.f32 %v2744_v48, 0.0  ;;  %v2761_v26 = vmax.f32 %v2745_v49, 0.0  ;;  %s8328_s6 = smov 64   ;;  %v2874_v41 = vld [vmem:[%s6558_s19] sm:$0xff]  ;;  %v2875_v42 = vld [vmem:[%s6558_s19 + $0x8] sm:$0xff] }
 0x38b   : > { %v4287_v27 = vmul.f32 %v6291_v10, %v4270_v46  ;;  %v2142_v28 = vmul.f32 %v6233_v59, %v2125_v47  ;;  %v3608_v31 = vadd.f32 %v3592_v55, %v6497_v21  ;;  %v3609_v32 = vadd.f32 %v3593_v56, %v6538_v24  ;;  %v3702_v47 = vld [vmem:[%s6358_s18 + $0x10] sm:$0xff] }
 0x38c   : > { %4188 = vrot.lane.b32.xlu0 %v4172_v54, %s8328_s6  ;;  %v4302_v33 = vadd.f32 %v4286_v19, %v4251_v50  ;;  %v2143_v34 = vmul.f32 %v6233_v59, %v2126_v53  ;;  %v2776_v37 = vpack.c.bf16 %v2761_v26, %v2760_v25  ;;  %v2177_v39 = vmul.f32 %v6236_v60, %v2160_v20  ;;  %v3703_v53 = vld [vmem:[%s6358_s18 + $0x18] sm:$0xff]  ;;  %v3737_v54 = vld [vmem:[%s6373_s3 + $0x10] sm:$0xff] }
 0x38d   : > { %v4303_v38 = vadd.f32 %v4287_v27, %v4252_v52  ;;  %v2178_v40 = vmul.f32 %v6236_v60, %v2161_v23  ;;  %v3624_v43 = vmax.f32 %v3608_v31, 0.0  ;;  %v3625_v44 = vmax.f32 %v3609_v32, 0.0  ;;  %v3738_v23 = vld [vmem:[%s6373_s3 + $0x18] sm:$0xff]  ;;  %s6593_s3 = scalar_lea.vmem [#allocation2], %s8550_s20  ;;  %s8552_s20 = sshll.u32 %s6525_s4, 7 }
 0x38e   : > { %v4318_v45 = vadd.f32 %v4302_v33, %v6302_v14  ;;  %v2856_v46 = vmul.f32 %v6294_v11, %v2839_v30  ;;  %2792 = vrot.lane.b32.xlu1 %v2776_v37, %s8328_s6  ;;  %v2193_v49 = vadd.f32 %v2177_v39, %v2142_v28  ;;  %v2857_v52 = vmul.f32 %v6294_v11, %v2840_v35  ;;  %s6583_s6 = scalar_lea.vmem [#allocation2], %s5230_s23  ;;  %8551 = sst [smem:[#allocation45_spill]] %s6593_s3  ;;  %v4447_v37 = vld [vmem:[%s6593_s3] sm:$0xff] }
 0x38f   : > { %v4319_v48 = vadd.f32 %v4303_v38, %v6392_v51  ;;  %v2194_v50 = vadd.f32 %v2178_v40, %v2143_v34  ;;  %v3639_v55 = vpack.c.bf16 %v3625_v44, %v3624_v43  ;;  %v2891_v19 = vmul.f32 %v6297_v12, %v2874_v41  ;;  %8549 = sst [smem:[#allocation44_spill]] %s6583_s6  ;;  %v4412_v30 = vld [vmem:[%s6583_s6] sm:$0xff]  ;;  %v4413_v35 = vld [vmem:[%s6583_s6 + $0x8] sm:$0xff]  ;;  %s8332_s23 = smov 80  }
 0x390   : > { %v4334_v56 = vmax.f32 %v4318_v45, 0.0  ;;  %v2892_v20 = vmul.f32 %v6297_v12, %v2875_v42  ;;  %v2209_v26 = vadd.f32 %v2193_v49, %v6497_v21  ;;  %v3719_v28 = vmul.f32 %v6239_v61, %v3702_v47  ;;  %v4448_v42 = vld [vmem:[%s6593_s3 + $0x8] sm:$0xff]  ;;  %v2304_v47 = vld [vmem:[%s6382_s13 + $0x10] sm:$0xff]  ;;  %s6616_s10 = scalar_lea.vmem [#allocation2], %s8552_s20  ;;  %s8557_s4 = smov 32  }
 0x391   : > { %v4335_v25 = vmax.f32 %v4319_v48, 0.0  ;;  %v2210_v27 = vadd.f32 %v2194_v50, %v6538_v24  ;;  %3656 = vrot.lane.b32.xlu0 %v3639_v55, %s8338_s9  ;;  %v2907_v31 = vadd.f32 %v2891_v19, %v2856_v46  ;;  %v3720_v33 = vmul.f32 %v6239_v61, %v3703_v53  ;;  %v2305_v48 = vld [vmem:[%s6382_s13 + $0x18] sm:$0xff]  ;;  %8553 = sst [smem:[#allocation46_spill]] %s6616_s10  ;;  %s8554_s13 = sshll.u32 %s6532_s27, 7 }
 0x392   : > { %v2908_v32 = vadd.f32 %v2892_v20, %v2857_v52  ;;  %v3754_v34 = vmul.f32 %v6247_v62, %v3737_v54  ;;  %v2225_v39 = vmax.f32 %v2209_v26, 0.0  ;;  %v3755_v41 = vmul.f32 %v6247_v62, %v3738_v23  ;;  %v2339_v54 = vld [vmem:[%s6388_s25 + $0x10] sm:$0xff]  ;;  %v2340_v23 = vld [vmem:[%s6388_s25 + $0x18] sm:$0xff]  ;;  %s6627_s25 = scalar_lea.vmem [#allocation2], %s8554_s13  ;;  %s8556_s13 = smov 80  }
 0x393   : > { %v4350_v38 = vpack.c.bf16 %v4335_v25, %v4334_v56  ;;  %v2226_v40 = vmax.f32 %v2210_v27, 0.0  ;;  %v2923_v43 = vadd.f32 %v2907_v31, %v6302_v14  ;;  %v4429_v46 = vmul.f32 %v6300_v13, %v4412_v30  ;;  %v3018_v25 = vld [vmem:[%s6616_s10] sm:$0xff]  ;;  %v3019_v31 = vld [vmem:[%s6616_s10 + $0x8] sm:$0xff]  ;;  %8555 = sst [smem:[#allocation47_spill]] %s6627_s25  ;;  %s8558_s27 = sshll.u32 %s6572_s12, 7 }
 0x394   : > { %v2924_v44 = vadd.f32 %v2908_v32, %v6392_v51  ;;  %v3770_v45 = vadd.f32 %v3754_v34, %v3719_v28  ;;  %v3771_v50 = vadd.f32 %v3755_v41, %v3720_v33  ;;  %v4430_v52 = vmul.f32 %v6300_v13, %v4413_v35  ;;  %v3053_v32 = vld [vmem:[%s6627_s25] sm:$0xff]  ;;  %s8340_s12 = smov 96  }
 0x395   : > { %4366 = vrot.lane.b32.xlu1 %v4350_v38, %s8332_s23  ;;  %v2240_v49 = vpack.c.bf16 %v2226_v40, %v2225_v39  ;;  %v4464_v53 = vmul.f32 %v6305_v15, %v4447_v37  ;;  %v2939_v55 = vmax.f32 %v2923_v43, 0.0  ;;  %v4465_v20 = vmul.f32 %v6305_v15, %v4448_v42  ;;  %s5236_s23 = sshll.u32 %s6565_s0, 7  ;;  %v3054_v38 = vld [vmem:[%s6627_s25 + $0x8] sm:$0xff]  ;;  %v3880_v43 = vld [vmem:[%s6402_s16 + $0x10] sm:$0xff]  ;;  %s6661_s0 = scalar_lea.vmem [#allocation2], %s8558_s27 }
 0x396   : > { %v2940_v56 = vmax.f32 %v2924_v44, 0.0  ;;  %v3786_v19 = vadd.f32 %v3770_v45, %v6497_v21  ;;  %v3787_v26 = vadd.f32 %v3771_v50, %v6538_v24  ;;  %v2321_v28 = vmul.f32 %v6250_v63, %v2304_v47  ;;  %s6650_s20 = scalar_lea.vmem [#allocation2], %s5236_s23  ;;  %s8559_s23 = sshll.u32 %s6598_s11, 7 }
 0x397   : > { %2257 = vrot.lane.b32.xlu0 %v2240_v49, %s8338_s9  ;;  %v4480_v27 = vadd.f32 %v4464_v53, %v4429_v46  ;;  %v2322_v30 = vmul.f32 %v6250_v63, %v2305_v48  ;;  %v4481_v35 = vadd.f32 %v4465_v20, %v4430_v52  ;;  %v2356_v37 = vmul.f32 %v6253_v0, %v2339_v54  ;;  %v3881_v48 = vld [vmem:[%s6402_s16 + $0x18] sm:$0xff]  ;;  %v3915_v49 = vld [vmem:[%s6419_s30 + $0x10] sm:$0xff]  ;;  %s5189_s9 = sshll.u32 %s6605_s2, 7  ;;  %s6680_s27 = scalar_lea.vmem [#allocation2], %s8559_s23 }
 0x398   : > { %v2955_v33 = vpack.c.bf16 %v2940_v56, %v2939_v55  ;;  %v3802_v34 = vmax.f32 %v3786_v19, 0.0  ;;  %v3803_v39 = vmax.f32 %v3787_v26, 0.0  ;;  %v2357_v41 = vmul.f32 %v6253_v0, %v2340_v23  ;;  %v3916_v55 = vld [vmem:[%s6419_s30 + $0x18] sm:$0xff]  ;;  %8560 = sst [smem:[#allocation48_spill]] %s6680_s27  ;;  %s8562_s11 = smov 48  }
 0x399   : > { %v4496_v40 = vadd.f32 %v4480_v27, %v6302_v14  ;;  %v3035_v42 = vmul.f32 %v6308_v16, %v3018_v25  ;;  %v4497_v44 = vadd.f32 %v4481_v35, %v6392_v51  ;;  %v2372_v45 = vadd.f32 %v2356_v37, %v2321_v28  ;;  %v4590_v25 = vld [vmem:[%s6650_s20] sm:$0xff]  ;;  %s8342_s2 = smov 112   ;;  %s8565_s23 = smov 64  }
 0x39a   : > { %2971 = vrot.lane.b32.xlu1 %v2955_v33, %s8556_s13  ;;  %v3036_v46 = vmul.f32 %v6308_v16, %v3019_v31  ;;  %v3070_v47 = vmul.f32 %v6311_v17, %v3053_v32  ;;  %v3817_v50 = vpack.c.bf16 %v3803_v39, %v3802_v34  ;;  %v2373_v53 = vadd.f32 %v2357_v41, %v2322_v30  ;;  %v4591_v31 = vld [vmem:[%s6650_s20 + $0x8] sm:$0xff]  ;;  %v4625_v32 = vld [vmem:[%s6661_s0] sm:$0xff] }
 0x39b   : > { %v4512_v52 = vmax.f32 %v4496_v40, 0.0  ;;  %v3071_v54 = vmul.f32 %v6311_v17, %v3054_v38  ;;  %v4513_v56 = vmax.f32 %v4497_v44, 0.0  ;;  %v2388_v19 = vadd.f32 %v2372_v45, %v6497_v21  ;;  %v4626_v38 = vld [vmem:[%s6661_s0 + $0x8] sm:$0xff]  ;;  %v2484_v44 = vld [vmem:[%s6427_s7 + $0x18] sm:$0xff] }
 0x39c   : > { %v3086_v20 = vadd.f32 %v3070_v47, %v3035_v42  ;;  %v3897_v23 = vmul.f32 %v6256_v1, %v3880_v43  ;;  %3834 = vrot.lane.b32.xlu0 %v3817_v50, %s8557_s4  ;;  %v2389_v26 = vadd.f32 %v2373_v53, %v6538_v24  ;;  %v3898_v28 = vmul.f32 %v6256_v1, %v3881_v48  ;;  %v2483_v43 = vld [vmem:[%s6427_s7 + $0x10] sm:$0xff] }
 0x39d   : > { %v3087_v27 = vadd.f32 %v3071_v54, %v3036_v46  ;;  %v3932_v30 = vmul.f32 %v6260_v2, %v3915_v49  ;;  %v4528_v33 = vpack.c.bf16 %v4513_v56, %v4512_v52  ;;  %v2404_v34 = vmax.f32 %v2388_v19, 0.0  ;;  %v2518_v49 = vld [vmem:[%s6433_s5 + $0x10] sm:$0xff]  ;;  %v3197_v56 = vld [vmem:[%s6680_s27] sm:$0xff] }
 0x39e   : > { %v3102_v35 = vadd.f32 %v3086_v20, %v6302_v14  ;;  %v3933_v37 = vmul.f32 %v6260_v2, %v3916_v55  ;;  %v2405_v39 = vmax.f32 %v2389_v26, 0.0  ;;  %v4607_v42 = vmul.f32 %v6314_v18, %v4590_v25  ;;  %v2519_v55 = vld [vmem:[%s6433_s5 + $0x18] sm:$0xff]  ;;  %v3198_v26 = vld [vmem:[%s6680_s27 + $0x8] sm:$0xff] }
 0x39f   : > { %v3103_v40 = vadd.f32 %v3087_v27, %v6392_v51  ;;  %v3948_v41 = vadd.f32 %v3932_v30, %v3897_v23  ;;  %4544 = vrot.lane.b32.xlu1 %v4528_v33, %s8340_s12  ;;  %v4608_v47 = vmul.f32 %v6314_v18, %v4591_v31  ;;  %v4642_v48 = vmul.f32 %v6331_v22, %v4625_v32  ;;  %s6689_s12 = scalar_lea.vmem [#allocation2], %s5189_s9  ;;  %s8561_s9 = smov 96  }
 0x3a0   : > { %v3118_v45 = vmax.f32 %v3102_v35, 0.0  ;;  %v3949_v46 = vadd.f32 %v3933_v37, %v3898_v28  ;;  %v2419_v50 = vpack.c.bf16 %v2405_v39, %v2404_v34  ;;  %v4643_v54 = vmul.f32 %v6331_v22, %v4626_v38  ;;  %v3232_v27 = vld [vmem:[%s6689_s12] sm:$0xff]  ;;  %v3233_v33 = vld [vmem:[%s6689_s12 + $0x8] sm:$0xff]  ;;  %v4058_v39 = vld [vmem:[%s6443_s26 + $0x10] sm:$0xff] }
 0x3a1   : > { %v3119_v52 = vmax.f32 %v3103_v40, 0.0  ;;  %v3964_v53 = vadd.f32 %v3948_v41, %v6497_v21  ;;  %v4658_v20 = vadd.f32 %v4642_v48, %v4607_v42  ;;  %v2500_v23 = vmul.f32 %v6265_v3, %v2483_v43 }
 0x3a2   : > { %v3965_v19 = vadd.f32 %v3949_v46, %v6538_v24  ;;  %v2501_v25 = vmul.f32 %v6265_v3, %v2484_v44  ;;  %2436 = vrot.lane.b32.xlu0 %v2419_v50, %s8557_s4  ;;  %v4659_v31 = vadd.f32 %v4643_v54, %v4608_v47  ;;  %v2535_v32 = vmul.f32 %v6268_v4, %v2518_v49  ;;  %v4059_v44 = vld [vmem:[%s6443_s26 + $0x18] sm:$0xff] }
 0x3a3   : > { %v3134_v28 = vpack.c.bf16 %v3119_v52, %v3118_v45  ;;  %v3980_v30 = vmax.f32 %v3964_v53, 0.0  ;;  %v4674_v35 = vadd.f32 %v4658_v20, %v6302_v14  ;;  %v2536_v37 = vmul.f32 %v6268_v4, %v2519_v55  ;;  %v4093_v45 = vld [vmem:[%s6455_s17 + $0x10] sm:$0xff]  ;;  %v4094_v50 = vld [vmem:[%s6455_s17 + $0x18] sm:$0xff] }
 0x3a4   : > { %v3981_v34 = vmax.f32 %v3965_v19, 0.0  ;;  %v3214_v38 = vmul.f32 %v6345_v29, %v3197_v56  ;;  %v4675_v40 = vadd.f32 %v4659_v31, %v6392_v51  ;;  %v2551_v41 = vadd.f32 %v2535_v32, %v2500_v23  ;;  %v2662_v56 = vld [vmem:[%s6468_s1 + $0x10] sm:$0xff] }
 0x3a5   : > { %3150 = vrot.lane.b32.xlu1 %v3134_v28, %s8561_s9  ;;  %v3215_v42 = vmul.f32 %v6345_v29, %v3198_v26  ;;  %v3249_v43 = vmul.f32 %v6365_v36, %v3232_v27  ;;  %v4690_v47 = vmax.f32 %v4674_v35, 0.0  ;;  %v2552_v48 = vadd.f32 %v2536_v37, %v2501_v25  ;;  %v2663_v26 = vld [vmem:[%s6468_s1 + $0x18] sm:$0xff]  ;;  %v2697_v27 = vld [vmem:[%s6482_s29 + $0x10] sm:$0xff] }
 0x3a6   : > { %v3995_v46 = vpack.c.bf16 %v3981_v34, %v3980_v30  ;;  %v3250_v49 = vmul.f32 %v6365_v36, %v3233_v33  ;;  %v4691_v52 = vmax.f32 %v4675_v40, 0.0  ;;  %v2567_v53 = vadd.f32 %v2551_v41, %v6497_v21  ;;  %v2698_v33 = vld [vmem:[%s6482_s29 + $0x18] sm:$0xff]  ;;  %v3527_v40 = vld [vmem:[%s6318_s28 + $0x28] sm:$0xff] }
 0x3a7   : > { %v3265_v54 = vadd.f32 %v3249_v43, %v3214_v38  ;;  %v4075_v55 = vmul.f32 %v6271_v5, %v4058_v39  ;;  %v2568_v19 = vadd.f32 %v2552_v48, %v6538_v24  ;;  %v4076_v23 = vmul.f32 %v6271_v5, %v4059_v44  ;;  %v3526_v39 = vld [vmem:[%s6318_s28 + $0x20] sm:$0xff] }
 0x3a8   : > { %4012 = vrot.lane.b32.xlu0 %v3995_v46, %s8562_s11  ;;  %v3266_v20 = vadd.f32 %v3250_v49, %v3215_v42  ;;  %v4110_v25 = vmul.f32 %v6276_v6, %v4093_v45  ;;  %v4706_v28 = vpack.c.bf16 %v4691_v52, %v4690_v47  ;;  %v2583_v30 = vmax.f32 %v2567_v53, 0.0  ;;  %v3561_v45 = vld [vmem:[%s6324_s8 + $0x20] sm:$0xff]  ;;  %v4236_v52 = vld [vmem:[%s6509_s24 + $0x10] sm:$0xff] }
 0x3a9   : > { %v3281_v31 = vadd.f32 %v3265_v54, %v6302_v14  ;;  %v4111_v32 = vmul.f32 %v6276_v6, %v4094_v50  ;;  %v2584_v34 = vmax.f32 %v2568_v19, 0.0  ;;  %v2679_v38 = vmul.f32 %v6279_v7, %v2662_v56  ;;  %v3562_v50 = vld [vmem:[%s6324_s8 + $0x28] sm:$0xff]  ;;  %v4237_v19 = vld [vmem:[%s6509_s24 + $0x18] sm:$0xff] }
 0x3aa   : > { %v3282_v35 = vadd.f32 %v3266_v20, %v6392_v51  ;;  %v4126_v37 = vadd.f32 %v4110_v25, %v4075_v55  ;;  %4722 = vrot.lane.b32.xlu1 %v4706_v28, %s8342_s2  ;;  %v2680_v43 = vmul.f32 %v6279_v7, %v2663_v26  ;;  %v2714_v44 = vmul.f32 %v6282_v8, %v2697_v27  ;;  %v4271_v20 = vld [vmem:[%s6516_s14 + $0x10] sm:$0xff]  ;;  %v4272_v28 = vld [vmem:[%s6516_s14 + $0x18] sm:$0xff] }
 0x3ab   : > { %v3297_v41 = vmax.f32 %v3281_v31, 0.0  ;;  %v4127_v42 = vadd.f32 %v4111_v32, %v4076_v23  ;;  %v2598_v46 = vpack.c.bf16 %v2584_v34, %v2583_v30  ;;  %v2715_v49 = vmul.f32 %v6282_v8, %v2698_v33  ;;  %v2127_v34 = vld [vmem:[%s6339_s21 + $0x20] sm:$0xff] }
 0x3ac   : > { %v3298_v47 = vmax.f32 %v3282_v35, 0.0  ;;  %v4142_v48 = vadd.f32 %v4126_v37, %v6497_v21  ;;  %v2730_v54 = vadd.f32 %v2714_v44, %v2679_v38  ;;  %v3543_v55 = vmul.f32 %v6223_v57, %v3526_v39 }
 0x3ad   : > { %v4143_v53 = vadd.f32 %v4127_v42, %v6538_v24  ;;  %v3544_v56 = vmul.f32 %v6223_v57, %v3527_v40  ;;  %2615 = vrot.lane.b32.xlu0 %v2598_v46, %s8562_s11  ;;  %v2731_v26 = vadd.f32 %v2715_v49, %v2680_v43  ;;  %v3578_v27 = vmul.f32 %v6230_v58, %v3561_v45  ;;  %v2128_v40 = vld [vmem:[%s6339_s21 + $0x28] sm:$0xff]  ;;  %v6749_v42 = vpop.permute.xlu0 %1904 }
 0x3ae   : > { %v3313_v23 = vpack.c.bf16 %v3298_v47, %v3297_v41  ;;  %v4158_v25 = vmax.f32 %v4142_v48, 0.0  ;;  %v2746_v31 = vadd.f32 %v2730_v54, %v6497_v21  ;;  %v3579_v32 = vmul.f32 %v6230_v58, %v3562_v50  ;;  %v2162_v41 = vld [vmem:[%s6352_s15 + $0x20] sm:$0xff]  ;;  %8563 = vst [vmem:[#allocation49_spill] sm:$0xff] %v6749_v42  ;;  %v2163_v47 = vld [vmem:[%s6352_s15 + $0x28] sm:$0xff]  ;;  %v6753_v48 = vpop.permute.xlu1 %1909  ;;  %v2841_v54 = vld [vmem:[%s6544_s22 + $0x10] sm:$0xff] }
 0x3af   : > { %v4159_v30 = vmax.f32 %v4143_v53, 0.0  ;;  %v4253_v33 = vmul.f32 %v6285_v9, %v4236_v52  ;;  %v2747_v35 = vadd.f32 %v2731_v26, %v6538_v24  ;;  %v3594_v37 = vadd.f32 %v3578_v27, %v3543_v55  ;;  %8564 = vst [vmem:[#allocation50_spill] sm:$0xff] %v6753_v48 }
 0x3b0   : > { %3329 = vrot.lane.b32.xlu1 %v3313_v23, %s8342_s2  ;;  %v4254_v38 = vmul.f32 %v6285_v9, %v4237_v19  ;;  %v4288_v39 = vmul.f32 %v6291_v10, %v4271_v20  ;;  %v2762_v44 = vmax.f32 %v2746_v31, 0.0  ;;  %v3595_v45 = vadd.f32 %v3579_v32, %v3544_v56  ;;  %v2842_v23 = vld [vmem:[%s6544_s22 + $0x18] sm:$0xff]  ;;  %s8566_s2 = sld [smem:[#allocation20_spill]] }
 0x3b1   : > { %v4173_v43 = vpack.c.bf16 %v4159_v30, %v4158_v25  ;;  %v4289_v46 = vmul.f32 %v6291_v10, %v4272_v28  ;;  %v2763_v49 = vmax.f32 %v2747_v35, 0.0  ;;  %v3610_v50 = vadd.f32 %v3594_v37, %v6749_v42  ;;  %v2876_v25 = vld [vmem:[%s6558_s19 + $0x10] sm:$0xff]  ;;  %v2877_v31 = vld [vmem:[%s6558_s19 + $0x18] sm:$0xff]  ;;  %v3704_v37 = vld [vmem:[%s6358_s18 + $0x20] sm:$0xff]  ;;  %s8569_s19 = sld [smem:[#allocation22_spill]] }
 0x3b2   : > { %v4304_v52 = vadd.f32 %v4288_v39, %v4253_v33  ;;  %v2144_v53 = vmul.f32 %v6233_v59, %v2127_v34  ;;  %v3611_v55 = vadd.f32 %v3595_v45, %v6753_v48  ;;  %v2145_v19 = vmul.f32 %v6233_v59, %v2128_v40 }
 0x3b3   : > { %4190 = vrot.lane.b32.xlu0 %v4173_v43, %s8565_s23  ;;  %v4305_v56 = vadd.f32 %v4289_v46, %v4254_v38  ;;  %v2179_v20 = vmul.f32 %v6236_v60, %v2162_v41  ;;  %v2777_v26 = vpack.c.bf16 %v2763_v49, %v2762_v44  ;;  %v3626_v27 = vmax.f32 %v3610_v50, 0.0  ;;  %v3705_v38 = vld [vmem:[%s6358_s18 + $0x28] sm:$0xff]  ;;  %s8568_s18 = smov 16  }
 0x3b4   : > { %v4320_v28 = vadd.f32 %v4304_v52, %v6497_v21  ;;  %v2180_v30 = vmul.f32 %v6236_v60, %v2163_v47  ;;  %v3627_v32 = vmax.f32 %v3611_v55, 0.0  ;;  %v2858_v35 = vmul.f32 %v6294_v11, %v2841_v54  ;;  %v4414_v52 = vld [vmem:[%s6583_s6 + $0x10] sm:$0xff] }
 0x3b5   : > { %v4321_v33 = vadd.f32 %v4305_v56, %v6538_v24  ;;  %v2195_v34 = vadd.f32 %v2179_v20, %v2144_v53  ;;  %2794 = vrot.lane.b32.xlu1 %v2777_v26, %s8565_s23  ;;  %v2859_v41 = vmul.f32 %v6294_v11, %v2842_v23  ;;  %v2893_v43 = vmul.f32 %v6297_v12, %v2876_v25  ;;  %s8567_s23 = sld [smem:[#allocation16_spill]]  ;;  %v4449_v20 = vld [vmem:[%s6593_s3 + $0x10] sm:$0xff] }
 0x3b6   : > { %v4336_v39 = vmax.f32 %v4320_v28, 0.0  ;;  %v2196_v40 = vadd.f32 %v2180_v30, %v2145_v19  ;;  %v3739_v44 = vld [vmem:[%s8566_s2 + $0x20] sm:$0xff]  ;;  %v3640_v45 = vpack.c.bf16 %v3627_v32, %v3626_v27  ;;  %v2894_v49 = vmul.f32 %v6297_v12, %v2877_v31  ;;  %v3740_v50 = vld [vmem:[%s8566_s2 + $0x28] sm:$0xff]  ;;  %v4415_v19 = vld [vmem:[%s6583_s6 + $0x18] sm:$0xff] }
 0x3b7   : > { %v4337_v46 = vmax.f32 %v4321_v33, 0.0  ;;  %v2211_v47 = vadd.f32 %v2195_v34, %v6749_v42  ;;  %v2909_v54 = vadd.f32 %v2893_v43, %v2858_v35  ;;  %v3721_v55 = vmul.f32 %v6239_v61, %v3704_v37  ;;  %v4450_v28 = vld [vmem:[%s6593_s3 + $0x18] sm:$0xff] }
 0x3b8   : > { %v2212_v53 = vadd.f32 %v2196_v40, %v6753_v48  ;;  %v3722_v56 = vmul.f32 %v6239_v61, %v3705_v38  ;;  %3658 = vrot.lane.b32.xlu0 %v3640_v45, %s8568_s18  ;;  %v2910_v26 = vadd.f32 %v2894_v49, %v2859_v41  ;;  %v3756_v27 = vmul.f32 %v6247_v62, %v3739_v44  ;;  %v2341_v41 = vld [vmem:[%s8569_s19 + $0x20] sm:$0xff] }
 0x3b9   : > { %v4351_v23 = vpack.c.bf16 %v4337_v46, %v4336_v39  ;;  %v2227_v25 = vmax.f32 %v2211_v47, 0.0  ;;  %v2925_v31 = vadd.f32 %v2909_v54, %v6497_v21  ;;  %v3757_v32 = vmul.f32 %v6247_v62, %v3740_v50  ;;  %v2342_v47 = vld [vmem:[%s8569_s19 + $0x28] sm:$0xff]  ;;  %v3020_v54 = vld [vmem:[%s6616_s10 + $0x10] sm:$0xff] }
 0x3ba   : > { %v2228_v30 = vmax.f32 %v2212_v53, 0.0  ;;  %v4431_v33 = vmul.f32 %v6300_v13, %v4414_v52  ;;  %v2926_v35 = vadd.f32 %v2910_v26, %v6538_v24  ;;  %v3772_v37 = vadd.f32 %v3756_v27, %v3721_v55 }
 0x3bb   : > { %v2306_v34 = vld [vmem:[%s8567_s23 + $0x20] sm:$0xff]  ;;  %4368 = vrot.lane.b32.xlu1 %v4351_v23, %s8556_s13  ;;  %v4432_v38 = vmul.f32 %v6300_v13, %v4415_v19  ;;  %v4466_v39 = vmul.f32 %v6305_v15, %v4449_v20  ;;  %v2307_v40 = vld [vmem:[%s8567_s23 + $0x28] sm:$0xff]  ;;  %v2941_v44 = vmax.f32 %v2925_v31, 0.0  ;;  %v3773_v45 = vadd.f32 %v3757_v32, %v3722_v56  ;;  %v3021_v23 = vld [vmem:[%s6616_s10 + $0x18] sm:$0xff] }
 0x3bc   : > { %v2241_v43 = vpack.c.bf16 %v2228_v30, %v2227_v25  ;;  %v4467_v46 = vmul.f32 %v6305_v15, %v4450_v28  ;;  %v2942_v49 = vmax.f32 %v2926_v35, 0.0  ;;  %v3788_v50 = vadd.f32 %v3772_v37, %v6749_v42  ;;  %v3055_v25 = vld [vmem:[%s6627_s25 + $0x10] sm:$0xff]  ;;  %v3056_v31 = vld [vmem:[%s6627_s25 + $0x18] sm:$0xff]  ;;  %v3882_v37 = vld [vmem:[%s6402_s16 + $0x20] sm:$0xff] }
 0x3bd   : > { %v4482_v52 = vadd.f32 %v4466_v39, %v4431_v33  ;;  %v2323_v53 = vmul.f32 %v6250_v63, %v2306_v34  ;;  %v3789_v55 = vadd.f32 %v3773_v45, %v6753_v48  ;;  %v2324_v56 = vmul.f32 %v6250_v63, %v2307_v40 }
 0x3be   : > { %2259 = vrot.lane.b32.xlu0 %v2241_v43, %s8568_s18  ;;  %v4483_v19 = vadd.f32 %v4467_v46, %v4432_v38  ;;  %v2358_v20 = vmul.f32 %v6253_v0, %v2341_v41  ;;  %v2956_v26 = vpack.c.bf16 %v2942_v49, %v2941_v44  ;;  %v3804_v27 = vmax.f32 %v3788_v50, 0.0  ;;  %v3883_v38 = vld [vmem:[%s6402_s16 + $0x28] sm:$0xff]  ;;  %v3917_v44 = vld [vmem:[%s6419_s30 + $0x20] sm:$0xff] }
 0x3bf   : > { %v4498_v28 = vadd.f32 %v4482_v52, %v6497_v21  ;;  %v2359_v30 = vmul.f32 %v6253_v0, %v2342_v47  ;;  %v3805_v32 = vmax.f32 %v3789_v55, 0.0  ;;  %v3037_v35 = vmul.f32 %v6308_v16, %v3020_v54  ;;  %v3918_v50 = vld [vmem:[%s6419_s30 + $0x28] sm:$0xff]  ;;  %v4592_v52 = vld [vmem:[%s6650_s20 + $0x10] sm:$0xff] }
 0x3c0   : > { %v4499_v33 = vadd.f32 %v4483_v19, %v6538_v24  ;;  %v2374_v34 = vadd.f32 %v2358_v20, %v2323_v53  ;;  %2973 = vrot.lane.b32.xlu1 %v2956_v26, %s8556_s13  ;;  %v3038_v41 = vmul.f32 %v6308_v16, %v3021_v23  ;;  %v3072_v43 = vmul.f32 %v6311_v17, %v3055_v25  ;;  %v4627_v20 = vld [vmem:[%s6661_s0 + $0x10] sm:$0xff] }
 0x3c1   : > { %v4514_v39 = vmax.f32 %v4498_v28, 0.0  ;;  %v2375_v40 = vadd.f32 %v2359_v30, %v2324_v56  ;;  %v3818_v45 = vpack.c.bf16 %v3805_v32, %v3804_v27  ;;  %v3073_v49 = vmul.f32 %v6311_v17, %v3056_v31  ;;  %v4593_v56 = vld [vmem:[%s6650_s20 + $0x18] sm:$0xff] }
 0x3c2   : > { %v4515_v46 = vmax.f32 %v4499_v33, 0.0  ;;  %v2390_v47 = vadd.f32 %v2374_v34, %v6749_v42  ;;  %v3088_v54 = vadd.f32 %v3072_v43, %v3037_v35  ;;  %v3899_v55 = vmul.f32 %v6256_v1, %v3882_v37  ;;  %v4628_v28 = vld [vmem:[%s6661_s0 + $0x18] sm:$0xff]  ;;  %v2485_v34 = vld [vmem:[%s6427_s7 + $0x20] sm:$0xff] }
 0x3c3   : > { %v2391_v53 = vadd.f32 %v2375_v40, %v6753_v48  ;;  %v3900_v19 = vmul.f32 %v6256_v1, %v3883_v38  ;;  %3836 = vrot.lane.b32.xlu0 %v3818_v45, %s8557_s4  ;;  %v3089_v26 = vadd.f32 %v3073_v49, %v3038_v41  ;;  %v3934_v27 = vmul.f32 %v6260_v2, %v3917_v44  ;;  %v2486_v40 = vld [vmem:[%s6427_s7 + $0x28] sm:$0xff]  ;;  %v2520_v41 = vld [vmem:[%s6433_s5 + $0x20] sm:$0xff] }
 0x3c4   : > { %v4529_v23 = vpack.c.bf16 %v4515_v46, %v4514_v39  ;;  %v2406_v25 = vmax.f32 %v2390_v47, 0.0  ;;  %v3104_v31 = vadd.f32 %v3088_v54, %v6497_v21  ;;  %v3935_v32 = vmul.f32 %v6260_v2, %v3918_v50  ;;  %v2521_v47 = vld [vmem:[%s6433_s5 + $0x28] sm:$0xff]  ;;  %v3199_v54 = vld [vmem:[%s6680_s27 + $0x10] sm:$0xff] }
 0x3c5   : > { %v2407_v30 = vmax.f32 %v2391_v53, 0.0  ;;  %v4609_v33 = vmul.f32 %v6314_v18, %v4592_v52  ;;  %v3105_v35 = vadd.f32 %v3089_v26, %v6538_v24  ;;  %v3950_v37 = vadd.f32 %v3934_v27, %v3899_v55 }
 0x3c6   : > { %4546 = vrot.lane.b32.xlu1 %v4529_v23, %s8561_s9  ;;  %v4610_v38 = vmul.f32 %v6314_v18, %v4593_v56  ;;  %v4644_v39 = vmul.f32 %v6331_v22, %v4627_v20  ;;  %v3120_v44 = vmax.f32 %v3104_v31, 0.0  ;;  %v3951_v45 = vadd.f32 %v3935_v32, %v3900_v19  ;;  %v3200_v23 = vld [vmem:[%s6680_s27 + $0x18] sm:$0xff] }
 0x3c7   : > { %v2420_v43 = vpack.c.bf16 %v2407_v30, %v2406_v25  ;;  %v4645_v46 = vmul.f32 %v6331_v22, %v4628_v28  ;;  %v3121_v49 = vmax.f32 %v3105_v35, 0.0  ;;  %v3966_v50 = vadd.f32 %v3950_v37, %v6749_v42  ;;  %v3234_v25 = vld [vmem:[%s6689_s12 + $0x10] sm:$0xff]  ;;  %v3235_v31 = vld [vmem:[%s6689_s12 + $0x18] sm:$0xff]  ;;  %v4060_v37 = vld [vmem:[%s6443_s26 + $0x20] sm:$0xff] }
 0x3c8   : > { %v4660_v52 = vadd.f32 %v4644_v39, %v4609_v33  ;;  %v2502_v53 = vmul.f32 %v6265_v3, %v2485_v34  ;;  %v3967_v55 = vadd.f32 %v3951_v45, %v6753_v48  ;;  %v2503_v19 = vmul.f32 %v6265_v3, %v2486_v40 }
 0x3c9   : > { %2438 = vrot.lane.b32.xlu0 %v2420_v43, %s8557_s4  ;;  %v4661_v56 = vadd.f32 %v4645_v46, %v4610_v38  ;;  %v2537_v20 = vmul.f32 %v6268_v4, %v2520_v41  ;;  %v3135_v26 = vpack.c.bf16 %v3121_v49, %v3120_v44  ;;  %v3982_v27 = vmax.f32 %v3966_v50, 0.0  ;;  %v4061_v38 = vld [vmem:[%s6443_s26 + $0x28] sm:$0xff]  ;;  %v4095_v44 = vld [vmem:[%s6455_s17 + $0x20] sm:$0xff] }
 0x3ca   : > { %v4676_v28 = vadd.f32 %v4660_v52, %v6497_v21  ;;  %v2538_v30 = vmul.f32 %v6268_v4, %v2521_v47  ;;  %v3983_v32 = vmax.f32 %v3967_v55, 0.0  ;;  %v3216_v35 = vmul.f32 %v6345_v29, %v3199_v54  ;;  %v4096_v50 = vld [vmem:[%s6455_s17 + $0x28] sm:$0xff]  ;;  %v2664_v52 = vld [vmem:[%s6468_s1 + $0x20] sm:$0xff] }
 0x3cb   : > { %v4677_v33 = vadd.f32 %v4661_v56, %v6538_v24  ;;  %v2553_v34 = vadd.f32 %v2537_v20, %v2502_v53  ;;  %3152 = vrot.lane.b32.xlu1 %v3135_v26, %s8561_s9  ;;  %v3217_v41 = vmul.f32 %v6345_v29, %v3200_v23  ;;  %v3251_v43 = vmul.f32 %v6365_v36, %v3234_v25  ;;  %v2699_v20 = vld [vmem:[%s6482_s29 + $0x20] sm:$0xff] }
 0x3cc   : > { %v4692_v39 = vmax.f32 %v4676_v28, 0.0  ;;  %v2554_v40 = vadd.f32 %v2538_v30, %v2503_v19  ;;  %v3996_v45 = vpack.c.bf16 %v3983_v32, %v3982_v27  ;;  %v3252_v49 = vmul.f32 %v6365_v36, %v3235_v31  ;;  %v2665_v19 = vld [vmem:[%s6468_s1 + $0x28] sm:$0xff]  ;;  %s8570_s1 = smov 112  }
 0x3cd   : > { %v4693_v46 = vmax.f32 %v4677_v33, 0.0  ;;  %v2569_v47 = vadd.f32 %v2553_v34, %v6749_v42  ;;  %v3267_v54 = vadd.f32 %v3251_v43, %v3216_v35  ;;  %v4077_v55 = vmul.f32 %v6271_v5, %v4060_v37  ;;  %v2700_v28 = vld [vmem:[%s6482_s29 + $0x28] sm:$0xff]  ;;  %v3528_v34 = vld [vmem:[%s6318_s28 + $0x30] sm:$0xff] }
 0x3ce   : > { %v2570_v53 = vadd.f32 %v2554_v40, %v6753_v48  ;;  %v4078_v56 = vmul.f32 %v6271_v5, %v4061_v38  ;;  %4014 = vrot.lane.b32.xlu0 %v3996_v45, %s8562_s11  ;;  %v3268_v26 = vadd.f32 %v3252_v49, %v3217_v41  ;;  %v4112_v27 = vmul.f32 %v6276_v6, %v4095_v44  ;;  %v3529_v40 = vld [vmem:[%s6318_s28 + $0x38] sm:$0xff]  ;;  %v3563_v41 = vld [vmem:[%s6324_s8 + $0x30] sm:$0xff] }
 0x3cf   : > { %v4707_v23 = vpack.c.bf16 %v4693_v46, %v4692_v39  ;;  %v2585_v25 = vmax.f32 %v2569_v47, 0.0  ;;  %v3283_v31 = vadd.f32 %v3267_v54, %v6497_v21  ;;  %v4113_v32 = vmul.f32 %v6276_v6, %v4096_v50  ;;  %v3564_v47 = vld [vmem:[%s6324_s8 + $0x38] sm:$0xff]  ;;  %v4238_v54 = vld [vmem:[%s6509_s24 + $0x20] sm:$0xff] }
 0x3d0   : > { %v2586_v30 = vmax.f32 %v2570_v53, 0.0  ;;  %v2681_v33 = vmul.f32 %v6279_v7, %v2664_v52  ;;  %v3284_v35 = vadd.f32 %v3268_v26, %v6538_v24  ;;  %v4128_v37 = vadd.f32 %v4112_v27, %v4077_v55  ;;  %v6890_v55 = vpop.permute.xlu0 %1914  ;;  %v4273_v26 = vld [vmem:[%s6516_s14 + $0x20] sm:$0xff]  ;;  %v6898_v27 = vpop.permute.xlu1 %1919 }
 0x3d1   : > { %4724 = vrot.lane.b32.xlu1 %v4707_v23, %s8570_s1  ;;  %v2682_v38 = vmul.f32 %v6279_v7, %v2665_v19  ;;  %v2716_v39 = vmul.f32 %v6282_v8, %v2699_v20  ;;  %v3299_v44 = vmax.f32 %v3283_v31, 0.0  ;;  %v4129_v45 = vadd.f32 %v4113_v32, %v4078_v56  ;;  %8571 = vst [vmem:[#allocation51_spill] sm:$0xff] %v6890_v55 }
 0x3d2   : > { %v2599_v43 = vpack.c.bf16 %v2586_v30, %v2585_v25  ;;  %v2717_v46 = vmul.f32 %v6282_v8, %v2700_v28  ;;  %v3300_v49 = vmax.f32 %v3284_v35, 0.0  ;;  %v4144_v50 = vadd.f32 %v4128_v37, %v6749_v42  ;;  %v4239_v25 = vld [vmem:[%s6509_s24 + $0x28] sm:$0xff]  ;;  %8572 = vst [vmem:[#allocation52_spill] sm:$0xff] %v6898_v27  ;;  %s8573_s24 = sld [smem:[#allocation43_spill]] }
 0x3d3   : > { %v2732_v52 = vadd.f32 %v2716_v39, %v2681_v33  ;;  %v3545_v53 = vmul.f32 %v6223_v57, %v3528_v34  ;;  %v4145_v19 = vadd.f32 %v4129_v45, %v6753_v48  ;;  %v3546_v56 = vmul.f32 %v6223_v57, %v3529_v40  ;;  %v4274_v33 = vld [vmem:[%s6516_s14 + $0x28] sm:$0xff]  ;;  %v2129_v39 = vld [vmem:[%s6339_s21 + $0x30] sm:$0xff]  ;;  %v2130_v40 = vld [vmem:[%s6339_s21 + $0x38] sm:$0xff]  ;;  %s8574_s21 = sld [smem:[#allocation15_spill]]  ;;  %s8576_s14 = smov 64  }
 0x3d4   : > { %2617 = vrot.lane.b32.xlu0 %v2599_v43, %s8562_s11  ;;  %v2733_v20 = vadd.f32 %v2717_v46, %v2682_v38  ;;  %v3580_v23 = vmul.f32 %v6230_v58, %v3563_v41  ;;  %v3314_v28 = vpack.c.bf16 %v3300_v49, %v3299_v44  ;;  %v4160_v30 = vmax.f32 %v4144_v50, 0.0  ;;  %v2164_v46 = vld [vmem:[%s6352_s15 + $0x30] sm:$0xff] }
 0x3d5   : > { %v2748_v31 = vadd.f32 %v2732_v52, %v6749_v42  ;;  %v3581_v32 = vmul.f32 %v6230_v58, %v3564_v47  ;;  %v4161_v34 = vmax.f32 %v4145_v19, 0.0  ;;  %v4255_v38 = vmul.f32 %v6285_v9, %v4238_v54  ;;  %v2843_v54 = vld [vmem:[%s6544_s22 + $0x20] sm:$0xff] }
 0x3d6   : > { %v2749_v35 = vadd.f32 %v2733_v20, %v6753_v48  ;;  %v3596_v37 = vadd.f32 %v3580_v23, %v3545_v53  ;;  %3331 = vrot.lane.b32.xlu1 %v3314_v28, %s8570_s1  ;;  %v4256_v44 = vmul.f32 %v6285_v9, %v4239_v25  ;;  %v4290_v45 = vmul.f32 %v6291_v10, %v4273_v26  ;;  %v2165_v53 = vld [vmem:[%s6352_s15 + $0x38] sm:$0xff]  ;;  %v2844_v25 = vld [vmem:[%s6544_s22 + $0x28] sm:$0xff]  ;;  %v6920_v28 = vpop.permute.xlu0 %1924 }
 0x3d7   : > { %v2764_v41 = vmax.f32 %v2748_v31, 0.0  ;;  %v3597_v43 = vadd.f32 %v3581_v32, %v3546_v56  ;;  %v4174_v47 = vpack.c.bf16 %v4161_v34, %v4160_v30  ;;  %v4291_v52 = vmul.f32 %v6291_v10, %v4274_v33  ;;  %8575 = vst [vmem:[#allocation53_spill] sm:$0xff] %v6920_v28 }
 0x3d8   : > { %v2765_v49 = vmax.f32 %v2749_v35, 0.0  ;;  %v3612_v50 = vadd.f32 %v3596_v37, %v6890_v55  ;;  %v4306_v20 = vadd.f32 %v4290_v45, %v4255_v38  ;;  %v2146_v23 = vmul.f32 %v6233_v59, %v2129_v39  ;;  %v2878_v26 = vld [vmem:[%s8573_s24 + $0x20] sm:$0xff]  ;;  %v2879_v34 = vld [vmem:[%s8573_s24 + $0x28] sm:$0xff]  ;;  %v6925_v35 = vpop.permute.xlu1 %1929 }
 0x3d9   : > { %v3613_v19 = vadd.f32 %v3597_v43, %v6898_v27  ;;  %v2147_v56 = vmul.f32 %v6233_v59, %v2130_v40  ;;  %4192 = vrot.lane.b32.xlu0 %v4174_v47, %s8576_s14  ;;  %v4307_v32 = vadd.f32 %v4291_v52, %v4256_v44  ;;  %v2181_v33 = vmul.f32 %v6236_v60, %v2164_v46  ;;  %v3706_v43 = vld [vmem:[%s8574_s21 + $0x30] sm:$0xff]  ;;  %v3707_v47 = vld [vmem:[%s8574_s21 + $0x38] sm:$0xff] }
 0x3da   : > { %v2778_v30 = vpack.c.bf16 %v2765_v49, %v2764_v41  ;;  %v3628_v31 = vmax.f32 %v3612_v50, 0.0  ;;  %8577 = vst [vmem:[#allocation54_spill] sm:$0xff] %v6925_v35  ;;  %v4322_v38 = vadd.f32 %v4306_v20, %v6749_v42  ;;  %v2182_v39 = vmul.f32 %v6236_v60, %v2165_v53  ;;  %v3741_v49 = vld [vmem:[%s8566_s2 + $0x30] sm:$0xff] }
 0x3db   : > { %v3629_v37 = vmax.f32 %v3613_v19, 0.0  ;;  %v2860_v40 = vmul.f32 %v6294_v11, %v2843_v54  ;;  %v4323_v41 = vadd.f32 %v4307_v32, %v6753_v48  ;;  %v2197_v44 = vadd.f32 %v2181_v33, %v2146_v23  ;;  %v3742_v19 = vld [vmem:[%s8566_s2 + $0x38] sm:$0xff] }
 0x3dc   : > { %2796 = vrot.lane.b32.xlu1 %v2778_v30, %s8576_s14  ;;  %v2861_v45 = vmul.f32 %v6294_v11, %v2844_v25  ;;  %v2895_v46 = vmul.f32 %v6297_v12, %v2878_v26  ;;  %v4338_v52 = vmax.f32 %v4322_v38, 0.0  ;;  %v2198_v53 = vadd.f32 %v2182_v39, %v2147_v56  ;;  %v4416_v25 = vld [vmem:[%s6583_s6 + $0x20] sm:$0xff]  ;;  %v6948_v38 = vpop.permute.xlu0 %1934 }
 0x3dd   : > { %v3641_v50 = vpack.c.bf16 %v3629_v37, %v3628_v31  ;;  %v2896_v54 = vmul.f32 %v6297_v12, %v2879_v34  ;;  %v4339_v20 = vmax.f32 %v4323_v41, 0.0  ;;  %v2213_v30 = vadd.f32 %v2197_v44, %v6890_v55  ;;  %v4417_v34 = vld [vmem:[%s6583_s6 + $0x28] sm:$0xff]  ;;  %v4451_v37 = vld [vmem:[%s6593_s3 + $0x20] sm:$0xff]  ;;  %8578 = vst [vmem:[#allocation55_spill] sm:$0xff] %v6948_v38 }
 0x3de   : > { %v2911_v32 = vadd.f32 %v2895_v46, %v2860_v40  ;;  %v3723_v23 = vmul.f32 %v6239_v61, %v3706_v43  ;;  %v2214_v26 = vadd.f32 %v2198_v53, %v6898_v27  ;;  %v3724_v31 = vmul.f32 %v6239_v61, %v3707_v47  ;;  %v4452_v44 = vld [vmem:[%s6593_s3 + $0x28] sm:$0xff]  ;;  %v6953_v46 = vpop.permute.xlu1 %1939  ;;  %v2308_v53 = vld [vmem:[%s8567_s23 + $0x30] sm:$0xff] }
 0x3df   : > { %3660 = vrot.lane.b32.xlu0 %v3641_v50, %s8568_s18  ;;  %v2912_v33 = vadd.f32 %v2896_v54, %v2861_v45  ;;  %v3758_v56 = vmul.f32 %v6247_v62, %v3741_v49  ;;  %v4352_v39 = vpack.c.bf16 %v4339_v20, %v4338_v52  ;;  %v2229_v40 = vmax.f32 %v2213_v30, 0.0  ;;  %8579 = vst [vmem:[#allocation56_spill] sm:$0xff] %v6953_v46  ;;  %v2309_v54 = vld [vmem:[%s8567_s23 + $0x38] sm:$0xff] }
 0x3e0   : > { %v2927_v43 = vadd.f32 %v2911_v32, %v6749_v42  ;;  %v3759_v41 = vmul.f32 %v6247_v62, %v3742_v19  ;;  %v2230_v45 = vmax.f32 %v2214_v26, 0.0  ;;  %v4433_v50 = vmul.f32 %v6300_v13, %v4416_v25  ;;  %v2343_v32 = vld [vmem:[%s8569_s19 + $0x30] sm:$0xff]  ;;  %v4098_v46 = vld [vmem:[%s6455_s17 + $0x38] sm:$0xff] }
 0x3e1   : > { %v2928_v47 = vadd.f32 %v2912_v33, %v6753_v48  ;;  %v3774_v49 = vadd.f32 %v3758_v56, %v3723_v23  ;;  %4370 = vrot.lane.b32.xlu1 %v4352_v39, %s8556_s13  ;;  %v4434_v19 = vmul.f32 %v6300_v13, %v4417_v34  ;;  %v4468_v30 = vmul.f32 %v6305_v15, %v4451_v37  ;;  %v2344_v33 = vld [vmem:[%s8569_s19 + $0x38] sm:$0xff]  ;;  %v3022_v56 = vld [vmem:[%s6616_s10 + $0x20] sm:$0xff] }
 0x3e2   : > { %v2943_v52 = vmax.f32 %v2927_v43, 0.0  ;;  %v3775_v20 = vadd.f32 %v3759_v41, %v3724_v31  ;;  %v2242_v26 = vpack.c.bf16 %v2230_v45, %v2229_v40  ;;  %v4469_v25 = vmul.f32 %v6305_v15, %v4452_v44  ;;  %v3023_v43 = vld [vmem:[%s6616_s10 + $0x28] sm:$0xff]  ;;  %v3057_v37 = vld [vmem:[%s6627_s25 + $0x20] sm:$0xff] }
 0x3e3   : > { %v2944_v24 = vmax.f32 %v2928_v47, 0.0  ;;  %v3790_v23 = vadd.f32 %v3774_v49, %v6890_v55  ;;  %v4484_v21 = vadd.f32 %v4468_v30, %v4433_v50  ;;  %v2325_v31 = vmul.f32 %v6250_v63, %v2308_v53  ;;  %v3058_v47 = vld [vmem:[%s6627_s25 + $0x28] sm:$0xff]  ;;  %v6975_v49 = vpop.permute.xlu0 %1944  ;;  %v3884_v30 = vld [vmem:[%s6402_s16 + $0x30] sm:$0xff] }
 0x3e4   : > { %v3791_v39 = vadd.f32 %v3775_v20, %v6898_v27  ;;  %v2326_v34 = vmul.f32 %v6250_v63, %v2309_v54  ;;  %2261 = vrot.lane.b32.xlu0 %v2242_v26, %s8568_s18  ;;  %v4485_v45 = vadd.f32 %v4469_v25, %v4434_v19  ;;  %v2360_v44 = vmul.f32 %v6253_v0, %v2343_v32  ;;  %v6981_v26 = vpop.permute.xlu1 %1949 }
 0x3e5   : > { %v2957_v40 = vpack.c.bf16 %v2944_v24, %v2943_v52  ;;  %v3806_v41 = vmax.f32 %v3790_v23, 0.0  ;;  %8580 = vst [vmem:[#allocation57_spill] sm:$0xff] %v6975_v49  ;;  %v4500_v20 = vadd.f32 %v4484_v21, %v6749_v42  ;;  %v2361_v53 = vmul.f32 %v6253_v0, %v2344_v33  ;;  %8581 = vst [vmem:[#allocation58_spill] sm:$0xff] %v6981_v26  ;;  %v3885_v23 = vld [vmem:[%s6402_s16 + $0x38] sm:$0xff]  ;;  %v3919_v21 = vld [vmem:[%s6419_s30 + $0x30] sm:$0xff] }
 0x3e6   : > { %v3807_v50 = vmax.f32 %v3791_v39, 0.0  ;;  %v3039_v54 = vmul.f32 %v6308_v16, %v3022_v56  ;;  %v4501_v24 = vadd.f32 %v4485_v45, %v6753_v48  ;;  %v2376_v52 = vadd.f32 %v2360_v44, %v2325_v31  ;;  %v3920_v26 = vld [vmem:[%s6419_s30 + $0x38] sm:$0xff] }
 0x3e7   : > { %2975 = vrot.lane.b32.xlu1 %v2957_v40, %s8556_s13  ;;  %v3040_v19 = vmul.f32 %v6308_v16, %v3023_v43  ;;  %v3074_v32 = vmul.f32 %v6311_v17, %v3057_v37  ;;  %v4516_v33 = vmax.f32 %v4500_v20, 0.0  ;;  %v2377_v56 = vadd.f32 %v2361_v53, %v2326_v34  ;;  %v4594_v43 = vld [vmem:[%s6650_s20 + $0x20] sm:$0xff] }
 0x3e8   : > { %v3819_v25 = vpack.c.bf16 %v3807_v50, %v3806_v41  ;;  %v3075_v39 = vmul.f32 %v6311_v17, %v3058_v47  ;;  %v4517_v49 = vmax.f32 %v4501_v24, 0.0  ;;  %v2392_v40 = vadd.f32 %v2376_v52, %v6890_v55  ;;  %v4595_v47 = vld [vmem:[%s6650_s20 + $0x28] sm:$0xff]  ;;  %v4629_v50 = vld [vmem:[%s6661_s0 + $0x20] sm:$0xff]  ;;  %v7003_v52 = vpop.permute.xlu0 %1954 }
 0x3e9   : > { %v3090_v45 = vadd.f32 %v3074_v32, %v3039_v54  ;;  %v3901_v31 = vmul.f32 %v6256_v1, %v3884_v30  ;;  %v2393_v37 = vadd.f32 %v2377_v56, %v6898_v27  ;;  %v3902_v34 = vmul.f32 %v6256_v1, %v3885_v23  ;;  %v4630_v24 = vld [vmem:[%s6661_s0 + $0x28] sm:$0xff]  ;;  %8582 = vst [vmem:[#allocation59_spill] sm:$0xff] %v7003_v52  ;;  %v2488_v56 = vld [vmem:[%s6427_s7 + $0x38] sm:$0xff] }
 0x3ea   : > { %3838 = vrot.lane.b32.xlu0 %v3819_v25, %s8557_s4  ;;  %v3091_v41 = vadd.f32 %v3075_v39, %v3040_v19  ;;  %v3936_v44 = vmul.f32 %v6260_v2, %v3919_v21  ;;  %v4530_v20 = vpack.c.bf16 %v4517_v49, %v4516_v33  ;;  %v2408_v53 = vmax.f32 %v2392_v40, 0.0  ;;  %v2487_v21 = vld [vmem:[%s6427_s7 + $0x30] sm:$0xff]  ;;  %v7009_v49 = vpop.permute.xlu1 %1959 }
 0x3eb   : > { %v3106_v54 = vadd.f32 %v3090_v45, %v6749_v42  ;;  %v3937_v30 = vmul.f32 %v6260_v2, %v3920_v26  ;;  %v2409_v32 = vmax.f32 %v2393_v37, 0.0  ;;  %v4611_v23 = vmul.f32 %v6314_v18, %v4594_v43  ;;  %8583 = vst [vmem:[#allocation60_spill] sm:$0xff] %v7009_v49  ;;  %v2522_v45 = vld [vmem:[%s6433_s5 + $0x30] sm:$0xff]  ;;  %v3201_v49 = vld [vmem:[%s6680_s27 + $0x20] sm:$0xff] }
 0x3ec   : > { %v3107_v19 = vadd.f32 %v3091_v41, %v6753_v48  ;;  %v3952_v25 = vadd.f32 %v3936_v44, %v3901_v31  ;;  %4548 = vrot.lane.b32.xlu1 %v4530_v20, %s8561_s9  ;;  %v4612_v39 = vmul.f32 %v6314_v18, %v4595_v47  ;;  %v4646_v40 = vmul.f32 %v6331_v22, %v4629_v50  ;;  %v2523_v44 = vld [vmem:[%s6433_s5 + $0x38] sm:$0xff]  ;;  %v3236_v50 = vld [vmem:[%s6689_s12 + $0x20] sm:$0xff] }
 0x3ed   : > { %v3122_v33 = vmax.f32 %v3106_v54, 0.0  ;;  %v3953_v26 = vadd.f32 %v3937_v30, %v3902_v34  ;;  %v2421_v37 = vpack.c.bf16 %v2409_v32, %v2408_v53  ;;  %v4647_v41 = vmul.f32 %v6331_v22, %v4630_v24  ;;  %v3202_v54 = vld [vmem:[%s6680_s27 + $0x28] sm:$0xff]  ;;  %s8584_s27 = sld [smem:[#allocation18_spill]] }
 0x3ee   : > { %v3123_v31 = vmax.f32 %v3107_v19, 0.0  ;;  %v3968_v43 = vadd.f32 %v3952_v25, %v6890_v55  ;;  %v4662_v52 = vadd.f32 %v4646_v40, %v4611_v23  ;;  %v2504_v34 = vmul.f32 %v6265_v3, %v2487_v21  ;;  %v3237_v19 = vld [vmem:[%s6689_s12 + $0x28] sm:$0xff]  ;;  %v4062_v40 = vld [vmem:[%s6443_s26 + $0x30] sm:$0xff] }
 0x3ef   : > { %v3969_v20 = vadd.f32 %v3953_v26, %v6898_v27  ;;  %v2505_v47 = vmul.f32 %v6265_v3, %v2488_v56  ;;  %2440 = vrot.lane.b32.xlu0 %v2421_v37, %s8557_s4  ;;  %v4663_v32 = vadd.f32 %v4647_v41, %v4612_v39  ;;  %v2539_v24 = vmul.f32 %v6268_v4, %v2522_v45  ;;  %v7027_v25 = vpop.permute.xlu0 %3654 }
 0x3f0   : > { %v3136_v53 = vpack.c.bf16 %v3123_v31, %v3122_v33  ;;  %v3984_v30 = vmax.f32 %v3968_v43, 0.0  ;;  %v4678_v26 = vadd.f32 %v4662_v52, %v6749_v42  ;;  %v2540_v21 = vmul.f32 %v6268_v4, %v2523_v44  ;;  %v4063_v43 = vld [vmem:[%s6443_s26 + $0x38] sm:$0xff]  ;;  %v4097_v52 = vld [vmem:[%s6455_s17 + $0x30] sm:$0xff]  ;;  %s8585_s17 = sld [smem:[#allocation39_spill]] }
 0x3f1   : > { %v3985_v23 = vmax.f32 %v3969_v20, 0.0  ;;  %v3218_v56 = vmul.f32 %v6345_v29, %v3201_v49  ;;  %v7033_v37 = vpop.permute.xlu1 %2255  ;;  %v4679_v33 = vadd.f32 %v4663_v32, %v6753_v48  ;;  %v2555_v39 = vadd.f32 %v2539_v24, %v2504_v34 }
 0x3f2   : > { %3154 = vrot.lane.b32.xlu1 %v3136_v53, %s8561_s9  ;;  %v3219_v45 = vmul.f32 %v6345_v29, %v3202_v54  ;;  %v3253_v31 = vmul.f32 %v6365_v36, %v3236_v50  ;;  %v4694_v44 = vmax.f32 %v4678_v26, 0.0  ;;  %v2556_v49 = vadd.f32 %v2540_v21, %v2505_v47  ;;  %v2701_v26 = vld [vmem:[%s6482_s29 + $0x30] sm:$0xff] }
 0x3f3   : > { %v3997_v41 = vpack.c.bf16 %v3985_v23, %v3984_v30  ;;  %v3254_v20 = vmul.f32 %v6365_v36, %v3237_v19  ;;  %v4695_v38 = vmax.f32 %v4679_v33, 0.0  ;;  %v2571_v53 = vadd.f32 %v2555_v39, %v6890_v55  ;;  %v2666_v54 = vld [vmem:[%s8584_s27 + $0x30] sm:$0xff]  ;;  %v7046_v24 = vpop.permute.xlu0 %3832  ;;  %v2667_v23 = vld [vmem:[%s8584_s27 + $0x38] sm:$0xff]  ;;  %s8586_s27 = sld [smem:[#allocation40_spill]] }
 0x3f4   : > { %v3269_v32 = vadd.f32 %v3253_v31, %v3218_v56  ;;  %v4079_v34 = vmul.f32 %v6271_v5, %v4062_v40  ;;  %v2572_v50 = vadd.f32 %v2556_v49, %v6898_v27  ;;  %v4080_v47 = vmul.f32 %v6271_v5, %v4063_v43  ;;  %v2702_v39 = vld [vmem:[%s6482_s29 + $0x38] sm:$0xff]  ;;  %v3530_v49 = vld [vmem:[%s6318_s28 + $0x40] sm:$0xff] }
 0x3f5   : > { %4016 = vrot.lane.b32.xlu0 %v3997_v41, %s8562_s11  ;;  %v3270_v30 = vadd.f32 %v3254_v20, %v3219_v45  ;;  %v4114_v19 = vmul.f32 %v6276_v6, %v4097_v52  ;;  %v4708_v21 = vpack.c.bf16 %v4695_v38, %v4694_v44  ;;  %v2587_v56 = vmax.f32 %v2571_v53, 0.0  ;;  %v7057_v31 = vpop.permute.xlu1 %2434  ;;  %v3531_v20 = vld [vmem:[%s6318_s28 + $0x48] sm:$0xff]  ;;  %s8587_s28 = sld [smem:[#allocation14_spill]] }
 0x3f6   : > { %v3285_v40 = vadd.f32 %v3269_v32, %v6749_v42  ;;  %v4115_v33 = vmul.f32 %v6276_v6, %v4098_v46  ;;  %v2588_v41 = vmax.f32 %v2572_v50, 0.0  ;;  %v2683_v52 = vmul.f32 %v6279_v7, %v2666_v54  ;;  %v3565_v32 = vld [vmem:[%s6324_s8 + $0x40] sm:$0xff]  ;;  %v3566_v54 = vld [vmem:[%s6324_s8 + $0x48] sm:$0xff] }
 0x3f7   : > { %v3286_v45 = vadd.f32 %v3270_v30, %v6753_v48  ;;  %v4130_v43 = vadd.f32 %v4114_v19, %v4079_v34  ;;  %4726 = vrot.lane.b32.xlu1 %v4708_v21, %s8570_s1  ;;  %v2684_v46 = vmul.f32 %v6279_v7, %v2667_v23  ;;  %v2718_v53 = vmul.f32 %v6282_v8, %v2701_v26  ;;  %v4240_v19 = vld [vmem:[%s8585_s17 + $0x30] sm:$0xff] }
 0x3f8   : > { %v3301_v38 = vmax.f32 %v3285_v40, 0.0  ;;  %v4131_v44 = vadd.f32 %v4115_v33, %v4080_v47  ;;  %v2600_v50 = vpack.c.bf16 %v2588_v41, %v2587_v56  ;;  %v2719_v34 = vmul.f32 %v6282_v8, %v2702_v39  ;;  %v4241_v40 = vld [vmem:[%s8585_s17 + $0x38] sm:$0xff] }
 0x3f9   : > { %v3302_v42 = vmax.f32 %v3286_v45, 0.0  ;;  %v4146_v30 = vadd.f32 %v4130_v43, %v6890_v55  ;;  %v2734_v48 = vadd.f32 %v2718_v53, %v2683_v52  ;;  %v3547_v47 = vmul.f32 %v6223_v57, %v3530_v49  ;;  %v4275_v26 = vld [vmem:[%s8586_s27 + $0x30] sm:$0xff]  ;;  %v7076_v33 = vpop.permute.xlu0 %4010  ;;  %v4276_v43 = vld [vmem:[%s8586_s27 + $0x38] sm:$0xff] }
 0x3fa   : > { %v4147_v21 = vadd.f32 %v4131_v44, %v6898_v27  ;;  %v3548_v23 = vmul.f32 %v6223_v57, %v3531_v20  ;;  %2619 = vrot.lane.b32.xlu0 %v2600_v50, %s8562_s11  ;;  %v2735_v39 = vadd.f32 %v2719_v34, %v2684_v46  ;;  %v3582_v45 = vmul.f32 %v6230_v58, %v3565_v32 }
 0x3fb   : > { %v3315_v56 = vpack.c.bf16 %v3302_v42, %v3301_v38  ;;  %v4162_v41 = vmax.f32 %v4146_v30, 0.0  ;;  %v2750_v44 = vadd.f32 %v2734_v48, %v6890_v55  ;;  %v3583_v49 = vmul.f32 %v6230_v58, %v3566_v54  ;;  %v2131_v53 = vld [vmem:[%s8587_s28 + $0x40] sm:$0xff]  ;;  %v2132_v50 = vld [vmem:[%s8587_s28 + $0x48] sm:$0xff]  ;;  %s7100_s28 = sld [smem:[#allocation4 + $0x8]] }
 0x3fc   : > { %v4163_v52 = vmax.f32 %v4147_v21, 0.0  ;;  %v4257_v20 = vmul.f32 %v6285_v9, %v4240_v19  ;;  %v7085_v57 = vpop.permute.xlu1 %2613  ;;  %v2751_v42 = vadd.f32 %v2735_v39, %v6898_v27  ;;  %v3598_v38 = vadd.f32 %v3582_v45, %v3547_v47  ;;  %v2166_v48 = vld [vmem:[%s6352_s15 + $0x40] sm:$0xff]  ;;  %v2167_v21 = vld [vmem:[%s6352_s15 + $0x48] sm:$0xff] }
 0x3fd   : > { %3333 = vrot.lane.b32.xlu1 %v3315_v56, %s8570_s1  ;;  %v4258_v46 = vmul.f32 %v6285_v9, %v4241_v40  ;;  %v4292_v32 = vmul.f32 %v6291_v10, %v4275_v26  ;;  %v2766_v34 = vmax.f32 %v2750_v44, 0.0  ;;  %v3599_v54 = vadd.f32 %v3583_v49, %v3548_v23  ;;  %v2845_v26 = vld [vmem:[%s6544_s22 + $0x30] sm:$0xff] }
 0x3fe   : > { %v4175_v30 = vpack.c.bf16 %v4163_v52, %v4162_v41  ;;  %v4293_v19 = vmul.f32 %v6291_v10, %v4276_v43  ;;  %v7095_v58 = vpop.permute.xlu0 %4188  ;;  %v2767_v56 = vmax.f32 %v2751_v42, 0.0  ;;  %v3614_v39 = vadd.f32 %v3598_v38, %v6920_v28  ;;  %v2846_v52 = vld [vmem:[%s6544_s22 + $0x38] sm:$0xff]  ;;  %v2880_v44 = vld [vmem:[%s8573_s24 + $0x30] sm:$0xff]  ;;  %s7117_s22 = sld [smem:[#allocation4 + $0x88]] }
 0x3ff   : > { %v4308_v47 = vadd.f32 %v4292_v32, %v4257_v20  ;;  %v2148_v40 = vmul.f32 %v6233_v59, %v2131_v53  ;;  %v3615_v23 = vadd.f32 %v3599_v54, %v6925_v35  ;;  %v2149_v45 = vmul.f32 %v6233_v59, %v2132_v50  ;;  %v2881_v38 = vld [vmem:[%s8573_s24 + $0x38] sm:$0xff]  ;;  %s7123_s24 = sld [smem:[#allocation4]] }
 0x400   : > { %4194 = vrot.lane.b32.xlu0 %v4175_v30, %s8576_s14  ;;  %v4309_v41 = vadd.f32 %v4293_v19, %v4258_v46  ;;  %v2183_v43 = vmul.f32 %v6236_v60, %v2166_v48  ;;  %v2779_v49 = vpack.c.bf16 %v2767_v56, %v2766_v34  ;;  %v3630_v20 = vmax.f32 %v3614_v39, 0.0  ;;  %v7111_v32 = vpop.permute.xlu1 %2792  ;;  %v3708_v48 = vld [vmem:[%s8574_s21 + $0x40] sm:$0xff]  ;;  %v3709_v19 = vld [vmem:[%s8574_s21 + $0x48] sm:$0xff]  ;;  %s7129_s21 = sld [smem:[#allocation4 + $0x80]] }
 0x401   : > { %v4324_v53 = vadd.f32 %v4308_v47, %v6890_v55  ;;  %v2184_v42 = vmul.f32 %v6236_v60, %v2167_v21  ;;  %v3631_v30 = vmax.f32 %v3615_v23, 0.0  ;;  %v2862_v50 = vmul.f32 %v6294_v11, %v2845_v26  ;;  %v3743_v47 = vld [vmem:[%s8566_s2 + $0x40] sm:$0xff] }
 0x402   : > { %v4325_v46 = vadd.f32 %v4309_v41, %v6898_v27  ;;  %v2199_v54 = vadd.f32 %v2183_v43, %v2148_v40  ;;  %2798 = vrot.lane.b32.xlu1 %v2779_v49, %s8576_s14  ;;  %v2863_v21 = vmul.f32 %v6294_v11, %v2846_v52  ;;  %v2897_v39 = vmul.f32 %v6297_v12, %v2880_v44  ;;  %v3744_v43 = vld [vmem:[%s8566_s2 + $0x48] sm:$0xff]  ;;  %v4418_v49 = vld [vmem:[%s6583_s6 + $0x30] sm:$0xff] }
 0x403   : > { %v4340_v34 = vmax.f32 %v4324_v53, 0.0  ;;  %v2200_v56 = vadd.f32 %v2184_v42, %v2149_v45  ;;  %v3642_v40 = vpack.c.bf16 %v3631_v30, %v3630_v20  ;;  %v2898_v41 = vmul.f32 %v6297_v12, %v2881_v38  ;;  %v7131_v45 = vpop.permute.xlu0 %3656  ;;  %v4419_v42 = vld [vmem:[%s6583_s6 + $0x38] sm:$0xff]  ;;  %v4453_v30 = vld [vmem:[%s6593_s3 + $0x30] sm:$0xff]  ;;  %s7158_s6 = sld [smem:[#allocation6 + $0x88]] }
 0x404   : > { %v4341_v26 = vmax.f32 %v4325_v46, 0.0  ;;  %v2215_v23 = vadd.f32 %v2199_v54, %v6920_v28  ;;  %8588 = vst [vmem:[#allocation61_spill] sm:$0xff] %v7131_v45  ;;  %v2913_v44 = vadd.f32 %v2897_v39, %v2862_v50  ;;  %v3725_v53 = vmul.f32 %v6239_v61, %v3708_v48  ;;  %v4454_v12 = vld [vmem:[%s6593_s3 + $0x38] sm:$0xff]  ;;  %s7154_s3 = sld [smem:[#allocation6 + $0x8]] }
 0x405   : > { %v2216_v52 = vadd.f32 %v2200_v56, %v6925_v35  ;;  %v3726_v20 = vmul.f32 %v6239_v61, %v3709_v19  ;;  %3662 = vrot.lane.b32.xlu0 %v3642_v40, %s8568_s18  ;;  %v2914_v54 = vadd.f32 %v2898_v41, %v2863_v21  ;;  %v3760_v45 = vmul.f32 %v6247_v62, %v3743_v47  ;;  %v2310_v19 = vld [vmem:[%s8567_s23 + $0x40] sm:$0xff] }
 0x406   : > { %v4353_v38 = vpack.c.bf16 %v4341_v26, %v4340_v34  ;;  %v2231_v46 = vmax.f32 %v2215_v23, 0.0  ;;  %v2929_v50 = vadd.f32 %v2913_v44, %v6890_v55  ;;  %v3761_v39 = vmul.f32 %v6247_v62, %v3744_v43  ;;  %v2311_v26 = vld [vmem:[%s8567_s23 + $0x48] sm:$0xff]  ;;  %v2345_v23 = vld [vmem:[%s8569_s19 + $0x40] sm:$0xff]  ;;  %s7178_s23 = sld [smem:[#allocation6 + $0x80]] }
 0x407   : > { %v2232_v56 = vmax.f32 %v2216_v52, 0.0  ;;  %v4435_v48 = vmul.f32 %v6300_v13, %v4418_v49  ;;  %v7146_v61 = vpop.permute.xlu1 %4366  ;;  %v2930_v34 = vadd.f32 %v2914_v54, %v6898_v27  ;;  %v3776_v21 = vadd.f32 %v3760_v45, %v3725_v53  ;;  %v2346_v44 = vld [vmem:[%s8569_s19 + $0x48] sm:$0xff]  ;;  %s7172_s19 = sld [smem:[#allocation6]] }
 0x408   : > { %4372 = vrot.lane.b32.xlu1 %v4353_v38, %s8556_s13  ;;  %v4436_v47 = vmul.f32 %v6300_v13, %v4419_v42  ;;  %v4470_v40 = vmul.f32 %v6305_v15, %v4453_v30  ;;  %v2945_v43 = vmax.f32 %v2929_v50, 0.0  ;;  %v3777_v49 = vadd.f32 %v3761_v39, %v3726_v20  ;;  %v3025_v50 = vld [vmem:[%s6616_s10 + $0x38] sm:$0xff]  ;;  %v3059_v39 = vld [vmem:[%s6627_s25 + $0x30] sm:$0xff] }
 0x409   : > { %v2243_v41 = vpack.c.bf16 %v2232_v56, %v2231_v46  ;;  %v4471_v52 = vmul.f32 %v6305_v15, %v4454_v12  ;;  %v7160_v45 = vpop.permute.xlu0 %2257  ;;  %v2946_v53 = vmax.f32 %v2930_v34, 0.0  ;;  %v3792_v42 = vadd.f32 %v3776_v21, %v6920_v28  ;;  %v3024_v46 = vld [vmem:[%s6616_s10 + $0x30] sm:$0xff]  ;;  %v3922_v15 = vld [vmem:[%s6419_s30 + $0x48] sm:$0xff] }
 0x40a   : > { %8589 = vst [vmem:[#allocation62_spill] sm:$0xff] %v7160_v45  ;;  %v4486_v30 = vadd.f32 %v4470_v40, %v4435_v48  ;;  %v2327_v38 = vmul.f32 %v6250_v63, %v2310_v19  ;;  %v3793_v12 = vadd.f32 %v3777_v49, %v6925_v35  ;;  %v2328_v54 = vmul.f32 %v6250_v63, %v2311_v26  ;;  %v3060_v40 = vld [vmem:[%s6627_s25 + $0x38] sm:$0xff]  ;;  %s8594_s25 = sshll.u32 %s7117_s22, 7  ;;  %s8606_s22 = sld [smem:[#allocation19_spill]] }
 0x40b   : > { %2263 = vrot.lane.b32.xlu0 %v2243_v41, %s8568_s18  ;;  %v4487_v20 = vadd.f32 %v4471_v52, %v4436_v47  ;;  %v2362_v56 = vmul.f32 %v6253_v0, %v2345_v23  ;;  %v2958_v48 = vpack.c.bf16 %v2946_v53, %v2945_v43  ;;  %v3808_v19 = vmax.f32 %v3792_v42, 0.0  ;;  %s8590_s18 = sshll.u32 %s7100_s28, 7  ;;  %s7204_s10 = scalar_lea.vmem [#allocation2], %s8594_s25 }
 0x40c   : > { %v4502_v34 = vadd.f32 %v4486_v30, %v6890_v55  ;;  %v2363_v21 = vmul.f32 %v6253_v0, %v2346_v44  ;;  %v7181_v47 = vpop.permute.xlu1 %2971  ;;  %v3809_v26 = vmax.f32 %v3793_v12, 0.0  ;;  %v3041_v49 = vmul.f32 %v6308_v16, %v3024_v46  ;;  %s7192_s2 = scalar_lea.vmem [#allocation2], %s8590_s18  ;;  %8595 = sst [smem:[#allocation65_spill]] %s7204_s10  ;;  %v3921_v0 = vld [vmem:[%s6419_s30 + $0x40] sm:$0xff] }
 0x40d   : > { %v4503_v23 = vadd.f32 %v4487_v20, %v6898_v27  ;;  %v2378_v41 = vadd.f32 %v2362_v56, %v2327_v38  ;;  %2977 = vrot.lane.b32.xlu1 %v2958_v48, %s8556_s13  ;;  %v3042_v44 = vmul.f32 %v6308_v16, %v3025_v50  ;;  %v3076_v53 = vmul.f32 %v6311_v17, %v3059_v39  ;;  %8591 = sst [smem:[#allocation39_spill]] %s7192_s2  ;;  %v3376_v38 = vld [vmem:[%s7192_s2] sm:$0xff]  ;;  %v3377_v46 = vld [vmem:[%s7192_s2 + $0x8] sm:$0xff]  ;;  %s8597_s28 = sshll.u32 %s7123_s24, 7 }
 0x40e   : > { %v4518_v43 = vmax.f32 %v4502_v34, 0.0  ;;  %v2379_v52 = vadd.f32 %v2363_v21, %v2328_v54  ;;  %v3820_v42 = vpack.c.bf16 %v3809_v26, %v3808_v19  ;;  %v3077_v12 = vmul.f32 %v6311_v17, %v3060_v40  ;;  %v7196_v20 = vpop.permute.xlu0 %3834  ;;  %v3411_v39 = vld [vmem:[%s7204_s10] sm:$0xff]  ;;  %v3412_v48 = vld [vmem:[%s7204_s10 + $0x8] sm:$0xff]  ;;  %s7214_s18 = scalar_lea.vmem [#allocation2], %s8597_s28  ;;  %s8604_s24 = sld [smem:[#allocation17_spill]] }
 0x40f   : > { %v4519_v30 = vmax.f32 %v4503_v23, 0.0  ;;  %v2394_v45 = vadd.f32 %v2378_v41, %v6920_v28  ;;  %8592 = vst [vmem:[#allocation63_spill] sm:$0xff] %v7196_v20  ;;  %v3092_v56 = vadd.f32 %v3076_v53, %v3041_v49  ;;  %v7200_v50 = vstv %s7154_s3  ;;  %8598 = sst [smem:[#allocation67_spill]] %s7214_s18  ;;  %v1976_v26 = vld [vmem:[%s7214_s18] sm:$0xff]  ;;  %s8599_s3 = sshll.u32 %s7129_s21, 7 }
 0x410   : > { %v2395_v54 = vadd.f32 %v2379_v52, %v6925_v35  ;;  %8593 = vst [vmem:[#allocation64_spill] sm:$0xff] %v7200_v50  ;;  %3840 = vrot.lane.b32.xlu0 %v3820_v42, %s8557_s4  ;;  %v3093_v21 = vadd.f32 %v3077_v12, %v3042_v44  ;;  %v7210_v40 = vstv %s7158_s6  ;;  %v3393_v49 = vmul.f32 %v7200_v50, %v3376_v38  ;;  %s7223_s25 = scalar_lea.vmem [#allocation2], %s8599_s3  ;;  %s8603_s21 = sld [smem:[#allocation48_spill]] }
 0x411   : > { %v4531_v19 = vpack.c.bf16 %v4519_v30, %v4518_v43  ;;  %v2410_v34 = vmax.f32 %v2394_v45, 0.0  ;;  %8596 = vst [vmem:[#allocation66_spill] sm:$0xff] %v7210_v40  ;;  %v3108_v41 = vadd.f32 %v3092_v56, %v6890_v55  ;;  %v3394_v43 = vmul.f32 %v7200_v50, %v3377_v46  ;;  %v1977_v45 = vld [vmem:[%s7214_s18 + $0x8] sm:$0xff]  ;;  %8600 = sst [smem:[#allocation68_spill]] %s7223_s25  ;;  %v2011_v52 = vld [vmem:[%s7223_s25] sm:$0xff]  ;;  %v7227_v53 = vpop.permute.xlu1 %4544  ;;  %s8605_s6 = sld [smem:[#allocation18_spill]] }
 0x412   : > { %v2411_v23 = vmax.f32 %v2395_v54, 0.0  ;;  %v2012_v44 = vld [vmem:[%s7223_s25 + $0x8] sm:$0xff]  ;;  %8601 = vst [vmem:[#allocation69_spill] sm:$0xff] %v7227_v53  ;;  %v3109_v42 = vadd.f32 %v3093_v21, %v6898_v27  ;;  %v3428_v30 = vmul.f32 %v7210_v40, %v3411_v39  ;;  %v3429_v12 = vmul.f32 %v7210_v40, %v3412_v48  ;;  %v3886_v46 = vld [vmem:[%s6402_s16 + $0x40] sm:$0xff]  ;;  %v4596_v48 = vld [vmem:[%s6650_s20 + $0x30] sm:$0xff]  ;;  %s8614_s28 = sld [smem:[#allocation43_spill]] }
 0x413   : > { %4550 = vrot.lane.b32.xlu1 %v4531_v19, %s8561_s9  ;;  %v7234_v38 = vstv %s7172_s19  ;;  %v3887_v54 = vld [vmem:[%s6402_s16 + $0x48] sm:$0xff]  ;;  %v3124_v17 = vmax.f32 %v3108_v41, 0.0  ;;  %v7239_v16 = vstv %s7178_s23  ;;  %s8609_s19 = sld [smem:[#allocation14_spill]]  ;;  %s8613_s23 = sld [smem:[#allocation42_spill]] }
 0x414   : > { %v2422_v56 = vpack.c.bf16 %v2411_v23, %v2410_v34  ;;  %v1993_v19 = vmul.f32 %v7234_v38, %v1976_v26  ;;  %v3125_v21 = vmax.f32 %v3109_v42, 0.0  ;;  %v3444_v63 = vadd.f32 %v3428_v30, %v3393_v49  ;;  %v7246_v20 = vpop.permute.xlu0 %2436  ;;  %v4597_v49 = vld [vmem:[%s6650_s20 + $0x38] sm:$0xff]  ;;  %s8617_s3 = sld [smem:[#allocation15_spill]] }
 0x415   : > { %v3445_v53 = vadd.f32 %v3429_v12, %v3394_v43  ;;  %v1994_v39 = vmul.f32 %v7234_v38, %v1977_v45  ;;  %8602 = vst [vmem:[#allocation70_spill] sm:$0xff] %v7246_v20  ;;  %v2028_v34 = vmul.f32 %v7239_v16, %v2011_v52  ;;  %v2029_v23 = vmul.f32 %v7239_v16, %v2012_v44  ;;  %v4631_v12 = vld [vmem:[%s6661_s0 + $0x30] sm:$0xff] }
 0x416   : > { %2442 = vrot.lane.b32.xlu0 %v2422_v56, %s8557_s4  ;;  %v3903_v26 = vmul.f32 %v6256_v1, %v3886_v46  ;;  %v3904_v41 = vmul.f32 %v6256_v1, %v3887_v54  ;;  %v3137_v42 = vpack.c.bf16 %v3125_v21, %v3124_v17  ;;  %v3460_v43 = vadd.f32 %v3444_v63, %v6302_v14  ;;  %v4632_v54 = vld [vmem:[%s6661_s0 + $0x38] sm:$0xff] }
 0x417   : > { %v3461_v45 = vadd.f32 %v3445_v53, %v6392_v51  ;;  %v3938_v30 = vmul.f32 %v6260_v2, %v3921_v0  ;;  %v7258_v56 = vpop.permute.xlu1 %3150  ;;  %v2044_v52 = vadd.f32 %v2028_v34, %v1993_v19  ;;  %v2045_v20 = vadd.f32 %v2029_v23, %v1994_v39  ;;  %v2489_v39 = vld [vmem:[%s6427_s7 + $0x40] sm:$0xff] }
 0x418   : > { %v3939_v44 = vmul.f32 %v6260_v2, %v3922_v15  ;;  %v4613_v46 = vmul.f32 %v6314_v18, %v4596_v48  ;;  %3156 = vrot.lane.b32.xlu1 %v3137_v42, %s8561_s9  ;;  %v3476_v63 = vmax.f32 %v3460_v43, 0.0  ;;  %v4614_v0 = vmul.f32 %v6314_v18, %v4597_v49  ;;  %v2490_v48 = vld [vmem:[%s6427_s7 + $0x48] sm:$0xff] }
 0x419   : > { %v3477_v17 = vmax.f32 %v3461_v45, 0.0  ;;  %v3954_v53 = vadd.f32 %v3938_v30, %v3903_v26  ;;  %v2060_v21 = vadd.f32 %v2044_v52, %v6302_v14  ;;  %v2061_v1 = vadd.f32 %v2045_v20, %v6392_v51  ;;  %v2524_v26 = vld [vmem:[%s6433_s5 + $0x40] sm:$0xff]  ;;  %v3203_v45 = vld [vmem:[%s8603_s21 + $0x30] sm:$0xff]  ;;  %v3204_v30 = vld [vmem:[%s8603_s21 + $0x38] sm:$0xff] }
 0x41a   : > { %v3955_v19 = vadd.f32 %v3939_v44, %v3904_v41  ;;  %v4648_v15 = vmul.f32 %v6331_v22, %v4631_v12  ;;  %v4649_v42 = vmul.f32 %v6331_v22, %v4632_v54  ;;  %v7273_v49 = vpop.permute.xlu0 %4012  ;;  %v2525_v41 = vld [vmem:[%s6433_s5 + $0x48] sm:$0xff]  ;;  %v2506_v44 = vmul.f32 %v6265_v3, %v2489_v39 }
 0x41b   : > { %v3492_v34 = vpack.c.bf16 %v3477_v17, %v3476_v63  ;;  %v3970_v23 = vadd.f32 %v3954_v53, %v6920_v28  ;;  %v2076_v14 = vmax.f32 %v2060_v21, 0.0  ;;  %v2077_v43 = vmax.f32 %v2061_v1, 0.0  ;;  %v3238_v63 = vld [vmem:[%s6689_s12 + $0x30] sm:$0xff] }
 0x41c   : > { %v3971_v51 = vadd.f32 %v3955_v19, %v6925_v35  ;;  %v4664_v20 = vadd.f32 %v4648_v15, %v4613_v46  ;;  %v4665_v52 = vadd.f32 %v4649_v42, %v4614_v0  ;;  %v2507_v54 = vmul.f32 %v6265_v3, %v2490_v48  ;;  %v7283_v17 = vpop.permute.xlu1 %4722  ;;  %v3239_v0 = vld [vmem:[%s6689_s12 + $0x38] sm:$0xff]  ;;  %v4064_v48 = vld [vmem:[%s6443_s26 + $0x40] sm:$0xff] }
 0x41d   : > { %3500 = vst.msk [vmem:[#allocation3 + $0x8] sm:$0xff] %vm721_vm2, %v3492_v34  ;;  %v3986_v12 = vmax.f32 %v3970_v23, 0.0  ;;  %v2092_v1 = vpack.c.bf16 %v2077_v43, %v2076_v14  ;;  %v2541_v21 = vmul.f32 %v6268_v4, %v2524_v26  ;;  %v2542_v15 = vmul.f32 %v6268_v4, %v2525_v41  ;;  %v4065_v34 = vld [vmem:[%s6443_s26 + $0x48] sm:$0xff]  ;;  %v4099_v43 = vld [vmem:[%s8604_s24 + $0x40] sm:$0xff] }
 0x41e   : > { %3678 = vst.msk [vmem:[#allocation3 + $0x8] sm:$0xff] %vm2279_vm3, %v7027_v25  ;;  %v3987_v46 = vmax.f32 %v3971_v51, 0.0  ;;  %v4680_v53 = vadd.f32 %v4664_v20, %v6890_v55  ;;  %v4681_v19 = vadd.f32 %v4665_v52, %v6898_v27  ;;  %v3220_v39 = vmul.f32 %v6345_v29, %v3203_v45  ;;  %v4100_v41 = vld [vmem:[%s8604_s24 + $0x48] sm:$0xff]  ;;  %v2668_v45 = vld [vmem:[%s8605_s6 + $0x40] sm:$0xff] }
 0x41f   : > { %3856 = vst.msk [vmem:[#allocation3 + $0x8] sm:$0xff] %vm2458_vm4, %v7046_v24  ;;  %v3221_v25 = vmul.f32 %v6345_v29, %v3204_v30  ;;  %v2557_v26 = vadd.f32 %v2541_v21, %v2506_v44  ;;  %v3255_v14 = vmul.f32 %v6365_v36, %v3238_v63  ;;  %v2558_v51 = vadd.f32 %v2542_v15, %v2507_v54  ;;  %v7306_v30 = vpop.permute.xlu0 %2615  ;;  %v2669_v54 = vld [vmem:[%s8605_s6 + $0x48] sm:$0xff]  ;;  %v2703_v21 = vld [vmem:[%s6482_s29 + $0x40] sm:$0xff] }
 0x420   : > { %2101 = vst.msk [vmem:[#allocation3] sm:$0xff] %vm721_vm2, %v2092_v1  ;;  %v3998_v23 = vpack.c.bf16 %v3987_v46, %v3986_v12  ;;  %v4696_v42 = vmax.f32 %v4680_v53, 0.0  ;;  %v4697_v24 = vmax.f32 %v4681_v19, 0.0  ;;  %v3256_v20 = vmul.f32 %v6365_v36, %v3239_v0 }
 0x421   : > { %2280 = vst.msk [vmem:[#allocation3] sm:$0xff] %vm2279_vm3, %v7033_v37  ;;  %v2573_v12 = vadd.f32 %v2557_v26, %v6920_v28  ;;  %v3271_v52 = vadd.f32 %v3255_v14, %v3220_v39  ;;  %v4081_v37 = vmul.f32 %v6271_v5, %v4064_v48  ;;  %v4082_v44 = vmul.f32 %v6271_v5, %v4065_v34 }
 0x422   : > { %4018 = vrot.lane.b32.xlu0 %v3998_v23, %s8562_s11  ;;  %2459 = vst.msk [vmem:[#allocation3] sm:$0xff] %vm2458_vm4, %v7057_v31  ;;  %v7317_v63 = vpop.permute.xlu1 %3329  ;;  %v4709_v1 = vpack.c.bf16 %v4697_v24, %v4696_v42  ;;  %v2574_v46 = vadd.f32 %v2558_v51, %v6925_v35  ;;  %v3272_v53 = vadd.f32 %v3256_v20, %v3221_v25  ;;  %v3532_v23 = vld [vmem:[%s8606_s22 + $0x50] sm:$0xff]  ;;  %v3533_v24 = vld [vmem:[%s8606_s22 + $0x58] sm:$0xff] }
 0x423   : > { %4034 = vst.msk [vmem:[#allocation3 + $0x8] sm:$0xff] %vm2637_vm5, %v7076_v33  ;;  %2638 = vst.msk [vmem:[#allocation3] sm:$0xff] %vm2637_vm5, %v7085_v57  ;;  %v4116_v31 = vmul.f32 %v6276_v6, %v4099_v43  ;;  %v2704_v33 = vld [vmem:[%s6482_s29 + $0x48] sm:$0xff]  ;;  %v2589_v0 = vmax.f32 %v2573_v12, 0.0  ;;  %v3287_v19 = vadd.f32 %v3271_v52, %v6890_v55  ;;  %v4117_v15 = vmul.f32 %v6276_v6, %v4100_v41  ;;  %v3567_v51 = vld [vmem:[%s6324_s8 + $0x50] sm:$0xff] }
 0x424   : > { %v2685_v39 = vmul.f32 %v6279_v7, %v2668_v45  ;;  %4728 = vrot.lane.b32.xlu1 %v4709_v1, %s8570_s1  ;;  %v2590_v25 = vmax.f32 %v2574_v46, 0.0  ;;  %v3288_v48 = vadd.f32 %v3272_v53, %v6898_v27  ;;  %v2686_v34 = vmul.f32 %v6279_v7, %v2669_v54  ;;  %v3568_v12 = vld [vmem:[%s6324_s8 + $0x58] sm:$0xff]  ;;  %4212 = vst.msk [vmem:[#allocation3 + $0x8] sm:$0xff] %vm2816_vm6, %v7095_v58  ;;  %v8607_v1 = vld [vmem:[#allocation21_spill] sm:$0xff] }
 0x425   : > { %v4132_v57 = vadd.f32 %v4116_v31, %v4081_v37  ;;  %v3303_v42 = vmax.f32 %v3287_v19, 0.0  ;;  %v4133_v26 = vadd.f32 %v4117_v15, %v4082_v44  ;;  %v2720_v14 = vmul.f32 %v6282_v8, %v2703_v21  ;;  %v7338_v52 = vpop.permute.xlu0 %4190  ;;  %2817 = vst.msk [vmem:[#allocation3] sm:$0xff] %vm2816_vm6, %v7111_v32  ;;  %v4242_v53 = vld [vmem:[%s8585_s17 + $0x40] sm:$0xff]  ;;  %v4243_v31 = vld [vmem:[%s8585_s17 + $0x48] sm:$0xff]  ;;  %v2169_v27 = vld [vmem:[%s6352_s15 + $0x58] sm:$0xff] }
 0x426   : > { %v2721_v43 = vmul.f32 %v6282_v8, %v2704_v33  ;;  %v2601_v20 = vpack.c.bf16 %v2590_v25, %v2589_v0  ;;  %v3304_v41 = vmax.f32 %v3288_v48, 0.0  ;;  %v3549_v46 = vmul.f32 %v8607_v1, %v3532_v23  ;;  %v4277_v21 = vld [vmem:[%s8586_s27 + $0x40] sm:$0xff]  ;;  %v8608_v15 = vld [vmem:[#allocation23_spill] sm:$0xff]  ;;  %v3378_v23 = vld [vmem:[%s7192_s2 + $0x10] sm:$0xff]  ;;  %4390 = vst.msk [vmem:[#allocation3 + $0x8] sm:$0xff] %vm2995_vm7, %v7146_v61 }
 0x427   : > { %v4148_v45 = vadd.f32 %v4132_v57, %v6920_v28  ;;  %v4149_v37 = vadd.f32 %v4133_v26, %v6925_v35  ;;  %v2736_v44 = vadd.f32 %v2720_v14, %v2685_v39  ;;  %v7349_v33 = vpop.permute.xlu1 %2794  ;;  %v3550_v58 = vmul.f32 %v8607_v1, %v3533_v24  ;;  %v3379_v24 = vld [vmem:[%s7192_s2 + $0x18] sm:$0xff]  ;;  %2996 = vst.msk [vmem:[#allocation3] sm:$0xff] %vm2995_vm7, %v7181_v47  ;;  %v8620_v55 = vld [vmem:[#allocation34_spill] sm:$0xff] }
 0x428   : > { %v2737_v54 = vadd.f32 %v2721_v43, %v2686_v34  ;;  %2621 = vrot.lane.b32.xlu0 %v2601_v20, %s8562_s11  ;;  %v3316_v0 = vpack.c.bf16 %v3304_v41, %v3303_v42  ;;  %v3584_v39 = vmul.f32 %v8608_v15, %v3567_v51  ;;  %v3585_v57 = vmul.f32 %v8608_v15, %v3568_v12  ;;  %v4278_v34 = vld [vmem:[%s8586_s27 + $0x48] sm:$0xff]  ;;  %v3413_v51 = vld [vmem:[%s7204_s10 + $0x10] sm:$0xff]  ;;  %v3414_v12 = vld [vmem:[%s7204_s10 + $0x18] sm:$0xff] }
 0x429   : > { %v4164_v19 = vmax.f32 %v4148_v45, 0.0  ;;  %v4165_v25 = vmax.f32 %v4149_v37, 0.0  ;;  %v2752_v32 = vadd.f32 %v2736_v44, %v6920_v28  ;;  %v4259_v26 = vmul.f32 %v6285_v9, %v4242_v53  ;;  %v8610_v44 = vld [vmem:[#allocation55_spill] sm:$0xff]  ;;  %v1979_v47 = vld [vmem:[%s7214_s18 + $0x18] sm:$0xff]  ;;  %3175 = vst.msk [vmem:[#allocation3] sm:$0xff] %vm3174_vm8, %v7258_v56  ;;  %v8636_v56 = vld [vmem:[#allocation36_spill] sm:$0xff] }
 0x42a   : > { %v2753_v48 = vadd.f32 %v2737_v54, %v6925_v35  ;;  %3335 = vrot.lane.b32.xlu1 %v3316_v0, %s8570_s1  ;;  %v3600_v42 = vadd.f32 %v3584_v39, %v3549_v46  ;;  %v4260_v14 = vmul.f32 %v6285_v9, %v4243_v31  ;;  %v4294_v43 = vmul.f32 %v6291_v10, %v4277_v21  ;;  %v2133_v31 = vld [vmem:[%s8609_s19 + $0x50] sm:$0xff]  ;;  %v7370_v39 = vpop.permute.xlu0 %3658 }
 0x42b   : > { %v4176_v20 = vpack.c.bf16 %v4165_v25, %v4164_v19  ;;  %v2768_v41 = vmax.f32 %v2752_v32, 0.0  ;;  %v3601_v37 = vadd.f32 %v3585_v57, %v3550_v58  ;;  %v4295_v0 = vmul.f32 %v6291_v10, %v4278_v34  ;;  %8611 = vst [vmem:[#allocation21_spill] sm:$0xff] %v7370_v39  ;;  %v8612_v25 = vld [vmem:[#allocation56_spill] sm:$0xff]  ;;  %v2134_v57 = vld [vmem:[%s8609_s19 + $0x58] sm:$0xff]  ;;  %v2013_v39 = vld [vmem:[%s7223_s25 + $0x10] sm:$0xff] }
 0x42c   : > { %v2769_v45 = vmax.f32 %v2753_v48, 0.0  ;;  %v3616_v54 = vadd.f32 %v3600_v42, %v8610_v44  ;;  %v4310_v46 = vadd.f32 %v4294_v43, %v4259_v26  ;;  %v3395_v53 = vmul.f32 %v7200_v50, %v3378_v23  ;;  %v2168_v43 = vld [vmem:[%s6352_s15 + $0x50] sm:$0xff]  ;;  %3354 = vst.msk [vmem:[#allocation3] sm:$0xff] %vm3353_vm9, %v7317_v63 }
 0x42d   : > { %v7372_v21 = vpop.permute.xlu1 %4368  ;;  %4196 = vrot.lane.b32.xlu0 %v4176_v20, %s8576_s14  ;;  %v3617_v58 = vadd.f32 %v3601_v37, %v8612_v25  ;;  %v3396_v32 = vmul.f32 %v7200_v50, %v3379_v24  ;;  %v3430_v48 = vmul.f32 %v7210_v40, %v3413_v51  ;;  %v4311_v42 = vadd.f32 %v4295_v0, %v4260_v14  ;;  %v2847_v51 = vld [vmem:[%s8613_s23 + $0x40] sm:$0xff] }
 0x42e   : > { %v2780_v19 = vpack.c.bf16 %v2769_v45, %v2768_v41  ;;  %v3632_v34 = vmax.f32 %v3616_v54, 0.0  ;;  %v4326_v23 = vadd.f32 %v4310_v46, %v6920_v28  ;;  %v3431_v26 = vmul.f32 %v7210_v40, %v3414_v12  ;;  %v2848_v45 = vld [vmem:[%s8613_s23 + $0x48] sm:$0xff]  ;;  %v2882_v0 = vld [vmem:[%s8614_s28 + $0x40] sm:$0xff] }
 0x42f   : > { %v3633_v20 = vmax.f32 %v3617_v58, 0.0  ;;  %v3446_v41 = vadd.f32 %v3430_v48, %v3395_v53  ;;  %v2150_v24 = vmul.f32 %v6233_v59, %v2133_v31  ;;  %v4327_v14 = vadd.f32 %v4311_v42, %v6925_v35  ;;  %v8615_v53 = vld [vmem:[#allocation38_spill] sm:$0xff]  ;;  %v2883_v48 = vld [vmem:[%s8614_s28 + $0x48] sm:$0xff]  ;;  %s8621_s28 = sld [smem:[#allocation20_spill]] }
 0x430   : > { %2800 = vrot.lane.b32.xlu1 %v2780_v19, %s8576_s14  ;;  %v4342_v37 = vmax.f32 %v4326_v23, 0.0  ;;  %v3447_v54 = vadd.f32 %v3431_v26, %v3396_v32  ;;  %v2151_v12 = vmul.f32 %v6233_v59, %v2134_v57  ;;  %v2185_v31 = vmul.f32 %v6236_v60, %v2168_v43  ;;  %v1978_v32 = vld [vmem:[%s7214_s18 + $0x10] sm:$0xff]  ;;  %v8616_v23 = vld [vmem:[#allocation41_spill] sm:$0xff]  ;;  %s8619_s14 = smov 16   ;;  %s8622_s18 = sld [smem:[#allocation44_spill]] }
 0x431   : > { %v3643_v46 = vpack.c.bf16 %v3633_v20, %v3632_v34  ;;  %v3462_v19 = vadd.f32 %v3446_v41, %v8615_v53  ;;  %v2186_v58 = vmul.f32 %v6236_v60, %v2169_v27  ;;  %v4343_v42 = vmax.f32 %v4327_v14, 0.0  ;;  %v7403_v34 = vpop.permute.xlu0 %2259 }
 0x432   : > { %v3463_v61 = vadd.f32 %v3447_v54, %v8616_v23  ;;  %v2864_v57 = vmul.f32 %v6294_v11, %v2847_v51  ;;  %v2865_v26 = vmul.f32 %v6294_v11, %v2848_v45  ;;  %8618 = vst [vmem:[#allocation23_spill] sm:$0xff] %v7403_v34  ;;  %v7405_v20 = vpop.permute.xlu1 %2973  ;;  %v2201_v43 = vadd.f32 %v2185_v31, %v2150_v24  ;;  %v2014_v54 = vld [vmem:[%s7223_s25 + $0x18] sm:$0xff]  ;;  %v3710_v11 = vld [vmem:[%s8617_s3 + $0x50] sm:$0xff]  ;;  %s8623_s25 = sld [smem:[#allocation45_spill]] }
 0x433   : > { %3664 = vrot.lane.b32.xlu0 %v3643_v46, %s8619_s14  ;;  %v3478_v27 = vmax.f32 %v3462_v19, 0.0  ;;  %v2202_v41 = vadd.f32 %v2186_v58, %v2151_v12  ;;  %v2899_v14 = vmul.f32 %v8620_v55, %v2882_v0  ;;  %v4354_v51 = vpack.c.bf16 %v4343_v42, %v4342_v37  ;;  %v3711_v0 = vld [vmem:[%s8617_s3 + $0x58] sm:$0xff]  ;;  %s8631_s3 = sld [smem:[#allocation47_spill]] }
 0x434   : > { %v3479_v60 = vmax.f32 %v3463_v61, 0.0  ;;  %v2900_v45 = vmul.f32 %v8620_v55, %v2883_v48  ;;  %v1995_v34 = vmul.f32 %v7234_v38, %v1978_v32  ;;  %v2217_v59 = vadd.f32 %v2201_v43, %v8610_v44 }
 0x435   : > { %v2218_v46 = vadd.f32 %v2202_v41, %v8612_v25  ;;  %v2915_v24 = vadd.f32 %v2899_v14, %v2864_v57  ;;  %v1996_v12 = vmul.f32 %v7234_v38, %v1979_v47  ;;  %4374 = vrot.lane.b32.xlu1 %v4354_v51, %s8556_s13  ;;  %v2030_v31 = vmul.f32 %v7239_v16, %v2013_v39  ;;  %v3745_v48 = vld [vmem:[%s8621_s28 + $0x50] sm:$0xff]  ;;  %v3746_v32 = vld [vmem:[%s8621_s28 + $0x58] sm:$0xff]  ;;  %v8624_v57 = vld [vmem:[#allocation26_spill] sm:$0xff]  ;;  %s8626_s28 = sld [smem:[#allocation16_spill]] }
 0x436   : > { %v3493_v19 = vpack.c.bf16 %v3479_v60, %v3478_v27  ;;  %v2916_v37 = vadd.f32 %v2900_v45, %v2865_v26  ;;  %v2031_v58 = vmul.f32 %v7239_v16, %v2014_v54  ;;  %v2233_v42 = vmax.f32 %v2217_v59, 0.0  ;;  %v4420_v47 = vld [vmem:[%s8622_s18 + $0x40] sm:$0xff]  ;;  %v4421_v54 = vld [vmem:[%s8622_s18 + $0x48] sm:$0xff]  ;;  %v7431_v45 = vpop.permute.xlu0 %3836  ;;  %v8625_v59 = vld [vmem:[#allocation61_spill] sm:$0xff]  ;;  %s8627_s18 = sld [smem:[#allocation22_spill]] }
 0x437   : > { %v2234_v61 = vmax.f32 %v2218_v46, 0.0  ;;  %v2931_v43 = vadd.f32 %v2915_v24, %v6920_v28  ;;  %v3727_v41 = vmul.f32 %v8624_v57, %v3710_v11  ;;  %v2046_v26 = vadd.f32 %v2030_v31, %v1995_v34 }
 0x438   : > { %v4547_v14 = vpop.permute.xlu1 %4546  ;;  %3501 = vst.msk [vmem:[#allocation3 + $0x18] sm:$0xff] %vm721_vm2, %v3493_v19  ;;  %v2932_v60 = vadd.f32 %v2916_v37, %v6925_v35  ;;  %v2047_v39 = vadd.f32 %v2031_v58, %v1996_v12  ;;  %v3728_v27 = vmul.f32 %v8624_v57, %v3711_v0  ;;  %v4455_v51 = vld [vmem:[%s8623_s25 + $0x40] sm:$0xff]  ;;  %v3762_v24 = vmul.f32 %v6247_v62, %v3745_v48  ;;  %v4456_v37 = vld [vmem:[%s8623_s25 + $0x48] sm:$0xff]  ;;  %s8630_s25 = sld [smem:[#allocation46_spill]] }
 0x439   : > { %3679 = vst.msk [vmem:[#allocation3 + $0x18] sm:$0xff] %vm2279_vm3, %v8625_v59  ;;  %v2244_v11 = vpack.c.bf16 %v2234_v61, %v2233_v42  ;;  %v2947_v46 = vmax.f32 %v2931_v43, 0.0  ;;  %v3763_v19 = vmul.f32 %v6247_v62, %v3746_v32  ;;  %v2062_v12 = vadd.f32 %v2046_v26, %v8615_v53  ;;  %v8628_v58 = vld [vmem:[#allocation63_spill] sm:$0xff]  ;;  %v8629_v32 = vld [vmem:[#allocation35_spill] sm:$0xff] }
 0x43a   : > { %v2948_v34 = vmax.f32 %v2932_v60, 0.0  ;;  %v2063_v0 = vadd.f32 %v2047_v39, %v8616_v23  ;;  %v4437_v31 = vmul.f32 %v6300_v13, %v4420_v47  ;;  %3857 = vst.msk [vmem:[#allocation3 + $0x18] sm:$0xff] %vm2458_vm4, %v8628_v58  ;;  %v3778_v42 = vadd.f32 %v3762_v24, %v3727_v41 }
 0x43b   : > { %2265 = vrot.lane.b32.xlu0 %v2244_v11, %s8619_s14  ;;  %v3779_v61 = vadd.f32 %v3763_v19, %v3728_v27  ;;  %v4438_v48 = vmul.f32 %v6300_v13, %v4421_v54  ;;  %v4472_v43 = vmul.f32 %v8629_v32, %v4455_v51  ;;  %v2312_v53 = vld [vmem:[%s8626_s28 + $0x50] sm:$0xff]  ;;  %v2313_v60 = vld [vmem:[%s8626_s28 + $0x58] sm:$0xff]  ;;  %4035 = vst.msk [vmem:[#allocation3 + $0x18] sm:$0xff] %vm2637_vm5, %v7273_v49  ;;  %v2078_v47 = vmax.f32 %v2062_v12, 0.0 }
 0x43c   : > { %v2959_v23 = vpack.c.bf16 %v2948_v34, %v2947_v46  ;;  %v2079_v26 = vmax.f32 %v2063_v0, 0.0  ;;  %v4473_v39 = vmul.f32 %v8629_v32, %v4456_v37  ;;  %v2347_v59 = vld [vmem:[%s8627_s18 + $0x50] sm:$0xff]  ;;  %4213 = vst.msk [vmem:[#allocation3 + $0x18] sm:$0xff] %vm2816_vm6, %v7338_v52  ;;  %v3794_v41 = vadd.f32 %v3778_v42, %v8610_v44  ;;  %v2348_v51 = vld [vmem:[%s8627_s18 + $0x58] sm:$0xff]  ;;  %v8633_v37 = vld [vmem:[#allocation27_spill] sm:$0xff] }
 0x43d   : > { %v3795_v27 = vadd.f32 %v3779_v61, %v8612_v25  ;;  %v4488_v54 = vadd.f32 %v4472_v43, %v4437_v31  ;;  %4391 = vst.msk [vmem:[#allocation3 + $0x18] sm:$0xff] %vm2995_vm7, %v7372_v21  ;;  %v7461_v49 = vpop.permute.xlu1 %3152  ;;  %v8632_v19 = vld [vmem:[#allocation69_spill] sm:$0xff]  ;;  %v2329_v34 = vmul.f32 %v8633_v37, %v2312_v53  ;;  %v2330_v12 = vmul.f32 %v8633_v37, %v2313_v60  ;;  %v3061_v0 = vld [vmem:[%s8631_s3 + $0x40] sm:$0xff]  ;;  %v7472_v21 = vpop.permute.xlu0 %2438  ;;  %v8635_v61 = vld [vmem:[#allocation28_spill] sm:$0xff] }
 0x43e   : > { %v3026_v11 = vld [vmem:[%s8630_s25 + $0x40] sm:$0xff]  ;;  %v3027_v24 = vld [vmem:[%s8630_s25 + $0x48] sm:$0xff]  ;;  %2979 = vrot.lane.b32.xlu1 %v2959_v23, %s8556_s13  ;;  %v2093_v52 = vpack.c.bf16 %v2079_v26, %v2078_v47  ;;  %v4489_v46 = vadd.f32 %v4473_v39, %v4438_v48  ;;  %4568 = vst.msk [vmem:[#allocation3 + $0x8] sm:$0xff] %vm3174_vm8, %v8632_v19  ;;  %4569 = vst.msk [vmem:[#allocation3 + $0x18] sm:$0xff] %vm3174_vm8, %v4547_v14  ;;  %v3810_v31 = vmax.f32 %v3794_v41, 0.0 }
 0x43f   : > { %8634 = vst [vmem:[#allocation38_spill] sm:$0xff] %v7472_v21  ;;  %v3811_v58 = vmax.f32 %v3795_v27, 0.0  ;;  %v4504_v42 = vadd.f32 %v4488_v54, %v6920_v28  ;;  %v2364_v48 = vmul.f32 %v8635_v61, %v2347_v59  ;;  %v3062_v43 = vld [vmem:[%s8631_s3 + $0x48] sm:$0xff]  ;;  %v3888_v53 = vld [vmem:[%s6402_s16 + $0x50] sm:$0xff]  ;;  %v2365_v23 = vmul.f32 %v8635_v61, %v2348_v51  ;;  %v3889_v26 = vld [vmem:[%s6402_s16 + $0x58] sm:$0xff] }
 0x440   : > { %2102 = vst.msk [vmem:[#allocation3 + $0x10] sm:$0xff] %vm721_vm2, %v2093_v52  ;;  %v4505_v60 = vadd.f32 %v4489_v46, %v6925_v35  ;;  %v3043_v14 = vmul.f32 %v8636_v56, %v3026_v11  ;;  %v3044_v47 = vmul.f32 %v8636_v56, %v3027_v24  ;;  %v3923_v39 = vld [vmem:[%s6419_s30 + $0x50] sm:$0xff]  ;;  %v8637_v41 = vld [vmem:[#allocation62_spill] sm:$0xff]  ;;  %v8639_v61 = vld [vmem:[#allocation70_spill] sm:$0xff] }
 0x441   : > { %2281 = vst.msk [vmem:[#allocation3 + $0x10] sm:$0xff] %vm2279_vm3, %v8637_v41  ;;  %v3821_v27 = vpack.c.bf16 %v3811_v58, %v3810_v31  ;;  %v4520_v59 = vmax.f32 %v4504_v42, 0.0  ;;  %v2380_v54 = vadd.f32 %v2364_v48, %v2329_v34  ;;  %v8638_v19 = vld [vmem:[#allocation37_spill] sm:$0xff]  ;;  %v2381_v37 = vadd.f32 %v2365_v23, %v2330_v12  ;;  %v4598_v56 = vld [vmem:[%s6650_s20 + $0x40] sm:$0xff]  ;;  %v4599_v58 = vld [vmem:[%s6650_s20 + $0x48] sm:$0xff]  ;;  %v7507_v23 = vpop.permute.xlu0 %4014 }
 0x442   : > { %v3078_v52 = vmul.f32 %v8638_v19, %v3061_v0  ;;  %v3924_v21 = vld [vmem:[%s6419_s30 + $0x58] sm:$0xff]  ;;  %v4521_v46 = vmax.f32 %v4505_v60, 0.0  ;;  %v3079_v51 = vmul.f32 %v8638_v19, %v3062_v43  ;;  %2460 = vst.msk [vmem:[#allocation3 + $0x10] sm:$0xff] %vm2458_vm4, %v8639_v61  ;;  %v3940_v12 = vmul.f32 %v6260_v2, %v3923_v39  ;;  %v4634_v60 = vld [vmem:[%s6661_s0 + $0x48] sm:$0xff] }
 0x443   : > { %v8640_v11 = vld [vmem:[#allocation29_spill] sm:$0xff]  ;;  %v4725_v41 = vpop.permute.xlu1 %4724  ;;  %3842 = vrot.lane.b32.xlu0 %v3821_v27, %s8557_s4  ;;  %v2396_v34 = vadd.f32 %v2380_v54, %v8610_v44  ;;  %2639 = vst.msk [vmem:[#allocation3 + $0x10] sm:$0xff] %vm2637_vm5, %v7306_v30  ;;  %v2397_v61 = vadd.f32 %v2381_v37, %v8612_v25  ;;  %v3941_v43 = vmul.f32 %v6260_v2, %v3924_v21  ;;  %v2491_v27 = vld [vmem:[%s6427_s7 + $0x50] sm:$0xff] }
 0x444   : > { %v3905_v24 = vmul.f32 %v8640_v11, %v3888_v53  ;;  %v3094_v31 = vadd.f32 %v3078_v52, %v3043_v14  ;;  %v3906_v0 = vmul.f32 %v8640_v11, %v3889_v26  ;;  %v4532_v42 = vpack.c.bf16 %v4521_v46, %v4520_v59  ;;  %v4633_v53 = vld [vmem:[%s6661_s0 + $0x40] sm:$0xff]  ;;  %2818 = vst.msk [vmem:[#allocation3 + $0x10] sm:$0xff] %vm2816_vm6, %v7349_v33  ;;  %v2492_v52 = vld [vmem:[%s6427_s7 + $0x58] sm:$0xff]  ;;  %v2526_v46 = vld [vmem:[%s6433_s5 + $0x50] sm:$0xff] }
 0x445   : > { %v3095_v48 = vadd.f32 %v3079_v51, %v3044_v47  ;;  %v2412_v14 = vmax.f32 %v2396_v34, 0.0  ;;  %v4615_v39 = vmul.f32 %v6314_v18, %v4598_v56  ;;  %2997 = vst.msk [vmem:[#allocation3 + $0x10] sm:$0xff] %vm2995_vm7, %v7405_v20  ;;  %v2413_v37 = vmax.f32 %v2397_v61, 0.0 }
 0x446   : > { %v3110_v26 = vadd.f32 %v3094_v31, %v6920_v28  ;;  %v3956_v30 = vadd.f32 %v3940_v12, %v3905_v24  ;;  %4552 = vrot.lane.b32.xlu1 %v4532_v42, %s8561_s9  ;;  %v3957_v33 = vadd.f32 %v3941_v43, %v3906_v0  ;;  %v4616_v47 = vmul.f32 %v6314_v18, %v4599_v58  ;;  %v2527_v31 = vld [vmem:[%s6433_s5 + $0x58] sm:$0xff]  ;;  %v3205_v0 = vld [vmem:[%s8603_s21 + $0x40] sm:$0xff] }
 0x447   : > { %v3111_v21 = vadd.f32 %v3095_v48, %v6925_v35  ;;  %3176 = vst.msk [vmem:[#allocation3 + $0x10] sm:$0xff] %vm3174_vm8, %v7461_v49  ;;  %v4650_v54 = vmul.f32 %v6331_v22, %v4633_v53  ;;  %v4651_v20 = vmul.f32 %v6331_v22, %v4634_v60  ;;  %v2423_v51 = vpack.c.bf16 %v2413_v37, %v2412_v14  ;;  %v3206_v48 = vld [vmem:[%s8603_s21 + $0x48] sm:$0xff]  ;;  %v3240_v43 = vld [vmem:[%s6689_s12 + $0x40] sm:$0xff] }
 0x448   : > { %v3126_v59 = vmax.f32 %v3110_v26, 0.0  ;;  %v3972_v56 = vadd.f32 %v3956_v30, %v8610_v44  ;;  %v3973_v34 = vadd.f32 %v3957_v33, %v8612_v25  ;;  %v3332_v12 = vpop.permute.xlu1 %3331  ;;  %4746 = vst.msk [vmem:[#allocation3 + $0x8] sm:$0xff] %vm3353_vm9, %v7283_v17  ;;  %v2508_v61 = vmul.f32 %v6265_v3, %v2491_v27  ;;  %4747 = vst.msk [vmem:[#allocation3 + $0x18] sm:$0xff] %vm3353_vm9, %v4725_v41  ;;  %v3241_v26 = vld [vmem:[%s6689_s12 + $0x48] sm:$0xff]  ;;  %v7540_v30 = vpop.permute.xlu0 %2617  ;;  %v4067_v33 = vld [vmem:[%s6443_s26 + $0x58] sm:$0xff] }
 0x449   : > { %v3127_v24 = vmax.f32 %v3111_v21, 0.0  ;;  %v4666_v58 = vadd.f32 %v4650_v54, %v4615_v39  ;;  %v4667_v42 = vadd.f32 %v4651_v20, %v4616_v47  ;;  %3355 = vst.msk [vmem:[#allocation3 + $0x10] sm:$0xff] %vm3353_vm9, %v3332_v12  ;;  %2444 = vrot.lane.b32.xlu0 %v2423_v51, %s8557_s4  ;;  %v2509_v17 = vmul.f32 %v6265_v3, %v2492_v52  ;;  %v4066_v21 = vld [vmem:[%s6443_s26 + $0x50] sm:$0xff] }
 0x44a   : > { %v3988_v49 = vmax.f32 %v3972_v56, 0.0  ;;  %v3989_v60 = vmax.f32 %v3973_v34, 0.0  ;;  %v2543_v14 = vmul.f32 %v6268_v4, %v2526_v46  ;;  %v2544_v41 = vmul.f32 %v6268_v4, %v2527_v31  ;;  %v4101_v54 = vld [vmem:[%s8604_s24 + $0x50] sm:$0xff] }
 0x44b   : > { %v3138_v53 = vpack.c.bf16 %v3127_v24, %v3126_v59  ;;  %v4682_v39 = vadd.f32 %v4666_v58, %v6920_v28  ;;  %v4683_v63 = vadd.f32 %v4667_v42, %v6925_v35  ;;  %v3222_v37 = vmul.f32 %v6345_v29, %v3205_v0  ;;  %v4102_v24 = vld [vmem:[%s8604_s24 + $0x58] sm:$0xff]  ;;  %v2670_v34 = vld [vmem:[%s8605_s6 + $0x50] sm:$0xff] }
 0x44c   : > { %v3999_v47 = vpack.c.bf16 %v3989_v60, %v3988_v49  ;;  %v2559_v27 = vadd.f32 %v2543_v14, %v2508_v61  ;;  %v3223_v59 = vmul.f32 %v6345_v29, %v3206_v48  ;;  %v3257_v56 = vmul.f32 %v6365_v36, %v3240_v43  ;;  %v2671_v42 = vld [vmem:[%s8605_s6 + $0x58] sm:$0xff]  ;;  %v2705_v60 = vld [vmem:[%s6482_s29 + $0x50] sm:$0xff]  ;;  %v3534_v14 = vld [vmem:[%s8606_s22 + $0x60] sm:$0xff] }
 0x44d   : > { %3158 = vrot.lane.b32.xlu1 %v3138_v53, %s8561_s9  ;;  %v4698_v20 = vmax.f32 %v4682_v39, 0.0  ;;  %v4699_v52 = vmax.f32 %v4683_v63, 0.0  ;;  %v2560_v46 = vadd.f32 %v2544_v41, %v2509_v17  ;;  %v3258_v51 = vmul.f32 %v6365_v36, %v3241_v26  ;;  %v2706_v17 = vld [vmem:[%s6482_s29 + $0x58] sm:$0xff] }
 0x44e   : > { %v7555_v31 = vpop.permute.xlu1 %2796  ;;  %4020 = vrot.lane.b32.xlu0 %v3999_v47, %s8562_s11  ;;  %v2575_v0 = vadd.f32 %v2559_v27, %v8610_v44  ;;  %v3273_v12 = vadd.f32 %v3257_v56, %v3222_v37  ;;  %v4083_v49 = vmul.f32 %v6271_v5, %v4066_v21  ;;  %v4084_v58 = vmul.f32 %v6271_v5, %v4067_v33  ;;  %v4755_v21 = vld [vmem:[#allocation3] sm:$0xff]  ;;  %v7570_v33 = vpop.permute.xlu0 %4192 }
 0x44f   : > { %v4710_v61 = vpack.c.bf16 %v4699_v52, %v4698_v20  ;;  %v2576_v48 = vadd.f32 %v2560_v46, %v8612_v25  ;;  %v3274_v43 = vadd.f32 %v3258_v51, %v3223_v59  ;;  %v4118_v53 = vmul.f32 %v6276_v6, %v4101_v54  ;;  %v4756_v37 = vld [vmem:[#allocation3 + $0x8] sm:$0xff]  ;;  %v4758_v47 = vld [vmem:[#allocation3 + $0x18] sm:$0xff] }
 0x450   : > { %v2591_v26 = vmax.f32 %v2575_v0, 0.0  ;;  %v3289_v39 = vadd.f32 %v3273_v12, %v6920_v28  ;;  %v4119_v63 = vmul.f32 %v6276_v6, %v4102_v24  ;;  %v2687_v41 = vmul.f32 %v6279_v7, %v2670_v34  ;;  %4777 = vmatprep.subr.bf16.mxu1 %v4756_v37  ;;  %v3535_v20 = vld [vmem:[%s8606_s22 + $0x68] sm:$0xff]  ;;  %v3569_v34 = vld [vmem:[%s6324_s8 + $0x60] sm:$0xff]  ;;  %v8650_v28 = vld [vmem:[#allocation25_spill] sm:$0xff] }
 0x451   : > { %4730 = vrot.lane.b32.xlu1 %v4710_v61, %s8570_s1  ;;  %v2592_v27 = vmax.f32 %v2576_v48, 0.0  ;;  %v3290_v59 = vadd.f32 %v3274_v43, %v6925_v35  ;;  %v4134_v56 = vadd.f32 %v4118_v53, %v4083_v49  ;;  %v2688_v54 = vmul.f32 %v6279_v7, %v2671_v42  ;;  %v3570_v0 = vld [vmem:[%s6324_s8 + $0x68] sm:$0xff]  ;;  %4778 = vmatpush1.bf16.msra.mxu1 %v4755_v21  ;;  %v4244_v42 = vld [vmem:[%s8585_s17 + $0x50] sm:$0xff] }
 0x452   : > { %v3305_v52 = vmax.f32 %v3289_v39, 0.0  ;;  %v4135_v46 = vadd.f32 %v4119_v63, %v4084_v58  ;;  %v2722_v51 = vmul.f32 %v6282_v8, %v2705_v60  ;;  %v2723_v24 = vmul.f32 %v6282_v8, %v2706_v17  ;;  %4779 = vmatprep.subr.bf16.mxu1 %v4758_v47  ;;  %v4757_v58 = vld [vmem:[#allocation3 + $0x10] sm:$0xff]  ;;  %v4245_v63 = vld [vmem:[%s8585_s17 + $0x58] sm:$0xff] }
 0x453   : > { %v2602_v12 = vpack.c.bf16 %v2592_v27, %v2591_v26  ;;  %v3306_v61 = vmax.f32 %v3290_v59, 0.0  ;;  %v4150_v48 = vadd.f32 %v4134_v56, %v8610_v44  ;;  %v3551_v49 = vmul.f32 %v8607_v1, %v3534_v14  ;;  %v7583_v43 = vpop.permute.xlu1 %4370  ;;  %v4279_v26 = vld [vmem:[%s8586_s27 + $0x50] sm:$0xff]  ;;  %v4280_v27 = vld [vmem:[%s8586_s27 + $0x58] sm:$0xff]  ;;  %s8649_s27 = sld [smem:[#allocation68_spill]] }
 0x454   : > { %v4151_v53 = vadd.f32 %v4135_v46, %v8612_v25  ;;  %v2738_v60 = vadd.f32 %v2722_v51, %v2687_v41  ;;  %v2739_v17 = vadd.f32 %v2723_v24, %v2688_v54  ;;  %v3552_v39 = vmul.f32 %v8607_v1, %v3535_v20  ;;  %v3380_v20 = vld [vmem:[%s7192_s2 + $0x20] sm:$0xff]  ;;  %v7597_v46 = vpop.permute.xlu0 %3660 }
 0x455   : > { %2623 = vrot.lane.b32.xlu0 %v2602_v12, %s8562_s11  ;;  %v3317_v37 = vpack.c.bf16 %v3306_v61, %v3305_v52  ;;  %v4166_v21 = vmax.f32 %v4150_v48, 0.0  ;;  %v3586_v14 = vmul.f32 %v8608_v15, %v3569_v34  ;;  %v3587_v47 = vmul.f32 %v8608_v15, %v3570_v0  ;;  %8641 = vst [vmem:[#allocation41_spill] sm:$0xff] %v7597_v46  ;;  %v3381_v0 = vld [vmem:[%s7192_s2 + $0x28] sm:$0xff]  ;;  %v3415_v12 = vld [vmem:[%s7204_s10 + $0x20] sm:$0xff]  ;;  %s8644_s2 = smov 64  }
 0x456   : > { %v4167_v59 = vmax.f32 %v4151_v53, 0.0  ;;  %v2754_v56 = vadd.f32 %v2738_v60, %v8610_v44  ;;  %v2755_v41 = vadd.f32 %v2739_v17, %v8612_v25  ;;  %v4261_v54 = vmul.f32 %v6285_v9, %v4244_v42  ;;  %4780 = vmatpush1.bf16.msra.mxu1 %v4757_v58  ;;  %v3416_v60 = vld [vmem:[%s7204_s10 + $0x28] sm:$0xff]  ;;  %v8642_v17 = vld [vmem:[#allocation57_spill] sm:$0xff]  ;;  %s8645_s10 = sld [smem:[#allocation43_spill]] }
 0x457   : > { %3337 = vrot.lane.b32.xlu1 %v3317_v37, %s8570_s1  ;;  %v3602_v52 = vadd.f32 %v3586_v14, %v3551_v49  ;;  %v3603_v51 = vadd.f32 %v3587_v47, %v3552_v39  ;;  %v4262_v24 = vmul.f32 %v6285_v9, %v4245_v63  ;;  %v4296_v34 = vmul.f32 %v6291_v10, %v4279_v26  ;;  %v8643_v37 = vld [vmem:[#allocation58_spill] sm:$0xff]  ;;  %v2135_v14 = vld [vmem:[%s8609_s19 + $0x60] sm:$0xff]  ;;  %v2136_v47 = vld [vmem:[%s8609_s19 + $0x68] sm:$0xff]  ;;  %s8646_s19 = sld [smem:[#allocation67_spill]] }
 0x458   : > { %v4177_v61 = vpack.c.bf16 %v4167_v59, %v4166_v21  ;;  %v2770_v48 = vmax.f32 %v2754_v56, 0.0  ;;  %v2771_v42 = vmax.f32 %v2755_v41, 0.0  ;;  %v4297_v53 = vmul.f32 %v6291_v10, %v4280_v27  ;;  %v2170_v41 = vld [vmem:[%s6352_s15 + $0x60] sm:$0xff] }
 0x459   : > { %v7606_v58 = vpop.permute.xlu1 %2975  ;;  %v3618_v49 = vadd.f32 %v3602_v52, %v8642_v17  ;;  %v3619_v39 = vadd.f32 %v3603_v51, %v8643_v37  ;;  %v4312_v63 = vadd.f32 %v4296_v34, %v4261_v54  ;;  %v3397_v26 = vmul.f32 %v7200_v50, %v3380_v20  ;;  %v2171_v20 = vld [vmem:[%s6352_s15 + $0x68] sm:$0xff]  ;;  %v2849_v34 = vld [vmem:[%s8613_s23 + $0x50] sm:$0xff] }
 0x45a   : > { %4198 = vrot.lane.b32.xlu0 %v4177_v61, %s8644_s2  ;;  %v2781_v21 = vpack.c.bf16 %v2771_v42, %v2770_v48  ;;  %v4313_v59 = vadd.f32 %v4297_v53, %v4262_v24  ;;  %v3398_v27 = vmul.f32 %v7200_v50, %v3381_v0  ;;  %v3432_v56 = vmul.f32 %v7210_v40, %v3415_v12  ;;  %v8647_v48 = vld [vmem:[#allocation24_spill] sm:$0xff]  ;;  %v2850_v42 = vld [vmem:[%s8613_s23 + $0x58] sm:$0xff] }
 0x45b   : > { %v3634_v52 = vmax.f32 %v3618_v49, 0.0  ;;  %v3635_v35 = vmax.f32 %v3619_v39, 0.0  ;;  %v4328_v51 = vadd.f32 %v4312_v63, %v8610_v44  ;;  %v3433_v54 = vmul.f32 %v7210_v40, %v3416_v60  ;;  %v7627_v49 = vpop.permute.xlu0 %2261 }
 0x45c   : > { %2802 = vrot.lane.b32.xlu1 %v2781_v21, %s8644_s2  ;;  %v4329_v61 = vadd.f32 %v4313_v59, %v8612_v25  ;;  %v3448_v24 = vadd.f32 %v3432_v56, %v3397_v26  ;;  %v2152_v0 = vmul.f32 %v8647_v48, %v2135_v14  ;;  %v2153_v12 = vmul.f32 %v8647_v48, %v2136_v47  ;;  %v2884_v53 = vld [vmem:[%s8645_s10 + $0x50] sm:$0xff]  ;;  %v2885_v21 = vld [vmem:[%s8645_s10 + $0x58] sm:$0xff]  ;;  %s8654_s2 = sld [smem:[#allocation15_spill]]  ;;  %s8655_s10 = sld [smem:[#allocation20_spill]] }
 0x45d   : > { %8648 = vst [vmem:[#allocation34_spill] sm:$0xff] %v7627_v49  ;;  %v3644_v39 = vpack.c.bf16 %v3635_v35, %v3634_v52  ;;  %v4344_v63 = vmax.f32 %v4328_v51, 0.0  ;;  %v3449_v60 = vadd.f32 %v3433_v54, %v3398_v27  ;;  %v2187_v46 = vmul.f32 %v8650_v28, %v2170_v41  ;;  %v8651_v59 = vld [vmem:[#allocation49_spill] sm:$0xff]  ;;  %v8652_v14 = vld [vmem:[#allocation33_spill] sm:$0xff]  ;;  %v1980_v56 = vld [vmem:[%s8646_s19 + $0x20] sm:$0xff] }
 0x45e   : > { %v4345_v40 = vmax.f32 %v4329_v61, 0.0  ;;  %v3464_v50 = vadd.f32 %v3448_v24, %v8651_v59  ;;  %v2188_v26 = vmul.f32 %v8650_v28, %v2171_v20  ;;  %v2866_v47 = vmul.f32 %v8652_v14, %v2849_v34  ;;  %v7635_v48 = vpop.permute.xlu1 %4548  ;;  %v8653_v35 = vld [vmem:[#allocation50_spill] sm:$0xff]  ;;  %v1981_v54 = vld [vmem:[%s8646_s19 + $0x28] sm:$0xff]  ;;  %v2015_v61 = vld [vmem:[%s8649_s27 + $0x20] sm:$0xff]  ;;  %s8656_s19 = sld [smem:[#allocation44_spill]] }
 0x45f   : > { %3666 = vrot.lane.b32.xlu0 %v3644_v39, %s8619_s14  ;;  %v3465_v52 = vadd.f32 %v3449_v60, %v8653_v35  ;;  %v2203_v27 = vadd.f32 %v2187_v46, %v2152_v0  ;;  %v2867_v41 = vmul.f32 %v8652_v14, %v2850_v42  ;;  %v2901_v51 = vmul.f32 %v8620_v55, %v2884_v53  ;;  %v2016_v28 = vld [vmem:[%s8649_s27 + $0x28] sm:$0xff]  ;;  %s8657_s27 = sld [smem:[#allocation45_spill]] }
 0x460   : > { %v4355_v24 = vpack.c.bf16 %v4345_v40, %v4344_v63  ;;  %v3480_v20 = vmax.f32 %v3464_v50, 0.0  ;;  %v2204_v34 = vadd.f32 %v2188_v26, %v2153_v12  ;;  %v2902_v49 = vmul.f32 %v8620_v55, %v2885_v21  ;;  %v7654_v21 = vpop.permute.xlu0 %3838 }
 0x461   : > { %v3481_v10 = vmax.f32 %v3465_v52, 0.0  ;;  %v2219_v39 = vadd.f32 %v2203_v27, %v8642_v17  ;;  %v2917_v60 = vadd.f32 %v2901_v51, %v2866_v47  ;;  %v1997_v46 = vmul.f32 %v7234_v38, %v1980_v56 }
 0x462   : > { %v3712_v0 = vld [vmem:[%s8654_s2 + $0x60] sm:$0xff]  ;;  %4376 = vrot.lane.b32.xlu1 %v4355_v24, %s8556_s13  ;;  %v2220_v42 = vadd.f32 %v2204_v34, %v8643_v37  ;;  %v2918_v53 = vadd.f32 %v2902_v49, %v2867_v41  ;;  %v1998_v50 = vmul.f32 %v7234_v38, %v1981_v54  ;;  %v2032_v40 = vmul.f32 %v7239_v16, %v2015_v61  ;;  %v3713_v12 = vld [vmem:[%s8654_s2 + $0x68] sm:$0xff] }
 0x463   : > { %v3747_v63 = vld [vmem:[%s8655_s10 + $0x60] sm:$0xff]  ;;  %v3494_v26 = vpack.c.bf16 %v3481_v10, %v3480_v20  ;;  %v2235_v47 = vmax.f32 %v2219_v39, 0.0  ;;  %v2933_v56 = vadd.f32 %v2917_v60, %v8610_v44  ;;  %v2033_v52 = vmul.f32 %v7239_v16, %v2016_v28  ;;  %v3748_v27 = vld [vmem:[%s8655_s10 + $0x68] sm:$0xff] }
 0x464   : > { %v7659_v51 = vpop.permute.xlu1 %3154  ;;  %v2236_v49 = vmax.f32 %v2220_v42, 0.0  ;;  %v2934_v41 = vadd.f32 %v2918_v53, %v8612_v25  ;;  %v2048_v54 = vadd.f32 %v2032_v40, %v1997_v46  ;;  %v3729_v61 = vmul.f32 %v8624_v57, %v3712_v0  ;;  %v4422_v24 = vld [vmem:[%s8656_s19 + $0x50] sm:$0xff]  ;;  %v4423_v34 = vld [vmem:[%s8656_s19 + $0x58] sm:$0xff]  ;;  %v8658_v42 = vld [vmem:[#allocation21_spill] sm:$0xff] }
 0x465   : > { %3502 = vst.msk [vmem:[#allocation3 + $0x28] sm:$0xff] %vm721_vm2, %v3494_v26  ;;  %v2949_v10 = vmax.f32 %v2933_v56, 0.0  ;;  %v2049_v20 = vadd.f32 %v2033_v52, %v1998_v50  ;;  %v3730_v28 = vmul.f32 %v8624_v57, %v3713_v12  ;;  %v3764_v39 = vmul.f32 %v6247_v62, %v3747_v63  ;;  %v4457_v60 = vld [vmem:[%s8657_s27 + $0x50] sm:$0xff]  ;;  %v4458_v26 = vld [vmem:[%s8657_s27 + $0x58] sm:$0xff]  ;;  %v2314_v56 = vld [vmem:[%s8626_s28 + $0x60] sm:$0xff] }
 0x466   : > { %3680 = vst.msk [vmem:[#allocation3 + $0x28] sm:$0xff] %vm2279_vm3, %v8658_v42  ;;  %v2245_v46 = vpack.c.bf16 %v2236_v49, %v2235_v47  ;;  %v2950_v53 = vmax.f32 %v2934_v41, 0.0  ;;  %v2064_v0 = vadd.f32 %v2048_v54, %v8651_v59  ;;  %v3765_v40 = vmul.f32 %v6247_v62, %v3748_v27  ;;  %v2315_v47 = vld [vmem:[%s8626_s28 + $0x68] sm:$0xff]  ;;  %v2349_v49 = vld [vmem:[%s8627_s18 + $0x60] sm:$0xff] }
 0x467   : > { %v2065_v50 = vadd.f32 %v2049_v20, %v8653_v35  ;;  %v3780_v52 = vadd.f32 %v3764_v39, %v3729_v61  ;;  %v4439_v12 = vmul.f32 %v6300_v13, %v4422_v24  ;;  %v4440_v63 = vmul.f32 %v6300_v13, %v4423_v34  ;;  %3858 = vst.msk [vmem:[#allocation3 + $0x28] sm:$0xff] %vm2458_vm4, %v7431_v45  ;;  %v2350_v35 = vld [vmem:[%s8627_s18 + $0x68] sm:$0xff]  ;;  %v7687_v61 = vpop.permute.xlu0 %2440 }
 0x468   : > { %2267 = vrot.lane.b32.xlu0 %v2245_v46, %s8619_s14  ;;  %v2960_v59 = vpack.c.bf16 %v2950_v53, %v2949_v10  ;;  %v2080_v41 = vmax.f32 %v2064_v0, 0.0  ;;  %v3781_v27 = vadd.f32 %v3765_v40, %v3730_v28  ;;  %v4474_v54 = vmul.f32 %v8629_v32, %v4457_v60  ;;  %4036 = vst.msk [vmem:[#allocation3 + $0x28] sm:$0xff] %vm2637_vm5, %v7507_v23  ;;  %v8659_v20 = vld [vmem:[#allocation27_spill] sm:$0xff]  ;;  %v3028_v10 = vld [vmem:[%s8630_s25 + $0x50] sm:$0xff]  ;;  %v3029_v0 = vld [vmem:[%s8630_s25 + $0x58] sm:$0xff] }
 0x469   : > { %v2081_v24 = vmax.f32 %v2065_v50, 0.0  ;;  %v3796_v45 = vadd.f32 %v3780_v52, %v8642_v17  ;;  %v4475_v34 = vmul.f32 %v8629_v32, %v4458_v26  ;;  %v2331_v39 = vmul.f32 %v8659_v20, %v2314_v56  ;;  %4214 = vst.msk [vmem:[#allocation3 + $0x28] sm:$0xff] %vm2816_vm6, %v7570_v33  ;;  %v4727_v28 = vpop.permute.xlu1 %4726  ;;  %v8660_v46 = vld [vmem:[#allocation28_spill] sm:$0xff]  ;;  %v3064_v52 = vld [vmem:[%s8631_s3 + $0x58] sm:$0xff] }
 0x46a   : > { %2981 = vrot.lane.b32.xlu1 %v2960_v59, %s8556_s13  ;;  %v3797_v60 = vadd.f32 %v3781_v27, %v8643_v37  ;;  %v4490_v23 = vadd.f32 %v4474_v54, %v4439_v12  ;;  %v2332_v42 = vmul.f32 %v8659_v20, %v2315_v47  ;;  %v2366_v53 = vmul.f32 %v8660_v46, %v2349_v49  ;;  %v3063_v40 = vld [vmem:[%s8631_s3 + $0x50] sm:$0xff]  ;;  %v3890_v54 = vld [vmem:[%s6402_s16 + $0x60] sm:$0xff] }
 0x46b   : > { %4392 = vst.msk [vmem:[#allocation3 + $0x28] sm:$0xff] %vm2995_vm7, %v7583_v43  ;;  %v2094_v26 = vpack.c.bf16 %v2081_v24, %v2080_v41  ;;  %v3812_v56 = vmax.f32 %v3796_v45, 0.0  ;;  %v4491_v33 = vadd.f32 %v4475_v34, %v4440_v63  ;;  %v2367_v50 = vmul.f32 %v8660_v46, %v2350_v35  ;;  %v8661_v59 = vld [vmem:[#allocation36_spill] sm:$0xff]  ;;  %v3891_v35 = vld [vmem:[%s6402_s16 + $0x68] sm:$0xff]  ;;  %v3925_v24 = vld [vmem:[%s6419_s30 + $0x60] sm:$0xff] }
 0x46c   : > { %4570 = vst.msk [vmem:[#allocation3 + $0x28] sm:$0xff] %vm3174_vm8, %v7635_v48  ;;  %v3813_v12 = vmax.f32 %v3797_v60, 0.0  ;;  %v4506_v47 = vadd.f32 %v4490_v23, %v8610_v44  ;;  %v2382_v49 = vadd.f32 %v2366_v53, %v2331_v39  ;;  %v3045_v27 = vmul.f32 %v8661_v59, %v3028_v10  ;;  %v8662_v45 = vld [vmem:[#allocation23_spill] sm:$0xff]  ;;  %v7722_v23 = vpop.permute.xlu0 %4016 }
 0x46d   : > { %4748 = vst.msk [vmem:[#allocation3 + $0x28] sm:$0xff] %vm3353_vm9, %v4727_v28  ;;  %v4507_v43 = vadd.f32 %v4491_v33, %v8612_v25  ;;  %v2383_v63 = vadd.f32 %v2367_v50, %v2332_v42  ;;  %v3046_v41 = vmul.f32 %v8661_v59, %v3029_v0  ;;  %v3080_v48 = vmul.f32 %v8638_v19, %v3063_v40  ;;  %v3926_v60 = vld [vmem:[%s6419_s30 + $0x68] sm:$0xff]  ;;  %v8663_v40 = vld [vmem:[#allocation38_spill] sm:$0xff]  ;;  %v4601_v33 = vld [vmem:[%s6650_s20 + $0x58] sm:$0xff] }
 0x46e   : > { %2103 = vst.msk [vmem:[#allocation3 + $0x20] sm:$0xff] %vm721_vm2, %v2094_v26  ;;  %v3822_v34 = vpack.c.bf16 %v3813_v12, %v3812_v56  ;;  %v4522_v39 = vmax.f32 %v4506_v47, 0.0  ;;  %v2398_v10 = vadd.f32 %v2382_v49, %v8642_v17  ;;  %v3081_v28 = vmul.f32 %v8638_v19, %v3064_v52  ;;  %v4600_v56 = vld [vmem:[%s6650_s20 + $0x50] sm:$0xff] }
 0x46f   : > { %2282 = vst.msk [vmem:[#allocation3 + $0x20] sm:$0xff] %vm2279_vm3, %v8662_v45  ;;  %v4523_v42 = vmax.f32 %v4507_v43, 0.0  ;;  %v2399_v53 = vadd.f32 %v2383_v63, %v8643_v37  ;;  %v3096_v0 = vadd.f32 %v3080_v48, %v3045_v27  ;;  %v3907_v26 = vmul.f32 %v8640_v11, %v3890_v54  ;;  %v4635_v49 = vld [vmem:[%s6661_s0 + $0x50] sm:$0xff]  ;;  %v4636_v48 = vld [vmem:[%s6661_s0 + $0x58] sm:$0xff]  ;;  %v2493_v45 = vld [vmem:[%s6427_s7 + $0x60] sm:$0xff] }
 0x470   : > { %2461 = vst.msk [vmem:[#allocation3 + $0x20] sm:$0xff] %vm2458_vm4, %v8663_v40  ;;  %3844 = vrot.lane.b32.xlu0 %v3822_v34, %s8557_s4  ;;  %v2414_v50 = vmax.f32 %v2398_v10, 0.0  ;;  %v3097_v52 = vadd.f32 %v3081_v28, %v3046_v41  ;;  %v3908_v12 = vmul.f32 %v8640_v11, %v3891_v35  ;;  %v3942_v47 = vmul.f32 %v6260_v2, %v3925_v24  ;;  %v3334_v41 = vpop.permute.xlu1 %3333  ;;  %v2528_v10 = vld [vmem:[%s6433_s5 + $0x60] sm:$0xff] }
 0x471   : > { %2640 = vst.msk [vmem:[#allocation3 + $0x20] sm:$0xff] %vm2637_vm5, %v7540_v30  ;;  %v4533_v27 = vpack.c.bf16 %v4523_v42, %v4522_v39  ;;  %v2415_v43 = vmax.f32 %v2399_v53, 0.0  ;;  %v3112_v54 = vadd.f32 %v3096_v0, %v8610_v44  ;;  %v3943_v63 = vmul.f32 %v6260_v2, %v3926_v60  ;;  %v2494_v39 = vld [vmem:[%s6427_s7 + $0x68] sm:$0xff] }
 0x472   : > { %2819 = vst.msk [vmem:[#allocation3 + $0x20] sm:$0xff] %vm2816_vm6, %v7555_v31  ;;  %v3113_v35 = vadd.f32 %v3097_v52, %v8612_v25  ;;  %v3958_v24 = vadd.f32 %v3942_v47, %v3907_v26  ;;  %v4617_v34 = vmul.f32 %v6314_v18, %v4600_v56  ;;  %v4618_v30 = vmul.f32 %v6314_v18, %v4601_v33  ;;  %v2529_v53 = vld [vmem:[%s6433_s5 + $0x68] sm:$0xff]  ;;  %v3207_v33 = vld [vmem:[%s8603_s21 + $0x50] sm:$0xff] }
 0x473   : > { %2998 = vst.msk [vmem:[#allocation3 + $0x20] sm:$0xff] %vm2995_vm7, %v7606_v58  ;;  %4554 = vrot.lane.b32.xlu1 %v4533_v27, %s8561_s9  ;;  %v2424_v28 = vpack.c.bf16 %v2415_v43, %v2414_v50  ;;  %v3128_v60 = vmax.f32 %v3112_v54, 0.0  ;;  %v3959_v42 = vadd.f32 %v3943_v63, %v3908_v12  ;;  %v4652_v31 = vmul.f32 %v6331_v22, %v4635_v49  ;;  %v7758_v50 = vpop.permute.xlu0 %2619  ;;  %v3208_v49 = vld [vmem:[%s8603_s21 + $0x58] sm:$0xff]  ;;  %v3242_v27 = vld [vmem:[%s6689_s12 + $0x50] sm:$0xff] }
 0x474   : > { %3177 = vst.msk [vmem:[#allocation3 + $0x20] sm:$0xff] %vm3174_vm8, %v7659_v51  ;;  %v4760_v0 = vld [vmem:[#allocation3 + $0x28] sm:$0xff]  ;;  %v3129_v40 = vmax.f32 %v3113_v35, 0.0  ;;  %v3974_v26 = vadd.f32 %v3958_v24, %v8642_v17  ;;  %v4653_v56 = vmul.f32 %v6331_v22, %v4636_v48  ;;  %v2510_v58 = vmul.f32 %v6265_v3, %v2493_v45  ;;  %v3243_v45 = vld [vmem:[%s6689_s12 + $0x58] sm:$0xff] }
 0x475   : > { %3356 = vst.msk [vmem:[#allocation3 + $0x20] sm:$0xff] %vm3353_vm9, %v3334_v41  ;;  %4781 = vmatprep.subr.bf16.mxu1 %v4760_v0  ;;  %2446 = vrot.lane.b32.xlu0 %v2424_v28, %s8557_s4  ;;  %v3975_v51 = vadd.f32 %v3959_v42, %v8643_v37  ;;  %v4668_v52 = vadd.f32 %v4652_v31, %v4617_v34  ;;  %v4069_v42 = vld [vmem:[%s6443_s26 + $0x68] sm:$0xff]  ;;  %v4103_v31 = vld [vmem:[%s8604_s24 + $0x60] sm:$0xff] }
 0x476   : > { %v2511_v12 = vmul.f32 %v6265_v3, %v2494_v39  ;;  %v2545_v47 = vmul.f32 %v6268_v4, %v2528_v10  ;;  %v3139_v43 = vpack.c.bf16 %v3129_v40, %v3128_v60  ;;  %v3990_v54 = vmax.f32 %v3974_v26, 0.0  ;;  %v4068_v39 = vld [vmem:[%s6443_s26 + $0x60] sm:$0xff] }
 0x477   : > { %v4669_v63 = vadd.f32 %v4653_v56, %v4618_v30  ;;  %v2546_v48 = vmul.f32 %v6268_v4, %v2529_v53  ;;  %v3991_v41 = vmax.f32 %v3975_v51, 0.0  ;;  %v4684_v35 = vadd.f32 %v4668_v52, %v8610_v44  ;;  %v7778_v53 = vpop.permute.xlu1 %2798 }
 0x478   : > { %v2561_v24 = vadd.f32 %v2545_v47, %v2510_v58  ;;  %v3224_v34 = vmul.f32 %v6345_v29, %v3207_v33  ;;  %3160 = vrot.lane.b32.xlu1 %v3139_v43, %s8561_s9  ;;  %v3225_v30 = vmul.f32 %v6345_v29, %v3208_v49  ;;  %v3259_v60 = vmul.f32 %v6365_v36, %v3242_v27  ;;  %v4104_v58 = vld [vmem:[%s8604_s24 + $0x68] sm:$0xff]  ;;  %v2672_v47 = vld [vmem:[%s8605_s6 + $0x60] sm:$0xff]  ;;  %v7787_v27 = vpop.permute.xlu0 %4194 }
 0x479   : > { %v4685_v10 = vadd.f32 %v4669_v63, %v8612_v25  ;;  %v2562_v28 = vadd.f32 %v2546_v48, %v2511_v12  ;;  %v4000_v0 = vpack.c.bf16 %v3991_v41, %v3990_v54  ;;  %v4700_v40 = vmax.f32 %v4684_v35, 0.0  ;;  %v2673_v49 = vld [vmem:[%s8605_s6 + $0x68] sm:$0xff]  ;;  %s8664_s6 = sld [smem:[#allocation40_spill]] }
 0x47a   : > { %v2577_v26 = vadd.f32 %v2561_v24, %v8642_v17  ;;  %v3260_v56 = vmul.f32 %v6365_v36, %v3243_v45  ;;  %v3275_v52 = vadd.f32 %v3259_v60, %v3224_v34  ;;  %v4085_v12 = vmul.f32 %v6271_v5, %v4068_v39  ;;  %v2707_v45 = vld [vmem:[%s6482_s29 + $0x60] sm:$0xff] }
 0x47b   : > { %v4701_v33 = vmax.f32 %v4685_v10, 0.0  ;;  %v2578_v51 = vadd.f32 %v2562_v28, %v8643_v37  ;;  %4022 = vrot.lane.b32.xlu0 %v4000_v0, %s8562_s11  ;;  %v4086_v63 = vmul.f32 %v6271_v5, %v4069_v42  ;;  %v4120_v48 = vmul.f32 %v6276_v6, %v4103_v31  ;;  %v2708_v10 = vld [vmem:[%s6482_s29 + $0x68] sm:$0xff]  ;;  %v3536_v28 = vld [vmem:[%s8606_s22 + $0x70] sm:$0xff]  ;;  %v3537_v0 = vld [vmem:[%s8606_s22 + $0x78] sm:$0xff]  ;;  %s8665_s22 = sld [smem:[#allocation39_spill]] }
 0x47c   : > { %v2593_v43 = vmax.f32 %v2577_v26, 0.0  ;;  %v3276_v54 = vadd.f32 %v3260_v56, %v3225_v30  ;;  %v4759_v41 = vld [vmem:[#allocation3 + $0x20] sm:$0xff]  ;;  %v3291_v34 = vadd.f32 %v3275_v52, %v8610_v44  ;;  %v4121_v39 = vmul.f32 %v6276_v6, %v4104_v58  ;;  %v3571_v26 = vld [vmem:[%s6324_s8 + $0x70] sm:$0xff]  ;;  %v7805_v52 = vpop.permute.xlu1 %4372 }
 0x47d   : > { %v4711_v35 = vpack.c.bf16 %v4701_v33, %v4700_v40  ;;  %v2594_v24 = vmax.f32 %v2578_v51, 0.0  ;;  %4782 = vmatpush1.bf16.msra.mxu1 %v4759_v41  ;;  %v4136_v60 = vadd.f32 %v4120_v48, %v4085_v12  ;;  %v2689_v42 = vmul.f32 %v6279_v7, %v2672_v47  ;;  %v3572_v51 = vld [vmem:[%s6324_s8 + $0x78] sm:$0xff]  ;;  %v4246_v48 = vld [vmem:[%s8585_s17 + $0x60] sm:$0xff]  ;;  %s8667_s8 = sld [smem:[#allocation65_spill]] }
 0x47e   : > { %v3292_v30 = vadd.f32 %v3276_v54, %v8612_v25  ;;  %v2690_v31 = vmul.f32 %v6279_v7, %v2673_v49  ;;  %v3307_v56 = vmax.f32 %v3291_v34, 0.0  ;;  %v4137_v58 = vadd.f32 %v4121_v39, %v4086_v63  ;;  %v7817_v34 = vpop.permute.xlu0 %3662 }
 0x47f   : > { %4732 = vrot.lane.b32.xlu1 %v4711_v35, %s8570_s1  ;;  %v2603_v40 = vpack.c.bf16 %v2594_v24, %v2593_v43  ;;  %v2724_v33 = vmul.f32 %v6282_v8, %v2707_v45  ;;  %v4152_v54 = vadd.f32 %v4136_v60, %v8642_v17  ;;  %v2725_v47 = vmul.f32 %v6282_v8, %v2708_v10  ;;  %v4247_v35 = vld [vmem:[%s8585_s17 + $0x68] sm:$0xff]  ;;  %v4281_v24 = vld [vmem:[%s8664_s6 + $0x60] sm:$0xff] }
 0x480   : > { %v3308_v12 = vmax.f32 %v3292_v30, 0.0  ;;  %v3553_v49 = vmul.f32 %v8607_v1, %v3536_v28  ;;  %v4153_v43 = vadd.f32 %v4137_v58, %v8643_v37  ;;  %v3554_v45 = vmul.f32 %v8607_v1, %v3537_v0  ;;  %8666 = vst [vmem:[#allocation26_spill] sm:$0xff] %v7817_v34  ;;  %v4282_v60 = vld [vmem:[%s8664_s6 + $0x68] sm:$0xff] }
 0x481   : > { %2625 = vrot.lane.b32.xlu0 %v2603_v40, %s8562_s11  ;;  %v2740_v63 = vadd.f32 %v2724_v33, %v2689_v42  ;;  %v3588_v41 = vmul.f32 %v8608_v15, %v3571_v26  ;;  %v4168_v10 = vmax.f32 %v4152_v54, 0.0  ;;  %v2741_v28 = vadd.f32 %v2725_v47, %v2690_v31  ;;  %v3382_v0 = vld [vmem:[%s8665_s22 + $0x30] sm:$0xff]  ;;  %s8668_s11 = sld [smem:[#allocation14_spill]] }
 0x482   : > { %v3318_v39 = vpack.c.bf16 %v3308_v12, %v3307_v56  ;;  %v3589_v30 = vmul.f32 %v8608_v15, %v3572_v51  ;;  %v4169_v40 = vmax.f32 %v4153_v43, 0.0  ;;  %v4263_v1 = vmul.f32 %v6285_v9, %v4246_v48  ;;  %v8669_v33 = vld [vmem:[#allocation32_spill] sm:$0xff]  ;;  %v3383_v51 = vld [vmem:[%s8665_s22 + $0x38] sm:$0xff]  ;;  %v8670_v43 = vld [vmem:[#allocation59_spill] sm:$0xff]  ;;  %s8673_s22 = smov 64   ;;  %v7843_v34 = vpop.permute.xlu0 %2263 }
 0x483   : > { %v2756_v42 = vadd.f32 %v2740_v63, %v8642_v17  ;;  %v3604_v58 = vadd.f32 %v3588_v41, %v3553_v49  ;;  %v2757_v26 = vadd.f32 %v2741_v28, %v8643_v37  ;;  %v4264_v31 = vmul.f32 %v6285_v9, %v4247_v35  ;;  %v3417_v12 = vld [vmem:[%s8667_s8 + $0x30] sm:$0xff]  ;;  %v3418_v63 = vld [vmem:[%s8667_s8 + $0x38] sm:$0xff]  ;;  %v7833_v41 = vpop.permute.xlu1 %2977  ;;  %v8671_v28 = vld [vmem:[#allocation60_spill] sm:$0xff]  ;;  %8676 = vst [vmem:[#allocation61_spill] sm:$0xff] %v7843_v34  ;;  %s8679_s8 = sld [smem:[#allocation68_spill]] }
 0x484   : > { %3339 = vrot.lane.b32.xlu1 %v3318_v39, %s8570_s1  ;;  %v3605_v56 = vadd.f32 %v3589_v30, %v3554_v45  ;;  %v4298_v15 = vmul.f32 %v8669_v33, %v4281_v24  ;;  %v4178_v54 = vpack.c.bf16 %v4169_v40, %v4168_v10  ;;  %v4299_v48 = vmul.f32 %v8669_v33, %v4282_v60  ;;  %v8672_v35 = vld [vmem:[#allocation64_spill] sm:$0xff]  ;;  %s8674_s1 = sld [smem:[#allocation43_spill]]  ;;  %v2173_v33 = vld [vmem:[%s6352_s15 + $0x78] sm:$0xff] }
 0x485   : > { %v2772_v47 = vmax.f32 %v2756_v42, 0.0  ;;  %v3620_v49 = vadd.f32 %v3604_v58, %v8670_v43  ;;  %v2773_v39 = vmax.f32 %v2757_v26, 0.0  ;;  %v3399_v24 = vmul.f32 %v8672_v35, %v3382_v0  ;;  %v8675_v42 = vld [vmem:[#allocation66_spill] sm:$0xff] }
 0x486   : > { %v3621_v45 = vadd.f32 %v3605_v56, %v8671_v28  ;;  %v4314_v30 = vadd.f32 %v4298_v15, %v4263_v1  ;;  %4200 = vrot.lane.b32.xlu0 %v4178_v54, %s8673_s22  ;;  %v4315_v40 = vadd.f32 %v4299_v48, %v4264_v31  ;;  %v3400_v60 = vmul.f32 %v8672_v35, %v3383_v51  ;;  %v2172_v26 = vld [vmem:[%s6352_s15 + $0x70] sm:$0xff]  ;;  %v2851_v54 = vld [vmem:[%s8613_s23 + $0x60] sm:$0xff]  ;;  %v2852_v35 = vld [vmem:[%s8613_s23 + $0x68] sm:$0xff]  ;;  %s8685_s15 = sld [smem:[#allocation18_spill]] }
 0x487   : > { %v2137_v25 = vld [vmem:[%s8668_s11 + $0x70] sm:$0xff]  ;;  %v2138_v44 = vld [vmem:[%s8668_s11 + $0x78] sm:$0xff]  ;;  %v3636_v10 = vmax.f32 %v3620_v49, 0.0  ;;  %v3434_v58 = vmul.f32 %v8675_v42, %v3417_v12  ;;  %v2782_v56 = vpack.c.bf16 %v2773_v39, %v2772_v47  ;;  %v3435_v15 = vmul.f32 %v8675_v42, %v3418_v63  ;;  %s8677_s11 = sld [smem:[#allocation67_spill]] }
 0x488   : > { %v3637_v1 = vmax.f32 %v3621_v45, 0.0  ;;  %v4330_v0 = vadd.f32 %v4314_v30, %v8642_v17  ;;  %v4331_v49 = vadd.f32 %v4315_v40, %v8643_v37  ;;  %v8678_v48 = vld [vmem:[#allocation24_spill] sm:$0xff]  ;;  %v8680_v63 = vld [vmem:[#allocation25_spill] sm:$0xff]  ;;  %v8681_v40 = vld [vmem:[#allocation51_spill] sm:$0xff] }
 0x489   : > { %v3450_v31 = vadd.f32 %v3434_v58, %v3399_v24  ;;  %v2154_v51 = vmul.f32 %v8678_v48, %v2137_v25  ;;  %v2155_v12 = vmul.f32 %v8678_v48, %v2138_v44  ;;  %2804 = vrot.lane.b32.xlu1 %v2782_v56, %s8673_s22  ;;  %v3451_v45 = vadd.f32 %v3435_v15, %v3400_v60  ;;  %v7861_v58 = vpop.permute.xlu1 %4550  ;;  %v2017_v15 = vld [vmem:[%s8679_s8 + $0x30] sm:$0xff]  ;;  %v2018_v48 = vld [vmem:[%s8679_s8 + $0x38] sm:$0xff] }
 0x48a   : > { %v2886_v9 = vld [vmem:[%s8674_s1 + $0x60] sm:$0xff]  ;;  %v3645_v47 = vpack.c.bf16 %v3637_v1, %v3636_v10  ;;  %v4346_v39 = vmax.f32 %v4330_v0, 0.0  ;;  %v2189_v30 = vmul.f32 %v8680_v63, %v2172_v26  ;;  %v2887_v34 = vld [vmem:[%s8674_s1 + $0x68] sm:$0xff]  ;;  %v4347_v42 = vmax.f32 %v4331_v49, 0.0 }
 0x48b   : > { %v3466_v8 = vadd.f32 %v3450_v31, %v8681_v40  ;;  %v2190_v25 = vmul.f32 %v8680_v63, %v2173_v33  ;;  %v2868_v44 = vmul.f32 %v8652_v14, %v2851_v54  ;;  %v8682_v10 = vld [vmem:[#allocation52_spill] sm:$0xff]  ;;  %v2869_v26 = vmul.f32 %v8652_v14, %v2852_v35  ;;  %v7871_v63 = vpop.permute.xlu0 %3840 }
 0x48c   : > { %3668 = vrot.lane.b32.xlu0 %v3645_v47, %s8619_s14  ;;  %v3467_v56 = vadd.f32 %v3451_v45, %v8682_v10  ;;  %v2205_v60 = vadd.f32 %v2189_v30, %v2154_v51  ;;  %v2903_v1 = vmul.f32 %v8620_v55, %v2886_v9  ;;  %v4356_v49 = vpack.c.bf16 %v4347_v42, %v4346_v39  ;;  %v3714_v9 = vld [vmem:[%s8654_s2 + $0x70] sm:$0xff]  ;;  %v3715_v39 = vld [vmem:[%s8654_s2 + $0x78] sm:$0xff] }
 0x48d   : > { %v1982_v24 = vld [vmem:[%s8677_s11 + $0x30] sm:$0xff]  ;;  %v1983_v0 = vld [vmem:[%s8677_s11 + $0x38] sm:$0xff]  ;;  %v3482_v33 = vmax.f32 %v3466_v8, 0.0  ;;  %v2206_v54 = vadd.f32 %v2190_v25, %v2155_v12  ;;  %v2904_v31 = vmul.f32 %v8620_v55, %v2887_v34  ;;  %v2034_v12 = vmul.f32 %v7239_v16, %v2017_v15  ;;  %v4425_v15 = vld [vmem:[%s8656_s19 + $0x68] sm:$0xff] }
 0x48e   : > { %v3483_v47 = vmax.f32 %v3467_v56, 0.0  ;;  %v2221_v51 = vadd.f32 %v2205_v60, %v8670_v43  ;;  %v2919_v45 = vadd.f32 %v2903_v1, %v2868_v44  ;;  %v1999_v35 = vmul.f32 %v7234_v38, %v1982_v24  ;;  %4378 = vrot.lane.b32.xlu1 %v4356_v49, %s8556_s13  ;;  %v3749_v30 = vld [vmem:[%s8655_s10 + $0x70] sm:$0xff]  ;;  %v3750_v60 = vld [vmem:[%s8655_s10 + $0x78] sm:$0xff] }
 0x48f   : > { %v2222_v8 = vadd.f32 %v2206_v54, %v8671_v28  ;;  %v2920_v42 = vadd.f32 %v2904_v31, %v2869_v26  ;;  %v2000_v34 = vmul.f32 %v7234_v38, %v1983_v0  ;;  %v2035_v24 = vmul.f32 %v7239_v16, %v2018_v48  ;;  %v4424_v0 = vld [vmem:[%s8656_s19 + $0x60] sm:$0xff]  ;;  %v7889_v31 = vpop.permute.xlu1 %3156 }
 0x490   : > { %v3495_v25 = vpack.c.bf16 %v3483_v47, %v3482_v33  ;;  %v2237_v56 = vmax.f32 %v2221_v51, 0.0  ;;  %v2935_v44 = vadd.f32 %v2919_v45, %v8642_v17  ;;  %v2050_v54 = vadd.f32 %v2034_v12, %v1999_v35  ;;  %v4459_v45 = vld [vmem:[%s8657_s27 + $0x60] sm:$0xff]  ;;  %v8683_v35 = vld [vmem:[#allocation41_spill] sm:$0xff] }
 0x491   : > { %v2238_v1 = vmax.f32 %v2222_v8, 0.0  ;;  %v2936_v49 = vadd.f32 %v2920_v42, %v8643_v37  ;;  %v3731_v26 = vmul.f32 %v8624_v57, %v3714_v9  ;;  %v2051_v47 = vadd.f32 %v2035_v24, %v2000_v34  ;;  %v7901_v34 = vpop.permute.xlu0 %2442 }
 0x492   : > { %3503 = vst.msk [vmem:[#allocation3 + $0x38] sm:$0xff] %vm721_vm2, %v3495_v25  ;;  %v2951_v33 = vmax.f32 %v2935_v44, 0.0  ;;  %v3732_v51 = vmul.f32 %v8624_v57, %v3715_v39  ;;  %v3766_v48 = vmul.f32 %v6247_v62, %v3749_v30  ;;  %v2066_v42 = vadd.f32 %v2050_v54, %v8681_v40  ;;  %v4460_v25 = vld [vmem:[%s8657_s27 + $0x68] sm:$0xff]  ;;  %v2316_v44 = vld [vmem:[%s8626_s28 + $0x70] sm:$0xff] }
 0x493   : > { %3681 = vst.msk [vmem:[#allocation3 + $0x38] sm:$0xff] %vm2279_vm3, %v8683_v35  ;;  %v2246_v9 = vpack.c.bf16 %v2238_v1, %v2237_v56  ;;  %v2952_v8 = vmax.f32 %v2936_v49, 0.0  ;;  %v3767_v12 = vmul.f32 %v6247_v62, %v3750_v60  ;;  %v2067_v57 = vadd.f32 %v2051_v47, %v8682_v10  ;;  %v2317_v56 = vld [vmem:[%s8626_s28 + $0x78] sm:$0xff]  ;;  %v2351_v40 = vld [vmem:[%s8627_s18 + $0x70] sm:$0xff] }
 0x494   : > { %v3782_v39 = vadd.f32 %v3766_v48, %v3731_v26  ;;  %v4441_v30 = vmul.f32 %v6300_v13, %v4424_v0  ;;  %v4442_v24 = vmul.f32 %v6300_v13, %v4425_v15  ;;  %3859 = vst.msk [vmem:[#allocation3 + $0x38] sm:$0xff] %vm2458_vm4, %v7654_v21  ;;  %v2082_v60 = vmax.f32 %v2066_v42, 0.0  ;;  %v2352_v49 = vld [vmem:[%s8627_s18 + $0x78] sm:$0xff]  ;;  %v3030_v15 = vld [vmem:[%s8630_s25 + $0x60] sm:$0xff]  ;;  %v3031_v48 = vld [vmem:[%s8630_s25 + $0x68] sm:$0xff] }
 0x495   : > { %2269 = vrot.lane.b32.xlu0 %v2246_v9, %s8619_s14  ;;  %v2961_v62 = vpack.c.bf16 %v2952_v8, %v2951_v33  ;;  %v3783_v1 = vadd.f32 %v3767_v12, %v3732_v51  ;;  %v4476_v10 = vmul.f32 %v8629_v32, %v4459_v45  ;;  %4037 = vst.msk [vmem:[#allocation3 + $0x38] sm:$0xff] %vm2637_vm5, %v7722_v23  ;;  %v2083_v54 = vmax.f32 %v2067_v57, 0.0  ;;  %v3065_v45 = vld [vmem:[%s8631_s3 + $0x60] sm:$0xff]  ;;  %v3066_v12 = vld [vmem:[%s8631_s3 + $0x68] sm:$0xff] }
 0x496   : > { %v3798_v26 = vadd.f32 %v3782_v39, %v8670_v43  ;;  %v4477_v21 = vmul.f32 %v8629_v32, %v4460_v25  ;;  %v2333_v0 = vmul.f32 %v8659_v20, %v2316_v44  ;;  %4215 = vst.msk [vmem:[#allocation3 + $0x38] sm:$0xff] %vm2816_vm6, %v7787_v27  ;;  %v2334_v51 = vmul.f32 %v8659_v20, %v2317_v56  ;;  %v4729_v35 = vpop.permute.xlu1 %4728  ;;  %v7936_v39 = vpop.permute.xlu0 %4018  ;;  %v3893_v56 = vld [vmem:[%s6402_s16 + $0x78] sm:$0xff] }
 0x497   : > { %2983 = vrot.lane.b32.xlu1 %v2961_v62, %s8556_s13  ;;  %v3799_v33 = vadd.f32 %v3783_v1, %v8671_v28  ;;  %v4492_v47 = vadd.f32 %v4476_v10, %v4441_v30  ;;  %v2368_v23 = vmul.f32 %v8660_v46, %v2351_v40  ;;  %4393 = vst.msk [vmem:[#allocation3 + $0x38] sm:$0xff] %vm2995_vm7, %v7805_v52  ;;  %v3892_v52 = vld [vmem:[%s6402_s16 + $0x70] sm:$0xff]  ;;  %v8684_v62 = vld [vmem:[#allocation34_spill] sm:$0xff]  ;;  %s8686_s16 = smov 48  }
 0x498   : > { %v2095_v9 = vpack.c.bf16 %v2083_v54, %v2082_v60  ;;  %v3814_v8 = vmax.f32 %v3798_v26, 0.0  ;;  %v4493_v42 = vadd.f32 %v4477_v21, %v4442_v24  ;;  %v2369_v27 = vmul.f32 %v8660_v46, %v2352_v49  ;;  %4571 = vst.msk [vmem:[#allocation3 + $0x38] sm:$0xff] %vm3174_vm8, %v7861_v58  ;;  %v3927_v40 = vld [vmem:[%s6419_s30 + $0x70] sm:$0xff]  ;;  %v3928_v54 = vld [vmem:[%s6419_s30 + $0x78] sm:$0xff]  ;;  %s8687_s30 = smov 112  }
 0x499   : > { %v3815_v20 = vmax.f32 %v3799_v33, 0.0  ;;  %v4508_v25 = vadd.f32 %v4492_v47, %v8642_v17  ;;  %v2384_v44 = vadd.f32 %v2368_v23, %v2333_v0  ;;  %v3047_v57 = vmul.f32 %v8661_v59, %v3030_v15  ;;  %4749 = vst.msk [vmem:[#allocation3 + $0x38] sm:$0xff] %vm3353_vm9, %v4729_v35  ;;  %v4602_v33 = vld [vmem:[%s6650_s20 + $0x60] sm:$0xff]  ;;  %v4603_v47 = vld [vmem:[%s6650_s20 + $0x68] sm:$0xff] }
 0x49a   : > { %2104 = vst.msk [vmem:[#allocation3 + $0x30] sm:$0xff] %vm721_vm2, %v2095_v9  ;;  %v4509_v46 = vadd.f32 %v4493_v42, %v8643_v37  ;;  %v2385_v30 = vadd.f32 %v2369_v27, %v2334_v51  ;;  %v3048_v58 = vmul.f32 %v8661_v59, %v3031_v48  ;;  %v3082_v24 = vmul.f32 %v8638_v19, %v3065_v45  ;;  %v4637_v35 = vld [vmem:[%s6661_s0 + $0x60] sm:$0xff]  ;;  %v4638_v27 = vld [vmem:[%s6661_s0 + $0x68] sm:$0xff] }
 0x49b   : > { %2283 = vst.msk [vmem:[#allocation3 + $0x30] sm:$0xff] %vm2279_vm3, %v8684_v62  ;;  %v3823_v60 = vpack.c.bf16 %v3815_v20, %v3814_v8  ;;  %v4524_v1 = vmax.f32 %v4508_v25, 0.0  ;;  %v2400_v10 = vadd.f32 %v2384_v44, %v8670_v43  ;;  %v3083_v49 = vmul.f32 %v8638_v19, %v3066_v12  ;;  %v2495_v12 = vld [vmem:[%s6427_s7 + $0x70] sm:$0xff] }
 0x49c   : > { %v4525_v26 = vmax.f32 %v4509_v46, 0.0  ;;  %v2401_v21 = vadd.f32 %v2385_v30, %v8671_v28  ;;  %v3098_v0 = vadd.f32 %v3082_v24, %v3047_v57  ;;  %2462 = vst.msk [vmem:[#allocation3 + $0x30] sm:$0xff] %vm2458_vm4, %v7687_v61  ;;  %v3909_v15 = vmul.f32 %v8640_v11, %v3892_v52  ;;  %v2496_v57 = vld [vmem:[%s6427_s7 + $0x78] sm:$0xff]  ;;  %v2530_v52 = vld [vmem:[%s6433_s5 + $0x70] sm:$0xff]  ;;  %s8690_s7 = sld [smem:[#allocation39_spill]] }
 0x49d   : > { %3846 = vrot.lane.b32.xlu0 %v3823_v60, %s8557_s4  ;;  %v2416_v51 = vmax.f32 %v2400_v10, 0.0  ;;  %v3099_v23 = vadd.f32 %v3083_v49, %v3048_v58  ;;  %v3910_v48 = vmul.f32 %v8640_v11, %v3893_v56  ;;  %v3944_v45 = vmul.f32 %v6260_v2, %v3927_v40  ;;  %2641 = vst.msk [vmem:[#allocation3 + $0x30] sm:$0xff] %vm2637_vm5, %v7758_v50  ;;  %v3336_v11 = vpop.permute.xlu1 %3335  ;;  %v2531_v24 = vld [vmem:[%s6433_s5 + $0x78] sm:$0xff]  ;;  %s8692_s5 = sld [smem:[#allocation65_spill]] }
 0x49e   : > { %v4534_v61 = vpack.c.bf16 %v4525_v26, %v4524_v1  ;;  %v2417_v9 = vmax.f32 %v2401_v21, 0.0  ;;  %v3114_v8 = vadd.f32 %v3098_v0, %v8642_v17  ;;  %v3945_v42 = vmul.f32 %v6260_v2, %v3928_v54  ;;  %2820 = vst.msk [vmem:[#allocation3 + $0x30] sm:$0xff] %vm2816_vm6, %v7778_v53  ;;  %v7975_v2 = vpop.permute.xlu0 %2621  ;;  %v3209_v1 = vld [vmem:[%s8603_s21 + $0x60] sm:$0xff]  ;;  %v3210_v26 = vld [vmem:[%s8603_s21 + $0x68] sm:$0xff] }
 0x49f   : > { %v3115_v20 = vadd.f32 %v3099_v23, %v8643_v37  ;;  %v3960_v25 = vadd.f32 %v3944_v45, %v3909_v15  ;;  %v4619_v44 = vmul.f32 %v6314_v18, %v4602_v33  ;;  %v4620_v50 = vmul.f32 %v6314_v18, %v4603_v47  ;;  %2999 = vst.msk [vmem:[#allocation3 + $0x30] sm:$0xff] %vm2995_vm7, %v7833_v41  ;;  %v3244_v21 = vld [vmem:[%s6689_s12 + $0x60] sm:$0xff] }
 0x4a0   : > { %4556 = vrot.lane.b32.xlu1 %v4534_v61, %s8561_s9  ;;  %v2425_v46 = vpack.c.bf16 %v2417_v9, %v2416_v51  ;;  %v3130_v53 = vmax.f32 %v3114_v8, 0.0  ;;  %v3961_v30 = vadd.f32 %v3945_v42, %v3910_v48  ;;  %v4654_v58 = vmul.f32 %v6331_v22, %v4637_v35  ;;  %3178 = vst.msk [vmem:[#allocation3 + $0x30] sm:$0xff] %vm3174_vm8, %v7889_v31  ;;  %v4762_v56 = vld [vmem:[#allocation3 + $0x38] sm:$0xff]  ;;  %v3245_v51 = vld [vmem:[%s6689_s12 + $0x68] sm:$0xff] }
 0x4a1   : > { %v3131_v40 = vmax.f32 %v3115_v20, 0.0  ;;  %v3976_v62 = vadd.f32 %v3960_v25, %v8670_v43  ;;  %v4655_v41 = vmul.f32 %v6331_v22, %v4638_v27  ;;  %v2512_v60 = vmul.f32 %v6265_v3, %v2495_v12  ;;  %3357 = vst.msk [vmem:[#allocation3 + $0x30] sm:$0xff] %vm3353_vm9, %v3336_v11  ;;  %4783 = vmatprep.subr.bf16.mxu1 %v4762_v56  ;;  %v4071_v42 = vld [vmem:[%s6443_s26 + $0x78] sm:$0xff]  ;;  %v4105_v27 = vld [vmem:[%s8604_s24 + $0x70] sm:$0xff] }
 0x4a2   : > { %2448 = vrot.lane.b32.xlu0 %v2425_v46, %s8557_s4  ;;  %v3977_v10 = vadd.f32 %v3961_v30, %v8671_v28  ;;  %v4670_v49 = vadd.f32 %v4654_v58, %v4619_v44  ;;  %v2513_v31 = vmul.f32 %v6265_v3, %v2496_v57  ;;  %v2547_v54 = vmul.f32 %v6268_v4, %v2530_v52  ;;  %v4070_v3 = vld [vmem:[%s6443_s26 + $0x70] sm:$0xff]  ;;  %v8004_v12 = vpop.permute.xlu0 %4196  ;;  %v2675_v58 = vld [vmem:[%s8685_s15 + $0x78] sm:$0xff]  ;;  %s8703_s4 = sld [smem:[#allocation77_spill]] }
 0x4a3   : > { %v3140_v0 = vpack.c.bf16 %v3131_v40, %v3130_v53  ;;  %v3992_v15 = vmax.f32 %v3976_v62, 0.0  ;;  %v4671_v33 = vadd.f32 %v4655_v41, %v4620_v50  ;;  %v2548_v47 = vmul.f32 %v6268_v4, %v2531_v24  ;;  %v4106_v50 = vld [vmem:[%s8604_s24 + $0x78] sm:$0xff]  ;;  %v2674_v30 = vld [vmem:[%s8685_s15 + $0x70] sm:$0xff]  ;;  %v8013_v24 = vpop.permute.xlu1 %2800 }
 0x4a4   : > { %v3993_v23 = vmax.f32 %v3977_v10, 0.0  ;;  %v4686_v48 = vadd.f32 %v4670_v49, %v8642_v17  ;;  %v2563_v45 = vadd.f32 %v2547_v54, %v2512_v60  ;;  %v3226_v35 = vmul.f32 %v6345_v29, %v3209_v1  ;;  %v2709_v60 = vld [vmem:[%s6482_s29 + $0x70] sm:$0xff] }
 0x4a5   : > { %3162 = vrot.lane.b32.xlu1 %v3140_v0, %s8561_s9  ;;  %v4687_v61 = vadd.f32 %v4671_v33, %v8643_v37  ;;  %v2564_v9 = vadd.f32 %v2548_v47, %v2513_v31  ;;  %v3227_v8 = vmul.f32 %v6345_v29, %v3210_v26  ;;  %v3261_v4 = vmul.f32 %v6365_v36, %v3244_v21  ;;  %v2710_v26 = vld [vmem:[%s6482_s29 + $0x78] sm:$0xff]  ;;  %v4248_v21 = vld [vmem:[%s8585_s17 + $0x70] sm:$0xff]  ;;  %s8702_s29 = sld [smem:[#allocation13_spill]] }
 0x4a6   : > { %v4001_v11 = vpack.c.bf16 %v3993_v23, %v3992_v15  ;;  %v4702_v20 = vmax.f32 %v4686_v48, 0.0  ;;  %v2579_v25 = vadd.f32 %v2563_v45, %v8670_v43  ;;  %v3262_v44 = vmul.f32 %v6365_v36, %v3245_v51  ;;  %v4249_v47 = vld [vmem:[%s8585_s17 + $0x78] sm:$0xff]  ;;  %v4283_v51 = vld [vmem:[%s8664_s6 + $0x70] sm:$0xff]  ;;  %v8688_v45 = vld [vmem:[#allocation30_spill] sm:$0xff] }
 0x4a7   : > { %v4703_v57 = vmax.f32 %v4687_v61, 0.0  ;;  %v2580_v52 = vadd.f32 %v2564_v9, %v8671_v28  ;;  %v3277_v46 = vadd.f32 %v3261_v4, %v3226_v35  ;;  %v4087_v53 = vmul.f32 %v6271_v5, %v4070_v3  ;;  %v4284_v3 = vld [vmem:[%s8664_s6 + $0x78] sm:$0xff]  ;;  %v8031_v61 = vpop.permute.xlu0 %3664  ;;  %v8689_v4 = vld [vmem:[#allocation31_spill] sm:$0xff] }
 0x4a8   : > { %4024 = vrot.lane.b32.xlu0 %v4001_v11, %s8686_s16  ;;  %v2595_v56 = vmax.f32 %v2579_v25, 0.0  ;;  %v3278_v40 = vadd.f32 %v3262_v44, %v3227_v8  ;;  %v4088_v62 = vmul.f32 %v6271_v5, %v4071_v42  ;;  %v4122_v41 = vmul.f32 %v6276_v6, %v4105_v27  ;;  %v4761_v1 = vld [vmem:[#allocation3 + $0x30] sm:$0xff] }
 0x4a9   : > { %v4712_v10 = vpack.c.bf16 %v4703_v57, %v4702_v20  ;;  %v2596_v49 = vmax.f32 %v2580_v52, 0.0  ;;  %v3293_v31 = vadd.f32 %v3277_v46, %v8642_v17  ;;  %v4123_v54 = vmul.f32 %v6276_v6, %v4106_v50  ;;  %4784 = vmatpush1.bf16.msra.mxu1 %v4761_v1  ;;  %v2853_v27 = vld [vmem:[%s8613_s23 + $0x70] sm:$0xff]  ;;  %v2854_v57 = vld [vmem:[%s8613_s23 + $0x78] sm:$0xff]  ;;  %v8043_v46 = vpop.permute.xlu1 %4374 }
 0x4aa   : > { %v3294_v0 = vadd.f32 %v3278_v40, %v8643_v37  ;;  %v4138_v15 = vadd.f32 %v4122_v41, %v4087_v53  ;;  %v2691_v5 = vmul.f32 %v6279_v7, %v2674_v30  ;;  %v2692_v33 = vmul.f32 %v6279_v7, %v2675_v58  ;;  %v8691_v44 = vld [vmem:[#allocation32_spill] sm:$0xff]  ;;  %v2889_v40 = vld [vmem:[%s8674_s1 + $0x78] sm:$0xff] }
 0x4ab   : > { %4734 = vrot.lane.b32.xlu1 %v4712_v10, %s8687_s30  ;;  %v2604_v23 = vpack.c.bf16 %v2596_v49, %v2595_v56  ;;  %v3309_v48 = vmax.f32 %v3293_v31, 0.0  ;;  %v4139_v6 = vadd.f32 %v4123_v54, %v4088_v62  ;;  %v2726_v35 = vmul.f32 %v8688_v45, %v2709_v60  ;;  %v2888_v52 = vld [vmem:[%s8674_s1 + $0x70] sm:$0xff]  ;;  %v3384_v10 = vld [vmem:[%s8690_s7 + $0x40] sm:$0xff]  ;;  %s8701_s1 = sld [smem:[#allocation78_spill]] }
 0x4ac   : > { %v3310_v9 = vmax.f32 %v3294_v0, 0.0  ;;  %v4154_v8 = vadd.f32 %v4138_v15, %v8670_v43  ;;  %v2727_v7 = vmul.f32 %v8688_v45, %v2710_v26  ;;  %v4265_v42 = vmul.f32 %v8689_v4, %v4248_v21  ;;  %v3385_v21 = vld [vmem:[%s8690_s7 + $0x48] sm:$0xff]  ;;  %v3419_v0 = vld [vmem:[%s8692_s5 + $0x40] sm:$0xff] }
 0x4ad   : > { %2627 = vrot.lane.b32.xlu0 %v2604_v23, %s8686_s16  ;;  %v4155_v11 = vadd.f32 %v4139_v6, %v8671_v28  ;;  %v2742_v20 = vadd.f32 %v2726_v35, %v2691_v5  ;;  %v4266_v25 = vmul.f32 %v8689_v4, %v4249_v47  ;;  %v4300_v50 = vmul.f32 %v8691_v44, %v4283_v51  ;;  %v3420_v51 = vld [vmem:[%s8692_s5 + $0x48] sm:$0xff]  ;;  %v8059_v23 = vpop.permute.xlu0 %2265  ;;  %v8694_v4 = vld [vmem:[#allocation66_spill] sm:$0xff] }
 0x4ae   : > { %v3319_v53 = vpack.c.bf16 %v3310_v9, %v3309_v48  ;;  %v4170_v30 = vmax.f32 %v4154_v8, 0.0  ;;  %v2743_v58 = vadd.f32 %v2727_v7, %v2692_v33  ;;  %v4301_v56 = vmul.f32 %v8691_v44, %v4284_v3  ;;  %v4426_v3 = vld [vmem:[%s8656_s19 + $0x70] sm:$0xff]  ;;  %v4427_v9 = vld [vmem:[%s8656_s19 + $0x78] sm:$0xff] }
 0x4af   : > { %v4171_v62 = vmax.f32 %v4155_v11, 0.0  ;;  %v2758_v41 = vadd.f32 %v2742_v20, %v8670_v43  ;;  %v4316_v60 = vadd.f32 %v4300_v50, %v4265_v42  ;;  %v2870_v1 = vmul.f32 %v8652_v14, %v2853_v27  ;;  %v4461_v27 = vld [vmem:[%s8657_s27 + $0x70] sm:$0xff] }
 0x4b0   : > { %3341 = vrot.lane.b32.xlu1 %v3319_v53, %s8687_s30  ;;  %v2759_v49 = vadd.f32 %v2743_v58, %v8671_v28  ;;  %v4317_v31 = vadd.f32 %v4301_v56, %v4266_v25  ;;  %v2871_v54 = vmul.f32 %v8652_v14, %v2854_v57  ;;  %v2905_v26 = vmul.f32 %v8620_v55, %v2888_v52  ;;  %v8693_v14 = vld [vmem:[#allocation64_spill] sm:$0xff]  ;;  %v8069_v11 = vpop.permute.xlu1 %2979  ;;  %v4462_v57 = vld [vmem:[%s8657_s27 + $0x78] sm:$0xff]  ;;  %v3032_v52 = vld [vmem:[%s8630_s25 + $0x70] sm:$0xff] }
 0x4b1   : > { %v4179_v15 = vpack.c.bf16 %v4171_v62, %v4170_v30  ;;  %v2774_v5 = vmax.f32 %v2758_v41, 0.0  ;;  %v4332_v33 = vadd.f32 %v4316_v60, %v8670_v43  ;;  %v2906_v47 = vmul.f32 %v8620_v55, %v2889_v40  ;;  %v3033_v40 = vld [vmem:[%s8630_s25 + $0x78] sm:$0xff]  ;;  %v3067_v62 = vld [vmem:[%s8631_s3 + $0x70] sm:$0xff] }
 0x4b2   : > { %v2775_v48 = vmax.f32 %v2759_v49, 0.0  ;;  %v4333_v6 = vadd.f32 %v4317_v31, %v8671_v28  ;;  %v2921_v45 = vadd.f32 %v2905_v26, %v2870_v1  ;;  %v3401_v35 = vmul.f32 %v8693_v14, %v3384_v10  ;;  %v3068_v49 = vld [vmem:[%s8631_s3 + $0x78] sm:$0xff] }
 0x4b3   : > { %4202 = vrot.lane.b32.xlu0 %v4179_v15, %s8673_s22  ;;  %v4348_v8 = vmax.f32 %v4332_v33, 0.0  ;;  %v2922_v7 = vadd.f32 %v2906_v47, %v2871_v54  ;;  %v3402_v55 = vmul.f32 %v8693_v14, %v3385_v21  ;;  %v3436_v42 = vmul.f32 %v8694_v4, %v3419_v0  ;;  %v8695_v54 = vld [vmem:[#allocation53_spill] sm:$0xff]  ;;  %v1984_v0 = vld [vmem:[%s8677_s11 + $0x40] sm:$0xff] }
 0x4b4   : > { %v2783_v20 = vpack.c.bf16 %v2775_v48, %v2774_v5  ;;  %v4349_v25 = vmax.f32 %v4333_v6, 0.0  ;;  %v2937_v44 = vadd.f32 %v2921_v45, %v8670_v43  ;;  %v3437_v50 = vmul.f32 %v8694_v4, %v3420_v51  ;;  %v8696_v5 = vld [vmem:[#allocation54_spill] sm:$0xff]  ;;  %v1985_v6 = vld [vmem:[%s8677_s11 + $0x48] sm:$0xff]  ;;  %v2019_v45 = vld [vmem:[%s8679_s8 + $0x40] sm:$0xff] }
 0x4b5   : > { %v2938_v53 = vadd.f32 %v2922_v7, %v8671_v28  ;;  %v3452_v30 = vadd.f32 %v3436_v42, %v3401_v35  ;;  %v4443_v58 = vmul.f32 %v6300_v13, %v4426_v3  ;;  %v4444_v56 = vmul.f32 %v6300_v13, %v4427_v9  ;;  %v8087_v15 = vpop.permute.xlu0 %3842 }
 0x4b6   : > { %2806 = vrot.lane.b32.xlu1 %v2783_v20, %s8673_s22  ;;  %v4357_v41 = vpack.c.bf16 %v4349_v25, %v4348_v8  ;;  %v2953_v60 = vmax.f32 %v2937_v44, 0.0  ;;  %v3453_v1 = vadd.f32 %v3437_v50, %v3402_v55  ;;  %v4478_v10 = vmul.f32 %v8629_v32, %v4461_v27  ;;  %v2020_v8 = vld [vmem:[%s8679_s8 + $0x48] sm:$0xff]  ;;  %v4604_v20 = vld [vmem:[%s6650_s20 + $0x70] sm:$0xff] }
 0x4b7   : > { %v2954_v31 = vmax.f32 %v2938_v53, 0.0  ;;  %v3468_v26 = vadd.f32 %v3452_v30, %v8695_v54  ;;  %v4479_v21 = vmul.f32 %v8629_v32, %v4462_v57  ;;  %v3049_v13 = vmul.f32 %v8661_v59, %v3032_v52  ;;  %v4605_v57 = vld [vmem:[%s6650_s20 + $0x78] sm:$0xff]  ;;  %v4639_v52 = vld [vmem:[%s6661_s0 + $0x70] sm:$0xff] }
 0x4b8   : > { %4380 = vrot.lane.b32.xlu0 %v4357_v41, %s8556_s13  ;;  %v3469_v33 = vadd.f32 %v3453_v1, %v8696_v5  ;;  %v4494_v47 = vadd.f32 %v4478_v10, %v4443_v58  ;;  %v3050_v51 = vmul.f32 %v8661_v59, %v3033_v40  ;;  %v3084_v48 = vmul.f32 %v8638_v19, %v3067_v62  ;;  %v8097_v7 = vpop.permute.xlu1 %4552  ;;  %v4640_v40 = vld [vmem:[%s6661_s0 + $0x78] sm:$0xff]  ;;  %v3211_v10 = vld [vmem:[%s8603_s21 + $0x70] sm:$0xff] }
 0x4b9   : > { %v2962_v35 = vpack.c.bf16 %v2954_v31, %v2953_v60  ;;  %v3484_v32 = vmax.f32 %v3468_v26, 0.0  ;;  %v4495_v3 = vadd.f32 %v4479_v21, %v4444_v56  ;;  %v3085_v9 = vmul.f32 %v8638_v19, %v3068_v49  ;;  %v3212_v49 = vld [vmem:[%s8603_s21 + $0x78] sm:$0xff] }
 0x4ba   : > { %v3485_v55 = vmax.f32 %v3469_v33, 0.0  ;;  %v4510_v42 = vadd.f32 %v4494_v47, %v8670_v43  ;;  %v3100_v27 = vadd.f32 %v3084_v48, %v3049_v13  ;;  %v2001_v59 = vmul.f32 %v7234_v38, %v1984_v0  ;;  %v3246_v33 = vld [vmem:[%s6689_s12 + $0x70] sm:$0xff]  ;;  %v8697_v47 = vld [vmem:[#allocation26_spill] sm:$0xff] }
 0x4bb   : > { %2985 = vrot.lane.b32.xlu1 %v2962_v35, %s8556_s13  ;;  %v4511_v25 = vadd.f32 %v4495_v3, %v8671_v28  ;;  %v3101_v44 = vadd.f32 %v3085_v9, %v3050_v51  ;;  %v2002_v19 = vmul.f32 %v7234_v38, %v1985_v6  ;;  %v2036_v50 = vmul.f32 %v7239_v16, %v2019_v45  ;;  %v8115_v31 = vpop.permute.xlu0 %2444  ;;  %v3247_v35 = vld [vmem:[%s6689_s12 + $0x78] sm:$0xff]  ;;  %s5241_s13 = sshll.u32 %s8702_s29, 4  ;;  %s8704_s12 = sld [smem:[#allocation79_spill]] }
 0x4bc   : > { %v3496_v53 = vpack.c.bf16 %v3485_v55, %v3484_v32  ;;  %v4526_v30 = vmax.f32 %v4510_v42, 0.0  ;;  %v3116_v58 = vadd.f32 %v3100_v27, %v8670_v43  ;;  %v2037_v56 = vmul.f32 %v7239_v16, %v2020_v8  ;;  %v3386_v32 = vld [vmem:[%s8690_s7 + $0x50] sm:$0xff]  ;;  %v3387_v42 = vld [vmem:[%s8690_s7 + $0x58] sm:$0xff] }
 0x4bd   : > { %v4527_v62 = vmax.f32 %v4511_v25, 0.0  ;;  %v3117_v41 = vadd.f32 %v3101_v44, %v8671_v28  ;;  %v2052_v60 = vadd.f32 %v2036_v50, %v2001_v59  ;;  %v4621_v1 = vmul.f32 %v6314_v18, %v4604_v20 }
 0x4be   : > { %3504 = vst.msk [vmem:[#allocation3 + $0x48] sm:$0xff] %vm721_vm2, %v3496_v53  ;;  %v3132_v26 = vmax.f32 %v3116_v58, 0.0  ;;  %v2053_v21 = vadd.f32 %v2037_v56, %v2002_v19  ;;  %v4622_v13 = vmul.f32 %v6314_v18, %v4605_v57  ;;  %v4656_v0 = vmul.f32 %v6331_v22, %v4639_v52  ;;  %v1986_v19 = vld [vmem:[%s8677_s11 + $0x50] sm:$0xff] }
 0x4bf   : > { %3682 = vst.msk [vmem:[#allocation3 + $0x48] sm:$0xff] %vm2279_vm3, %v8697_v47  ;;  %v4535_v51 = vpack.c.bf16 %v4527_v62, %v4526_v30  ;;  %v3133_v48 = vmax.f32 %v3117_v41, 0.0  ;;  %v2068_v6 = vadd.f32 %v2052_v60, %v8695_v54  ;;  %v4657_v45 = vmul.f32 %v6331_v22, %v4640_v40  ;;  %v8127_v3 = vpop.permute.xlu1 %3158  ;;  %v3421_v54 = vld [vmem:[%s8692_s5 + $0x50] sm:$0xff]  ;;  %v2022_v62 = vld [vmem:[%s8679_s8 + $0x58] sm:$0xff] }
 0x4c0   : > { %v2069_v18 = vadd.f32 %v2053_v21, %v8696_v5  ;;  %v4672_v9 = vadd.f32 %v4656_v0, %v4621_v1  ;;  %v3228_v8 = vmul.f32 %v6345_v29, %v3211_v10  ;;  %v3229_v55 = vmul.f32 %v6345_v29, %v3212_v49  ;;  %3860 = vst.msk [vmem:[#allocation3 + $0x48] sm:$0xff] %vm2458_vm4, %v7871_v63  ;;  %v3422_v5 = vld [vmem:[%s8692_s5 + $0x58] sm:$0xff]  ;;  %v8147_v50 = vpop.permute.xlu0 %4020  ;;  %v3388_v49 = vld [vmem:[%s8690_s7 + $0x60] sm:$0xff]  ;;  %v3389_v0 = vld [vmem:[%s8690_s7 + $0x68] sm:$0xff] }
 0x4c1   : > { %4558 = vrot.lane.b32.xlu0 %v4535_v51, %s8561_s9  ;;  %v3141_v22 = vpack.c.bf16 %v3133_v48, %v3132_v26  ;;  %v2084_v27 = vmax.f32 %v2068_v6, 0.0  ;;  %v4673_v59 = vadd.f32 %v4657_v45, %v4622_v13  ;;  %v3263_v20 = vmul.f32 %v6365_v36, %v3246_v33  ;;  %4038 = vst.msk [vmem:[#allocation3 + $0x48] sm:$0xff] %vm2637_vm5, %v7936_v39  ;;  %v3423_v33 = vld [vmem:[%s8692_s5 + $0x60] sm:$0xff]  ;;  %v8698_v47 = vld [vmem:[#allocation61_spill] sm:$0xff]  ;;  %s354_s27 = scalar_lea.vmem %s8704_s12, %s5241_s13 }
 0x4c2   : > { %v2085_v29 = vmax.f32 %v2069_v18, 0.0  ;;  %v4688_v25 = vadd.f32 %v4672_v9, %v8670_v43  ;;  %v3264_v63 = vmul.f32 %v6365_v36, %v3247_v35  ;;  %4216 = vst.msk [vmem:[#allocation3 + $0x48] sm:$0xff] %vm2816_vm6, %v8004_v12  ;;  %v3403_v44 = vmul.f32 %v8693_v14, %v3386_v32  ;;  %v1987_v36 = vld [vmem:[%s8677_s11 + $0x58] sm:$0xff]  ;;  %v2021_v12 = vld [vmem:[%s8679_s8 + $0x50] sm:$0xff]  ;;  %v8699_v6 = vld [vmem:[#allocation55_spill] sm:$0xff] }
 0x4c3   : > { %3164 = vrot.lane.b32.xlu1 %v3141_v22, %s8561_s9  ;;  %v4689_v39 = vadd.f32 %v4673_v59, %v8671_v28  ;;  %v3279_v57 = vadd.f32 %v3263_v20, %v3228_v8  ;;  %v3404_v52 = vmul.f32 %v8693_v14, %v3387_v42  ;;  %v3438_v53 = vmul.f32 %v8694_v4, %v3421_v54  ;;  %v4731_v41 = vpop.permute.xlu1 %4730  ;;  %v3424_v32 = vld [vmem:[%s8692_s5 + $0x68] sm:$0xff]  ;;  %v1988_v22 = vld [vmem:[%s8677_s11 + $0x60] sm:$0xff] }
 0x4c4   : > { %4394 = vst.msk [vmem:[#allocation3 + $0x48] sm:$0xff] %vm2995_vm7, %v8043_v46  ;;  %v2096_v30 = vpack.c.bf16 %v2085_v29, %v2084_v27  ;;  %v4704_v58 = vmax.f32 %v4688_v25, 0.0  ;;  %v3280_v56 = vadd.f32 %v3264_v63, %v3229_v55  ;;  %v3439_v40 = vmul.f32 %v8694_v4, %v3422_v5  ;;  %v8700_v9 = vld [vmem:[#allocation56_spill] sm:$0xff]  ;;  %v2023_v29 = vld [vmem:[%s8679_s8 + $0x60] sm:$0xff] }
 0x4c5   : > { %4572 = vst.msk [vmem:[#allocation3 + $0x48] sm:$0xff] %vm3174_vm8, %v8097_v7  ;;  %v4705_v60 = vmax.f32 %v4689_v39, 0.0  ;;  %v3295_v1 = vadd.f32 %v3279_v57, %v8670_v43  ;;  %v3454_v10 = vadd.f32 %v3438_v53, %v3403_v44  ;;  %v2003_v46 = vmul.f32 %v7234_v38, %v1986_v19  ;;  %v1989_v27 = vld [vmem:[%s8677_s11 + $0x68] sm:$0xff]  ;;  %v4771_v63 = vld [vmem:[%s8701_s1] sm:$0xff] }
 0x4c6   : > { %4750 = vst.msk [vmem:[#allocation3 + $0x48] sm:$0xff] %vm3353_vm9, %v4731_v41  ;;  %v3296_v26 = vadd.f32 %v3280_v56, %v8671_v28  ;;  %v3455_v21 = vadd.f32 %v3439_v40, %v3404_v52  ;;  %v2004_v13 = vmul.f32 %v7234_v38, %v1987_v36  ;;  %v2038_v7 = vmul.f32 %v7239_v16, %v2021_v12  ;;  %v2024_v57 = vld [vmem:[%s8679_s8 + $0x68] sm:$0xff]  ;;  %v3390_v52 = vld [vmem:[%s8690_s7 + $0x70] sm:$0xff] }
 0x4c7   : > { %2105 = vst.msk [vmem:[#allocation3 + $0x40] sm:$0xff] %vm721_vm2, %v2096_v30  ;;  %v4713_v51 = vpack.c.bf16 %v4705_v60, %v4704_v58  ;;  %v3311_v48 = vmax.f32 %v3295_v1, 0.0  ;;  %v3470_v45 = vadd.f32 %v3454_v10, %v8699_v6  ;;  %v2039_v35 = vmul.f32 %v7239_v16, %v2022_v62  ;;  %v8179_v42 = vpop.permute.xlu0 %2623  ;;  %v3425_v58 = vld [vmem:[%s8692_s5 + $0x70] sm:$0xff] }
 0x4c8   : > { %2284 = vst.msk [vmem:[#allocation3 + $0x40] sm:$0xff] %vm2279_vm3, %v8698_v47  ;;  %v3312_v18 = vmax.f32 %v3296_v26, 0.0  ;;  %v3471_v8 = vadd.f32 %v3455_v21, %v8700_v9  ;;  %v2054_v55 = vadd.f32 %v2038_v7, %v2003_v46  ;;  %v3405_v54 = vmul.f32 %v8693_v14, %v3388_v49  ;;  %v1990_v26 = vld [vmem:[%s8677_s11 + $0x70] sm:$0xff] }
 0x4c9   : > { %2463 = vst.msk [vmem:[#allocation3 + $0x40] sm:$0xff] %vm2458_vm4, %v7901_v34  ;;  %4736 = vrot.lane.b32.xlu0 %v4713_v51, %s8687_s30  ;;  %v3486_v59 = vmax.f32 %v3470_v45, 0.0  ;;  %v2055_v20 = vadd.f32 %v2039_v35, %v2004_v13  ;;  %v3406_v34 = vmul.f32 %v8693_v14, %v3389_v0  ;;  %v3440_v5 = vmul.f32 %v8694_v4, %v3423_v33  ;;  %v3338_v19 = vpop.permute.xlu1 %3337  ;;  %v1991_v33 = vld [vmem:[%s8677_s11 + $0x78] sm:$0xff]  ;;  %v2025_v47 = vld [vmem:[%s8679_s8 + $0x70] sm:$0xff] }
 0x4ca   : > { %2642 = vst.msk [vmem:[#allocation3 + $0x40] sm:$0xff] %vm2637_vm5, %v7975_v2  ;;  %v3320_v25 = vpack.c.bf16 %v3312_v18, %v3311_v48  ;;  %v3487_v44 = vmax.f32 %v3471_v8, 0.0  ;;  %v2070_v2 = vadd.f32 %v2054_v55, %v8699_v6  ;;  %v3441_v39 = vmul.f32 %v8694_v4, %v3424_v32  ;;  %v2026_v32 = vld [vmem:[%s8679_s8 + $0x78] sm:$0xff] }
 0x4cb   : > { %2821 = vst.msk [vmem:[#allocation3 + $0x40] sm:$0xff] %vm2816_vm6, %v8013_v24  ;;  %v2071_v53 = vadd.f32 %v2055_v20, %v8700_v9  ;;  %v3456_v36 = vadd.f32 %v3440_v5, %v3405_v54  ;;  %v2005_v12 = vmul.f32 %v7234_v38, %v1988_v22  ;;  %v2006_v30 = vmul.f32 %v7234_v38, %v1989_v27  ;;  %v3391_v24 = vld [vmem:[%s8690_s7 + $0x78] sm:$0xff] }
 0x4cc   : > { %3000 = vst.msk [vmem:[#allocation3 + $0x40] sm:$0xff] %vm2995_vm7, %v8069_v11  ;;  %3343 = vrot.lane.b32.xlu1 %v3320_v25, %s8687_s30  ;;  %v3497_v56 = vpack.c.bf16 %v3487_v44, %v3486_v59  ;;  %v2086_v40 = vmax.f32 %v2070_v2, 0.0  ;;  %v3457_v41 = vadd.f32 %v3441_v39, %v3406_v34  ;;  %v2040_v60 = vmul.f32 %v7239_v16, %v2023_v29  ;;  %v3426_v11 = vld [vmem:[%s8692_s5 + $0x78] sm:$0xff]  ;;  %v4199_v10 = vpop.permute.xlu0 %4198 }
 0x4cd   : > { %3179 = vst.msk [vmem:[#allocation3 + $0x40] sm:$0xff] %vm3174_vm8, %v8127_v3  ;;  %v4764_v62 = vld [vmem:[#allocation3 + $0x48] sm:$0xff]  ;;  %4774 = vperm.xlu0 %5599, %v4771_v63   ;;  %v2087_v1 = vmax.f32 %v2071_v53, 0.0  ;;  %v3472_v46 = vadd.f32 %v3456_v36, %v8642_v17  ;;  %v2041_v49 = vmul.f32 %v7239_v16, %v2024_v57  ;;  %v3407_v3 = vmul.f32 %v8693_v14, %v3390_v52 }
 0x4ce   : > { %3358 = vst.msk [vmem:[#allocation3 + $0x40] sm:$0xff] %vm3353_vm9, %v3338_v19  ;;  %4785 = vmatprep.subr.bf16.mxu1 %v4764_v62  ;;  %v3473_v21 = vadd.f32 %v3457_v41, %v8643_v37  ;;  %v2056_v13 = vadd.f32 %v2040_v60, %v2005_v12  ;;  %v3408_v7 = vmul.f32 %v8693_v14, %v3391_v24  ;;  %v2803_v48 = vpop.permute.xlu1 %2802 }
 0x4cf   : > { %3505 = vst.msk [vmem:[#allocation3 + $0x58] sm:$0xff] %vm721_vm2, %v3497_v56  ;;  %v3442_v0 = vmul.f32 %v8694_v4, %v3425_v58  ;;  %v2097_v51 = vpack.c.bf16 %v2087_v1, %v2086_v40  ;;  %v3488_v6 = vmax.f32 %v3472_v46, 0.0  ;;  %v2057_v45 = vadd.f32 %v2041_v49, %v2006_v30 }
 0x4d0   : > { %3683 = vst.msk [vmem:[#allocation3 + $0x58] sm:$0xff] %vm2279_vm3, %v8031_v61  ;;  %v3443_v35 = vmul.f32 %v8694_v4, %v3426_v11  ;;  %v3489_v18 = vmax.f32 %v3473_v21, 0.0  ;;  %v2072_v14 = vadd.f32 %v2056_v13, %v8642_v17  ;;  %v2007_v8 = vmul.f32 %v7234_v38, %v1990_v26 }
 0x4d1   : > { %3861 = vst.msk [vmem:[#allocation3 + $0x58] sm:$0xff] %vm2458_vm4, %v8087_v15  ;;  %v3458_v9 = vadd.f32 %v3442_v0, %v3407_v3  ;;  %v2073_v61 = vadd.f32 %v2057_v45, %v8643_v37  ;;  %v2008_v4 = vmul.f32 %v7234_v38, %v1991_v33  ;;  %v2042_v54 = vmul.f32 %v7239_v16, %v2025_v47  ;;  %v3667_v15 = vpop.permute.xlu0 %3666 }
 0x4d2   : > { %2106 = vst.msk [vmem:[#allocation3 + $0x50] sm:$0xff] %vm721_vm2, %v2097_v51  ;;  %v3459_v55 = vadd.f32 %v3443_v35, %v3408_v7  ;;  %v3498_v17 = vpack.c.bf16 %v3489_v18, %v3488_v6  ;;  %v2088_v22 = vmax.f32 %v2072_v14, 0.0  ;;  %v2043_v59 = vmul.f32 %v7239_v16, %v2026_v32 }
 0x4d3   : > { %4039 = vst.msk [vmem:[#allocation3 + $0x58] sm:$0xff] %vm2637_vm5, %v8147_v50  ;;  %v3474_v27 = vadd.f32 %v3458_v9, %v8670_v43  ;;  %v2089_v37 = vmax.f32 %v2073_v61, 0.0  ;;  %v2058_v50 = vadd.f32 %v2042_v54, %v2007_v8  ;;  %v4754_v9 = vld [vmem:[%s8703_s4] sm:$0xf] }
 0x4d4   : > { %2285 = vst.msk [vmem:[#allocation3 + $0x50] sm:$0xff] %vm2279_vm3, %v8059_v23  ;;  %v3475_v38 = vadd.f32 %v3459_v55, %v8671_v28  ;;  %v2059_v34 = vadd.f32 %v2043_v59, %v2008_v4  ;;  %v4377_v16 = vpop.permute.xlu1 %4376 }
 0x4d5   : > { %4217 = vst.msk [vmem:[#allocation3 + $0x58] sm:$0xff] %vm2816_vm6, %v4199_v10  ;;  %v4763_v23 = vld [vmem:[#allocation3 + $0x40] sm:$0xff]  ;;  %v3490_v20 = vmax.f32 %v3474_v27, 0.0  ;;  %v2098_v5 = vpack.c.bf16 %v2089_v37, %v2088_v22  ;;  %v2074_v29 = vadd.f32 %v2058_v50, %v8670_v43 }
 0x4d6   : > { %2464 = vst.msk [vmem:[#allocation3 + $0x50] sm:$0xff] %vm2458_vm4, %v8115_v31  ;;  %4786 = vmatpush1.bf16.msra.mxu1 %v4763_v23  ;;  %v3491_v31 = vmax.f32 %v3475_v38, 0.0  ;;  %v2075_v25 = vadd.f32 %v2059_v34, %v8671_v28 }
 0x4d7   : > { %2643 = vst.msk [vmem:[#allocation3 + $0x50] sm:$0xff] %vm2637_vm5, %v8179_v42  ;;  %v2090_v63 = vmax.f32 %v2074_v29, 0.0 }
 0x4d8   : > { %3506 = vst.msk [vmem:[#allocation3 + $0x68] sm:$0xff] %vm721_vm2, %v3498_v17  ;;  %2107 = vst.msk [vmem:[#allocation3 + $0x60] sm:$0xff] %vm721_vm2, %v2098_v5  ;;  %v3499_v42 = vpack.c.bf16 %v3491_v31, %v3490_v20  ;;  %v2091_v44 = vmax.f32 %v2075_v25, 0.0 }
 0x4d9   : > { %2822 = vst.msk [vmem:[#allocation3 + $0x50] sm:$0xff] %vm2816_vm6, %v2803_v48 }
 0x4da   : > { %3684 = vst.msk [vmem:[#allocation3 + $0x68] sm:$0xff] %vm2279_vm3, %v3667_v15  ;;  %v2099_v2 = vpack.c.bf16 %v2091_v44, %v2090_v63  ;;  %v2268_v19 = vpop.permute.xlu0 %2267 }
 0x4db   : > { %4395 = vst.msk [vmem:[#allocation3 + $0x58] sm:$0xff] %vm2995_vm7, %v4377_v16 }
 0x4dc   : > { %3507 = vst.msk [vmem:[#allocation3 + $0x78] sm:$0xff] %vm721_vm2, %v3499_v42  ;;  %2108 = vst.msk [vmem:[#allocation3 + $0x70] sm:$0xff] %vm721_vm2, %v2099_v2  ;;  %v2982_v39 = vpop.permute.xlu1 %2981 }
 0x4dd   : > { %2286 = vst.msk [vmem:[#allocation3 + $0x60] sm:$0xff] %vm2279_vm3, %v2268_v19 }
 0x4de   : > { %3001 = vst.msk [vmem:[#allocation3 + $0x50] sm:$0xff] %vm2995_vm7, %v2982_v39 }
 0x4e2   : > { %v3845_v43 = vpop.permute.xlu0 %3844 }
 0x4e3   : > { %3862 = vst.msk [vmem:[#allocation3 + $0x68] sm:$0xff] %vm2458_vm4, %v3845_v43 }
 0x4e5   : > { %v4555_v28 = vpop.permute.xlu1 %4554 }
 0x4e6   : > { %4573 = vst.msk [vmem:[#allocation3 + $0x58] sm:$0xff] %vm3174_vm8, %v4555_v28 }
 0x4e7   : > { %v2447_v57 = vpop.permute.xlu0 %2446 }
 0x4e8   : > { %2465 = vst.msk [vmem:[#allocation3 + $0x60] sm:$0xff] %vm2458_vm4, %v2447_v57 }
 0x4ea   : > { %v3161_v52 = vpop.permute.xlu1 %3160 }
 0x4eb   : > { %3180 = vst.msk [vmem:[#allocation3 + $0x50] sm:$0xff] %vm3174_vm8, %v3161_v52 }
 0x4ed   : > { %v4023_v53 = vpop.permute.xlu0 %4022 }
 0x4ee   : > { %4040 = vst.msk [vmem:[#allocation3 + $0x68] sm:$0xff] %vm2637_vm5, %v4023_v53 }
 0x4f1   : > { %v4733_v36 = vpop.permute.xlu1 %4732 }
 0x4f2   : > { %4751 = vst.msk [vmem:[#allocation3 + $0x58] sm:$0xff] %vm3353_vm9, %v4733_v36 }
 0x4f3   : > { %v2626_v12 = vpop.permute.xlu0 %2625 }
 0x4f4   : > { %2644 = vst.msk [vmem:[#allocation3 + $0x60] sm:$0xff] %vm2637_vm5, %v2626_v12 }
 0x4f6   : > { %v3340_v30 = vpop.permute.xlu1 %3339 }
 0x4f7   : > { %3359 = vst.msk [vmem:[#allocation3 + $0x50] sm:$0xff] %vm3353_vm9, %v3340_v30 }
 0x4f8   : > { %v4201_v24 = vpop.permute.xlu0 %4200 }
 0x4f9   : > { %v4766_v58 = vld [vmem:[#allocation3 + $0x58] sm:$0xff]  ;;  %4218 = vst.msk [vmem:[#allocation3 + $0x68] sm:$0xff] %vm2816_vm6, %v4201_v24 }
 0x4fa   : > { %4787 = vmatprep.subr.bf16.mxu1 %v4766_v58 }
 0x4fb   : > { %v2805_v56 = vpop.permute.xlu1 %2804 }
 0x4fc   : > { %2823 = vst.msk [vmem:[#allocation3 + $0x60] sm:$0xff] %vm2816_vm6, %v2805_v56 }
 0x4fe   : > { %v3669_v40 = vpop.permute.xlu0 %3668  ;;  %v4765_v62 = vld [vmem:[#allocation3 + $0x50] sm:$0xff] }
 0x4ff   : > { %3685 = vst.msk [vmem:[#allocation3 + $0x78] sm:$0xff] %vm2279_vm3, %v3669_v40  ;;  %4788 = vmatpush1.bf16.msra.mxu1 %v4765_v62 }
 0x500   : > { %v4379_v41 = vpop.permute.xlu1 %4378 }
 0x501   : > { %4396 = vst.msk [vmem:[#allocation3 + $0x68] sm:$0xff] %vm2995_vm7, %v4379_v41 }
 0x507   : > { %v2270_v60 = vpop.permute.xlu0 %2269 }
 0x508   : > { %2287 = vst.msk [vmem:[#allocation3 + $0x70] sm:$0xff] %vm2279_vm3, %v2270_v60 }
 0x509   : > { %v2984_v11 = vpop.permute.xlu1 %2983 }
 0x50a   : > { %3002 = vst.msk [vmem:[#allocation3 + $0x60] sm:$0xff] %vm2995_vm7, %v2984_v11 }
 0x50f   : > { %v3847_v1 = vpop.permute.xlu0 %3846 }
 0x510   : > { %3863 = vst.msk [vmem:[#allocation3 + $0x78] sm:$0xff] %vm2458_vm4, %v3847_v1 }
 0x512   : > { %v4557_v10 = vpop.permute.xlu1 %4556 }
 0x513   : > { %4574 = vst.msk [vmem:[#allocation3 + $0x68] sm:$0xff] %vm3174_vm8, %v4557_v10 }
 0x514   : > { %v2449_v46 = vpop.permute.xlu0 %2448 }
 0x515   : > { %2466 = vst.msk [vmem:[#allocation3 + $0x70] sm:$0xff] %vm2458_vm4, %v2449_v46 }
 0x517   : > { %v3163_v49 = vpop.permute.xlu1 %3162 }
 0x518   : > { %3181 = vst.msk [vmem:[#allocation3 + $0x60] sm:$0xff] %vm3174_vm8, %v3163_v49 }
 0x51a   : > { %v4025_v3 = vpop.permute.xlu0 %4024 }
 0x51b   : > { %4041 = vst.msk [vmem:[#allocation3 + $0x78] sm:$0xff] %vm2637_vm5, %v4025_v3 }
 0x51d   : > { %v4735_v26 = vpop.permute.xlu1 %4734 }
 0x51e   : > { %4752 = vst.msk [vmem:[#allocation3 + $0x68] sm:$0xff] %vm3353_vm9, %v4735_v26 }
 0x51f   : > { %v2628_v21 = vpop.permute.xlu0 %2627 }
 0x520   : > { %2645 = vst.msk [vmem:[#allocation3 + $0x70] sm:$0xff] %vm2637_vm5, %v2628_v21 }
 0x522   : > { %v3342_v13 = vpop.permute.xlu1 %3341 }
 0x523   : > { %3360 = vst.msk [vmem:[#allocation3 + $0x60] sm:$0xff] %vm3353_vm9, %v3342_v13 }
 0x525   : > { %v4203_v7 = vpop.permute.xlu0 %4202  ;;  %v4768_v0 = vld [vmem:[#allocation3 + $0x68] sm:$0xff] }
 0x526   : > { %4219 = vst.msk [vmem:[#allocation3 + $0x78] sm:$0xff] %vm2816_vm6, %v4203_v7  ;;  %4789 = vmatprep.subr.bf16.mxu1 %v4768_v0 }
 0x528   : > { %v2807_v33 = vpop.permute.xlu1 %2806 }
 0x529   : > { %2824 = vst.msk [vmem:[#allocation3 + $0x70] sm:$0xff] %vm2816_vm6, %v2807_v33 }
 0x52a   : > { %v4381_v47 = vpop.permute.xlu0 %4380  ;;  %v4767_v51 = vld [vmem:[#allocation3 + $0x60] sm:$0xff] }
 0x52b   : > { %4397 = vst.msk [vmem:[#allocation3 + $0x78] sm:$0xff] %vm2995_vm7, %v4381_v47  ;;  %4790 = vmatpush1.bf16.msra.mxu1 %v4767_v51 }
 0x52d   : > { %v2986_v48 = vpop.permute.xlu1 %2985 }
 0x52e   : > { %3003 = vst.msk [vmem:[#allocation3 + $0x70] sm:$0xff] %vm2995_vm7, %v2986_v48 }
 0x533   : > { %v4559_v6 = vpop.permute.xlu0 %4558 }
 0x534   : > { %4575 = vst.msk [vmem:[#allocation3 + $0x78] sm:$0xff] %vm3174_vm8, %v4559_v6 }
 0x535   : > { %v3165_v45 = vpop.permute.xlu1 %3164 }
 0x536   : > { %3182 = vst.msk [vmem:[#allocation3 + $0x70] sm:$0xff] %vm3174_vm8, %v3165_v45 }
 0x53b   : > { %v4737_v35 = vpop.permute.xlu0 %4736 }
 0x53c   : > { %4753 = vst.msk [vmem:[#allocation3 + $0x78] sm:$0xff] %vm3353_vm9, %v4737_v35 }
 0x53e   : > { %v3344_v32 = vpop.permute.xlu1 %3343 }
 0x53f   : > { %3361 = vst.msk [vmem:[#allocation3 + $0x70] sm:$0xff] %vm3353_vm9, %v3344_v32 }
 0x543   : > { %v4770_v18 = vld [vmem:[#allocation3 + $0x78] sm:$0xff] }
 0x544   : > { %4791 = vmatprep.subr.bf16.mxu1 %v4770_v18 }
 0x546   : > { %v4769_v14 = vld [vmem:[#allocation3 + $0x70] sm:$0xff] }
 0x547   : > { %4792 = vmatpush1.bf16.msra.mxu1 %v4769_v14 }
 0x54a   : > { %4810 = vmatmul.mubr.bf16.vlgmr.msra.gmra.mrb[64].mxu1 %v4754_v9 }
 0x54c   : > { %v4775_v8 = vpop.permute.xlu0 %4774 }
 0x61d   : > { %v4811_v61 = vpop.f32.mrb[64].mxu1 }
 0x61e   : > { %v4812_v55 = vadd.f32 %v4811_v61, %v4775_v8  ;;  %v4813_v4 = vpop.f32.mrb[65].mxu1 }
 0x61f   : > { %v4814_v54 = vadd.f32 %v4813_v4, %v4775_v8  ;;  %v4815_v17 = vpop.f32.mrb[66].mxu1 }
 0x620   : > { %4818 = vst [vmem:[%s354_s27] sm:$0xff] %v4812_v55  ;;  %v4816_v15 = vpop.f32.mrb[67].mxu1 }
 0x621   : > { %4819 = vst [vmem:[%s354_s27 + $0x8] sm:$0xff] %v4814_v54 }
 0x622 PF: > { %s8705_s9 = sld [smem:[#allocation11_spill]]  ;;  %s8706_s27 = sld [smem:[#allocation10_spill]] }
 0x623   : > { %s8707_s28 = sld [smem:[#allocation12_spill]] }
 0x628   : > { %s20_s29 = sadd.s32 1, %s8705_s9  }
 0x629   : > { %p17_p4 = scmp.ge.s32.totalorder %s20_s29, 4  }
 0x62b   :  { %19 = sbr.rel (!%p17_p4) target bundleno = 13 (0xd), region = 133 }
 0x632   :  { %4850 = vsyncpa [#allocation5], 1 }
 0x633   :  { %4852 = vsyncpa [#allocation5 + $0x1], 1 }
 0x634   :  { %4853 = vsyncpa [#allocation7], 1 }

</bundles_post_ra>
